<compile_context>
chip_gen: v6e
topology: v6e:2x2x1
jax: 0.10.0
libtpu: 0.0.40
codegen_flags: <defaults>
</compile_context>

<pallas_src>
import numpy as np
import jax
import jax.numpy as jnp
from jax.experimental import pallas as pl
from jax.experimental.pallas import tpu as pltpu


# ----------------------------------------------------------------------------
# Synthetic Darknet cfg (tiny YOLO-like net).
# ----------------------------------------------------------------------------
CFG = """
[net]
height=16
width=16
channels=3

[convolutional]
batch_normalize=1
filters=8
size=3
stride=1
pad=1
activation=leaky

[convolutional]
batch_normalize=1
filters=16
size=3
stride=2
pad=1
activation=leaky

[convolutional]
batch_normalize=1
filters=16
size=3
stride=1
pad=1
activation=leaky

[shortcut]
from=-2
activation=linear

[convolutional]
filters=18
size=1
stride=1
pad=1
activation=linear

[yolo]
mask = 0,1,2
anchors = 10,13, 16,30, 33,23, 30,61, 62,45, 59,119
classes=1
num=6

[route]
layers = -3

[convolutional]
batch_normalize=1
filters=8
size=1
stride=1
pad=1
activation=leaky

[upsample]
stride=2

[route]
layers = -1, -9

[convolutional]
filters=18
size=3
stride=1
pad=1
activation=linear

[yolo]
mask = 3,4,5
anchors = 10,13, 16,30, 33,23, 30,61, 62,45, 59,119
classes=1
num=6
"""


def parse_cfg_string(cfg_text):
    """Same semantics as parse_cfg, but on an in-memory string."""
    lines = [x.rstrip().lstrip() for x in cfg_text.split('\n')]
    lines = [x for x in lines if len(x) > 0 and x[0] != '#']
    block, blocks = {}, []
    for line in lines:
        if line[0] == '[':
            if len(block) != 0:
                blocks.append(block)
                block = {}
            block['type'] = line[1:-1].rstrip()
        else:
            key, value = line.split('=')
            block[key.rstrip()] = value.lstrip()
    blocks.append(block)
    return blocks


# ----------------------------------------------------------------------------
# Trace-time constant builders (plain numpy).  All arrays are channel-major /
# lane-dense: spatial positions (n, h, w) row-major along the last axis.
# ----------------------------------------------------------------------------
def make_tap_masks(N, H, W, K, pad):
    """(K*K, N*H*W) 0/1 masks: tap (i,j) is valid at (h,w) iff the shifted
    position (h+i-pad, w+j-pad) lies inside the image (else zero padding)."""
    M = N * H * W
    flat = np.arange(M)
    h = (flat // W) % H
    w = flat % W
    masks = np.zeros((K * K, M), np.float32)
    for i in range(K):
        for j in range(K):
            di, dj = i - pad, j - pad
            valid = (h + di >= 0) & (h + di < H) & (w + dj >= 0) & (w + dj < W)
            masks[i * K + j] = valid.astype(np.float32)
    return masks


def make_subsample_mat(N, H, W, Ho, Wo, s):
    """0/1 matrix S (N*H*W, N*Ho*Wo): full-grid conv output @ S == stride-s
    conv output (picks positions (s*ho, s*wo))."""
    S = np.zeros((N * H * W, N * Ho * Wo), np.float32)
    for n in range(N):
        for ho in range(Ho):
            for wo in range(Wo):
                S[n * H * W + (s * ho) * W + (s * wo),
                  n * Ho * Wo + ho * Wo + wo] = 1.0
    return S


def make_upsample_mat_t(N, H, W, s):
    """0/1 matrix R (N*H*W, N*sH*sW): x @ R is nearest-neighbour upsample."""
    Ho, Wo = H * s, W * s
    R = np.zeros((N * H * W, N * Ho * Wo), np.float32)
    for n in range(N):
        for ho in range(Ho):
            for wo in range(Wo):
                R[n * H * W + (ho // s) * W + (wo // s),
                  n * Ho * Wo + ho * Wo + wo] = 1.0
    return R


def make_yolo_consts_t(N, G, anchors, num_classes, stride):
    """Constants for predict_transform in channel-major layout.

    Rows are a*attrs + t (anchor-major attributes), columns are (n, gh, gw)."""
    A = len(anchors)
    attrs = 5 + num_classes
    C = A * attrs
    M = N * G * G
    t_idx = np.arange(C) % attrs
    # exp branch selector (w, h rows)
    em = ((t_idx == 2) | (t_idx == 3)).astype(np.float32)[:, None]
    # anchor scale for w / h  (anchors/stride * stride cancels to the anchor)
    anc = np.ones((C, 1), np.float32)
    for a in range(A):
        anc[a * attrs + 2, 0] = float(anchors[a][0])
        anc[a * attrs + 3, 0] = float(anchors[a][1])
    # (sigmoid + offset) * scale ; scale = stride only for x, y rows
    scl = np.where((t_idx == 0) | (t_idx == 1),
                   float(stride), 1.0).astype(np.float32)[:, None]
    g = np.arange(G * G)
    gh = np.tile((g // G).astype(np.float32), N)
    gw = np.tile((g % G).astype(np.float32), N)
    off = np.zeros((C, M), np.float32)
    off[t_idx == 0, :] = gw[None, :]
    off[t_idx == 1, :] = gh[None, :]
    return off, em, anc, scl


# ----------------------------------------------------------------------------
# Build the execution plan (create_modules equivalent) for the fused kernel.
# ----------------------------------------------------------------------------
def build_plan(blocks, key, N):
    net_info = blocks[0]
    inp_dim = int(net_info['height'])
    hh = int(net_info['height'])
    ww = int(net_info['width'])
    prev_filters = int(net_info.get('channels', 3))
    filters = prev_filters

    consts = []        # kernel operands after x (x is in_refs[0])
    out_shapes = []    # one output per yolo head
    plan = []
    out_filters = []
    out_spatial = []

    def add(arr, dtype=jnp.float32):
        consts.append(jnp.asarray(arr, dtype))
        return len(consts)          # index into in_refs (x occupies slot 0)

    for index, b in enumerate(blocks[1:]):
        t = b['type']
        if t == 'convolutional':
            bn = ('batch_normalize' in b) and int(b['batch_normalize']) == 1
            filters = int(b['filters'])
            K = int(b['size'])
            stride = int(b['stride'])
            pad = (K - 1) // 2 if int(b['pad']) else 0
            # roll+mask tap extraction assumes "same"-style padding
            assert K == 1 or 2 * pad == K - 1, 'unsupported conv geometry'
            key, k1, k2, k3 = jax.random.split(key, 4)
            # PyTorch conv weight layout (Cout, Cin, K, K) -> per-tap
            # (K*K, Cout, Cin) bf16 matrices for  W_tap @ x_tap  dots.
            w = 0.1 * jax.random.normal(
                k1, (filters, prev_filters, K, K), jnp.float32)
            w_kt = jnp.transpose(w, (2, 3, 0, 1)).reshape(
                K * K, filters, prev_filters)
            w_i = add(w_kt, jnp.bfloat16)
            g_i = None
            if bn:
                g_i = add(1.0 + 0.1 * jax.random.normal(
                    k2, (filters, 1), jnp.float32))
            # beta doubles as the conv bias when BN is absent
            b_i = add(0.1 * jax.random.normal(k3, (filters, 1), jnp.float32))
            Ho = (hh + 2 * pad - K) // stride + 1
            Wo = (ww + 2 * pad - K) // stride + 1
            m_i = None
            if K > 1:
                m_i = add(make_tap_masks(N, hh, ww, K, pad))
            sub_i = None
            if stride > 1:
                sub_i = add(make_subsample_mat(N, hh, ww, Ho, Wo, stride))
            plan.append(dict(kind='conv', k=K, stride=stride, pad=pad, bn=bn,
                             leaky=(b['activation'] == 'leaky'),
                             cin=prev_filters, cout=filters, h=hh, w=ww,
                             w_i=w_i, g_i=g_i, b_i=b_i, m_i=m_i, sub_i=sub_i))
            hh, ww = Ho, Wo
        elif t == 'upsample':
            s = int(b['stride'])
            rep_i = add(make_upsample_mat_t(N, hh, ww, s))
            plan.append(dict(kind='upsample', rep=rep_i))
            hh, ww = hh * s, ww * s
        elif t == 'route':
            ls = [int(a) for a in b['layers'].split(',')]
            srcs = [index + l if l < 0 else l for l in ls]   # absolute indices
            plan.append(dict(kind='route', srcs=srcs))
            filters = sum(out_filters[s_] for s_ in srcs)
            hh, ww = out_spatial[srcs[0]]
        elif t == 'shortcut':
            plan.append(dict(kind='shortcut', frm=int(b['from'])))
        elif t == 'yolo':
            mask = [int(m) for m in b['mask'].split(',')]
            anc_all = [int(a) for a in b['anchors'].split(',')]
            anc_all = [(anc_all[i], anc_all[i + 1])
                       for i in range(0, len(anc_all), 2)]
            anchors = [anc_all[m] for m in mask]
            num_classes = int(b['classes'])
            stride = inp_dim // hh
            G = inp_dim // stride
            A = len(anchors)
            attrs = 5 + num_classes
            off, em, anc, scl = make_yolo_consts_t(
                N, G, anchors, num_classes, stride)
            off_i, em_i = add(off), add(em)
            anc_i, scl_i = add(anc), add(scl)
            # lane-dense output: (A*attrs, N*G*G); final view done in wrapper
            out_shapes.append(
                jax.ShapeDtypeStruct((A * attrs, N * G * G), jnp.float32))
            plan.append(dict(kind='yolo', off=off_i, em=em_i, anc=anc_i,
                             scl=scl_i, g=G, a=A, attrs=attrs,
                             out=len(out_shapes) - 1))
        prev_filters = filters
        out_filters.append(filters)
        out_spatial.append((hh, ww))

    return plan, consts, out_shapes


# ----------------------------------------------------------------------------
# The fused Pallas kernel.
# ----------------------------------------------------------------------------
def _lane_shift(x, s):
    """Circular shift along the lane axis: out[..., f] = x[..., (f + s) % M].

    Implemented as two static lane slices + a 2-piece concat (guaranteed
    lowering; wrapped lanes are zeroed by the caller's boundary mask)."""
    M = x.shape[-1]
    s = s % M
    if s == 0:
        return x
    return jnp.concatenate([x[:, s:], x[:, :s]], axis=1)


def make_kernel(plan, n_in, n_out):
    def kernel(*refs):
        in_refs = refs[:n_in]
        out_refs = refs[n_in:n_in + n_out]

        # Activations flow channel-major: (C, N*H*W), spatial in the lane dim.
        cur = in_refs[0][...]
        outs = {}

        for li, p in enumerate(plan):
            kind = p['kind']
            if kind == 'conv':
                K, pad, W = p['k'], p['pad'], p['w']
                acc = None
                for i in range(K):
                    for j in range(K):
                        t = i * K + j
                        sft = (i - pad) * W + (j - pad)
                        x_t = _lane_shift(cur, sft)
                        if p['m_i'] is not None:
                            # zero out positions whose tap falls in padding
                            x_t = x_t * in_refs[p['m_i']][pl.ds(t, 1), :]
                        w_t = in_refs[p['w_i']][t]          # (Cout, Cin) bf16
                        c_t = jnp.dot(w_t, x_t.astype(jnp.bfloat16),
                                      preferred_element_type=jnp.float32)
                        acc = c_t if acc is None else acc + c_t
                if p['sub_i'] is not None:
                    # stride-s conv == stride-1 conv sampled on the coarse
                    # grid: one exact 0/1 subsample matmul.
                    acc = jnp.dot(acc, in_refs[p['sub_i']][...],
                                  preferred_element_type=jnp.float32)
                beta = in_refs[p['b_i']][...]               # (Cout, 1)
                if p['bn']:
                    # training-mode BatchNorm2d: biased batch stats over
                    # (N, H, W)  ==  per-channel mean/var over the lane axis.
                    gamma = in_refs[p['g_i']][...]
                    mean = jnp.mean(acc, axis=1, keepdims=True)
                    xc = acc - mean
                    var = jnp.mean(xc * xc, axis=1, keepdims=True)
                    y = xc * jax.lax.rsqrt(var + 1e-5) * gamma + beta
                else:
                    y = acc + beta                          # plain conv bias
                if p['leaky']:
                    y = jnp.where(y > 0, y, 0.1 * y)        # LeakyReLU(0.1)
                cur = y
            elif kind == 'shortcut':
                cur = outs[li - 1] + outs[li + p['frm']]
            elif kind == 'route':
                vals = [outs[s_] for s_ in p['srcs']]
                # channel concat == sublane-axis concat (8-aligned pieces)
                cur = vals[0] if len(vals) == 1 else jnp.concatenate(vals, axis=0)
            elif kind == 'upsample':
                # nearest x2 upsample as an exact 0/1 replication matmul
                cur = jnp.dot(cur, in_refs[p['rep']][...],
                              preferred_element_type=jnp.float32)
            elif kind == 'yolo':
                # predict_transform as a masked elementwise pass; exp() only
                # sees the w/h rows (input zeroed elsewhere -> no inf).
                off = in_refs[p['off']][...]
                em = in_refs[p['em']][...]
                anc = in_refs[p['anc']][...]
                scl = in_refs[p['scl']][...]
                wh = em > 0.5
                p_exp = jnp.exp(jnp.where(wh, cur, 0.0)) * anc
                p_sig = (jax.nn.sigmoid(cur) + off) * scl
                det = jnp.where(wh, p_exp, p_sig)
                out_refs[p['out']][...] = det               # lane-dense store
                cur = det
            outs[li] = cur
    return kernel


# ----------------------------------------------------------------------------
# Wrapper: one pallas_call for the whole network + tiny output glue.
# ----------------------------------------------------------------------------
def build_forward(blocks, key, N):
    plan, consts, out_shapes = build_plan(blocks, key, N)
    n_in = 1 + len(consts)
    n_out = len(out_shapes)
    kernel = make_kernel(plan, n_in, n_out)
    vspec = pl.BlockSpec(memory_space=pltpu.MemorySpace.VMEM)
    yolo_plans = [p for p in plan if p['kind'] == 'yolo']

    call = pl.pallas_call(
        kernel,
        out_shape=tuple(out_shapes),
        in_specs=[vspec] * n_in,
        out_specs=tuple([vspec] * n_out),
        compiler_params=pltpu.CompilerParams(
            vmem_limit_bytes=32 * 1024 * 1024),
    )

    def forward(x_nchw):
        Nn, C0, H0, W0 = x_nchw.shape
        # NCHW -> channel-major (C, N*H*W): spatial flattened into lanes (glue)
        x_cm = jnp.transpose(x_nchw, (1, 0, 2, 3)).reshape(C0, Nn * H0 * W0)
        heads = call(x_cm, *consts)
        dets = []
        for arr, p in zip(heads, yolo_plans):
            A, attrs, G = p['a'], p['attrs'], p['g']
            # (A*attrs, N*G*G) -> (N, G*G*A, attrs): predict_transform view
            d = arr.reshape(A, attrs, Nn, G * G)
            d = jnp.transpose(d, (2, 3, 0, 1)).reshape(Nn, G * G * A, attrs)
            dets.append(d)
        return jnp.concatenate(dets, axis=1)

    return jax.jit(forward)


# ----------------------------------------------------------------------------
if __name__ == "__main__":
    key = jax.random.PRNGKey(0)
    kx, kp = jax.random.split(key)

    x = jax.random.normal(kx, (2, 3, 16, 16), jnp.float32)   # NCHW input

    blocks = parse_cfg_string(CFG)
    fwd = build_forward(blocks, kp, N=2)

    det = fwd(x)
    det = jax.block_until_ready(det)

    # two yolo heads: 8*8*3 + 16*16*3 = 960 boxes, 5+1 attrs each
    assert det.shape == (2, 960, 6), det.shape
    assert bool(jnp.all(jnp.isfinite(det)))
    print("KERNEL_OK")
</pallas_src>

<mosaic_0001>
module attributes {stable_mosaic.version = 11 : i64} {
  func.func @kernel(%arg0: memref<3x512xf32, #tpu.memory_space<vmem>>, %arg1: memref<9x8x3xbf16, #tpu.memory_space<vmem>>, %arg2: memref<8x1xf32, #tpu.memory_space<vmem>>, %arg3: memref<8x1xf32, #tpu.memory_space<vmem>>, %arg4: memref<9x512xf32, #tpu.memory_space<vmem>>, %arg5: memref<9x16x8xbf16, #tpu.memory_space<vmem>>, %arg6: memref<16x1xf32, #tpu.memory_space<vmem>>, %arg7: memref<16x1xf32, #tpu.memory_space<vmem>>, %arg8: memref<9x512xf32, #tpu.memory_space<vmem>>, %arg9: memref<512x128xf32, #tpu.memory_space<vmem>>, %arg10: memref<9x16x16xbf16, #tpu.memory_space<vmem>>, %arg11: memref<16x1xf32, #tpu.memory_space<vmem>>, %arg12: memref<16x1xf32, #tpu.memory_space<vmem>>, %arg13: memref<9x128xf32, #tpu.memory_space<vmem>>, %arg14: memref<1x18x16xbf16, #tpu.memory_space<vmem>>, %arg15: memref<18x1xf32, #tpu.memory_space<vmem>>, %arg16: memref<18x128xf32, #tpu.memory_space<vmem>>, %arg17: memref<18x1xf32, #tpu.memory_space<vmem>>, %arg18: memref<18x1xf32, #tpu.memory_space<vmem>>, %arg19: memref<18x1xf32, #tpu.memory_space<vmem>>, %arg20: memref<1x8x16xbf16, #tpu.memory_space<vmem>>, %arg21: memref<8x1xf32, #tpu.memory_space<vmem>>, %arg22: memref<8x1xf32, #tpu.memory_space<vmem>>, %arg23: memref<128x512xf32, #tpu.memory_space<vmem>>, %arg24: memref<9x18x16xbf16, #tpu.memory_space<vmem>>, %arg25: memref<18x1xf32, #tpu.memory_space<vmem>>, %arg26: memref<9x512xf32, #tpu.memory_space<vmem>>, %arg27: memref<18x512xf32, #tpu.memory_space<vmem>>, %arg28: memref<18x1xf32, #tpu.memory_space<vmem>>, %arg29: memref<18x1xf32, #tpu.memory_space<vmem>>, %arg30: memref<18x1xf32, #tpu.memory_space<vmem>>, %arg31: memref<18x128xf32, #tpu.memory_space<vmem>>, %arg32: memref<18x512xf32, #tpu.memory_space<vmem>>) attributes {dimension_semantics = [], scalar_prefetch = 0 : i64, scratch_operands = 0 : i64, tpu.core_type = #tpu.core_type<tc>} {
    %c0 = arith.constant 0 : index
    %c0_0 = arith.constant 0 : index
    %0 = vector.load %arg0[%c0, %c0_0] : memref<3x512xf32, #tpu.memory_space<vmem>>, vector<3x512xf32>
    %1 = vector.extract_strided_slice %0 {offsets = [0, 495], sizes = [3, 17], strides = [1, 1]} : vector<3x512xf32> to vector<3x17xf32>
    %2 = vector.extract_strided_slice %0 {offsets = [0, 0], sizes = [3, 495], strides = [1, 1]} : vector<3x512xf32> to vector<3x495xf32>
    %3 = tpu.concatenate %1, %2 in 1 : vector<3x17xf32>, vector<3x495xf32> -> vector<3x512xf32>
    %c0_1 = arith.constant 0 : index
    %c0_2 = arith.constant 0 : index
    %4 = vector.load %arg4[%c0_1, %c0_2] : memref<9x512xf32, #tpu.memory_space<vmem>>, vector<1x512xf32>
    %5 = vector.broadcast %4 : vector<1x512xf32> to vector<3x512xf32>
    %6 = arith.mulf %3, %5 : vector<3x512xf32>
    %c0_3 = arith.constant 0 : index
    %c0_4 = arith.constant 0 : index
    %c0_5 = arith.constant 0 : index
    %7 = vector.load %arg1[%c0_3, %c0_4, %c0_5] : memref<9x8x3xbf16, #tpu.memory_space<vmem>>, vector<1x8x3xbf16>
    %8 = vector.shape_cast %7 : vector<1x8x3xbf16> to vector<8x3xbf16>
    %9 = arith.truncf %6 : vector<3x512xf32> to vector<3x512xbf16>
    %cst = arith.constant dense<0.000000e+00> : vector<8x512xf32>
    %10 = tpu.matmul %8, %9, %cst {dimension_numbers = #tpu.dot_dimension_numbers<[1], [0], [0], [1], [0, 0, 1, 1], [], []>} : vector<8x3xbf16>, vector<3x512xbf16>, vector<8x512xf32> -> vector<8x512xf32>
    %11 = vector.extract_strided_slice %0 {offsets = [0, 496], sizes = [3, 16], strides = [1, 1]} : vector<3x512xf32> to vector<3x16xf32>
    %12 = vector.extract_strided_slice %0 {offsets = [0, 0], sizes = [3, 496], strides = [1, 1]} : vector<3x512xf32> to vector<3x496xf32>
    %13 = tpu.concatenate %11, %12 in 1 : vector<3x16xf32>, vector<3x496xf32> -> vector<3x512xf32>
    %c1 = arith.constant 1 : index
    %c0_6 = arith.constant 0 : index
    %14 = vector.load %arg4[%c1, %c0_6] : memref<9x512xf32, #tpu.memory_space<vmem>>, vector<1x512xf32>
    %15 = vector.broadcast %14 : vector<1x512xf32> to vector<3x512xf32>
    %16 = arith.mulf %13, %15 : vector<3x512xf32>
    %c1_7 = arith.constant 1 : index
    %c0_8 = arith.constant 0 : index
    %c0_9 = arith.constant 0 : index
    %17 = vector.load %arg1[%c1_7, %c0_8, %c0_9] : memref<9x8x3xbf16, #tpu.memory_space<vmem>>, vector<1x8x3xbf16>
    %18 = vector.shape_cast %17 : vector<1x8x3xbf16> to vector<8x3xbf16>
    %19 = arith.truncf %16 : vector<3x512xf32> to vector<3x512xbf16>
    %cst_10 = arith.constant dense<0.000000e+00> : vector<8x512xf32>
    %20 = tpu.matmul %18, %19, %cst_10 {dimension_numbers = #tpu.dot_dimension_numbers<[1], [0], [0], [1], [0, 0, 1, 1], [], []>} : vector<8x3xbf16>, vector<3x512xbf16>, vector<8x512xf32> -> vector<8x512xf32>
    %21 = arith.addf %10, %20 : vector<8x512xf32>
    %22 = vector.extract_strided_slice %0 {offsets = [0, 497], sizes = [3, 15], strides = [1, 1]} : vector<3x512xf32> to vector<3x15xf32>
    %23 = vector.extract_strided_slice %0 {offsets = [0, 0], sizes = [3, 497], strides = [1, 1]} : vector<3x512xf32> to vector<3x497xf32>
    %24 = tpu.concatenate %22, %23 in 1 : vector<3x15xf32>, vector<3x497xf32> -> vector<3x512xf32>
    %c2 = arith.constant 2 : index
    %c0_11 = arith.constant 0 : index
    %25 = vector.load %arg4[%c2, %c0_11] : memref<9x512xf32, #tpu.memory_space<vmem>>, vector<1x512xf32>
    %26 = vector.broadcast %25 : vector<1x512xf32> to vector<3x512xf32>
    %27 = arith.mulf %24, %26 : vector<3x512xf32>
    %c2_12 = arith.constant 2 : index
    %c0_13 = arith.constant 0 : index
    %c0_14 = arith.constant 0 : index
    %28 = vector.load %arg1[%c2_12, %c0_13, %c0_14] : memref<9x8x3xbf16, #tpu.memory_space<vmem>>, vector<1x8x3xbf16>
    %29 = vector.shape_cast %28 : vector<1x8x3xbf16> to vector<8x3xbf16>
    %30 = arith.truncf %27 : vector<3x512xf32> to vector<3x512xbf16>
    %cst_15 = arith.constant dense<0.000000e+00> : vector<8x512xf32>
    %31 = tpu.matmul %29, %30, %cst_15 {dimension_numbers = #tpu.dot_dimension_numbers<[1], [0], [0], [1], [0, 0, 1, 1], [], []>} : vector<8x3xbf16>, vector<3x512xbf16>, vector<8x512xf32> -> vector<8x512xf32>
    %32 = arith.addf %21, %31 : vector<8x512xf32>
    %33 = vector.extract_strided_slice %0 {offsets = [0, 511], sizes = [3, 1], strides = [1, 1]} : vector<3x512xf32> to vector<3x1xf32>
    %34 = vector.extract_strided_slice %0 {offsets = [0, 0], sizes = [3, 511], strides = [1, 1]} : vector<3x512xf32> to vector<3x511xf32>
    %35 = tpu.concatenate %33, %34 in 1 : vector<3x1xf32>, vector<3x511xf32> -> vector<3x512xf32>
    %c3 = arith.constant 3 : index
    %c0_16 = arith.constant 0 : index
    %36 = vector.load %arg4[%c3, %c0_16] : memref<9x512xf32, #tpu.memory_space<vmem>>, vector<1x512xf32>
    %37 = vector.broadcast %36 : vector<1x512xf32> to vector<3x512xf32>
    %38 = arith.mulf %35, %37 : vector<3x512xf32>
    %c3_17 = arith.constant 3 : index
    %c0_18 = arith.constant 0 : index
    %c0_19 = arith.constant 0 : index
    %39 = vector.load %arg1[%c3_17, %c0_18, %c0_19] : memref<9x8x3xbf16, #tpu.memory_space<vmem>>, vector<1x8x3xbf16>
    %40 = vector.shape_cast %39 : vector<1x8x3xbf16> to vector<8x3xbf16>
    %41 = arith.truncf %38 : vector<3x512xf32> to vector<3x512xbf16>
    %cst_20 = arith.constant dense<0.000000e+00> : vector<8x512xf32>
    %42 = tpu.matmul %40, %41, %cst_20 {dimension_numbers = #tpu.dot_dimension_numbers<[1], [0], [0], [1], [0, 0, 1, 1], [], []>} : vector<8x3xbf16>, vector<3x512xbf16>, vector<8x512xf32> -> vector<8x512xf32>
    %43 = arith.addf %32, %42 : vector<8x512xf32>
    %c4 = arith.constant 4 : index
    %c0_21 = arith.constant 0 : index
    %44 = vector.load %arg4[%c4, %c0_21] : memref<9x512xf32, #tpu.memory_space<vmem>>, vector<1x512xf32>
    %45 = vector.broadcast %44 : vector<1x512xf32> to vector<3x512xf32>
    %46 = arith.mulf %0, %45 : vector<3x512xf32>
    %c4_22 = arith.constant 4 : index
    %c0_23 = arith.constant 0 : index
    %c0_24 = arith.constant 0 : index
    %47 = vector.load %arg1[%c4_22, %c0_23, %c0_24] : memref<9x8x3xbf16, #tpu.memory_space<vmem>>, vector<1x8x3xbf16>
    %48 = vector.shape_cast %47 : vector<1x8x3xbf16> to vector<8x3xbf16>
    %49 = arith.truncf %46 : vector<3x512xf32> to vector<3x512xbf16>
    %cst_25 = arith.constant dense<0.000000e+00> : vector<8x512xf32>
    %50 = tpu.matmul %48, %49, %cst_25 {dimension_numbers = #tpu.dot_dimension_numbers<[1], [0], [0], [1], [0, 0, 1, 1], [], []>} : vector<8x3xbf16>, vector<3x512xbf16>, vector<8x512xf32> -> vector<8x512xf32>
    %51 = arith.addf %43, %50 : vector<8x512xf32>
    %52 = vector.extract_strided_slice %0 {offsets = [0, 1], sizes = [3, 511], strides = [1, 1]} : vector<3x512xf32> to vector<3x511xf32>
    %53 = vector.extract_strided_slice %0 {offsets = [0, 0], sizes = [3, 1], strides = [1, 1]} : vector<3x512xf32> to vector<3x1xf32>
    %54 = tpu.concatenate %52, %53 in 1 : vector<3x511xf32>, vector<3x1xf32> -> vector<3x512xf32>
    %c5 = arith.constant 5 : index
    %c0_26 = arith.constant 0 : index
    %55 = vector.load %arg4[%c5, %c0_26] : memref<9x512xf32, #tpu.memory_space<vmem>>, vector<1x512xf32>
    %56 = vector.broadcast %55 : vector<1x512xf32> to vector<3x512xf32>
    %57 = arith.mulf %54, %56 : vector<3x512xf32>
    %c5_27 = arith.constant 5 : index
    %c0_28 = arith.constant 0 : index
    %c0_29 = arith.constant 0 : index
    %58 = vector.load %arg1[%c5_27, %c0_28, %c0_29] : memref<9x8x3xbf16, #tpu.memory_space<vmem>>, vector<1x8x3xbf16>
    %59 = vector.shape_cast %58 : vector<1x8x3xbf16> to vector<8x3xbf16>
    %60 = arith.truncf %57 : vector<3x512xf32> to vector<3x512xbf16>
    %cst_30 = arith.constant dense<0.000000e+00> : vector<8x512xf32>
    %61 = tpu.matmul %59, %60, %cst_30 {dimension_numbers = #tpu.dot_dimension_numbers<[1], [0], [0], [1], [0, 0, 1, 1], [], []>} : vector<8x3xbf16>, vector<3x512xbf16>, vector<8x512xf32> -> vector<8x512xf32>
    %62 = arith.addf %51, %61 : vector<8x512xf32>
    %63 = vector.extract_strided_slice %0 {offsets = [0, 15], sizes = [3, 497], strides = [1, 1]} : vector<3x512xf32> to vector<3x497xf32>
    %64 = vector.extract_strided_slice %0 {offsets = [0, 0], sizes = [3, 15], strides = [1, 1]} : vector<3x512xf32> to vector<3x15xf32>
    %65 = tpu.concatenate %63, %64 in 1 : vector<3x497xf32>, vector<3x15xf32> -> vector<3x512xf32>
    %c6 = arith.constant 6 : index
    %c0_31 = arith.constant 0 : index
    %66 = vector.load %arg4[%c6, %c0_31] : memref<9x512xf32, #tpu.memory_space<vmem>>, vector<1x512xf32>
    %67 = vector.broadcast %66 : vector<1x512xf32> to vector<3x512xf32>
    %68 = arith.mulf %65, %67 : vector<3x512xf32>
    %c6_32 = arith.constant 6 : index
    %c0_33 = arith.constant 0 : index
    %c0_34 = arith.constant 0 : index
    %69 = vector.load %arg1[%c6_32, %c0_33, %c0_34] : memref<9x8x3xbf16, #tpu.memory_space<vmem>>, vector<1x8x3xbf16>
    %70 = vector.shape_cast %69 : vector<1x8x3xbf16> to vector<8x3xbf16>
    %71 = arith.truncf %68 : vector<3x512xf32> to vector<3x512xbf16>
    %cst_35 = arith.constant dense<0.000000e+00> : vector<8x512xf32>
    %72 = tpu.matmul %70, %71, %cst_35 {dimension_numbers = #tpu.dot_dimension_numbers<[1], [0], [0], [1], [0, 0, 1, 1], [], []>} : vector<8x3xbf16>, vector<3x512xbf16>, vector<8x512xf32> -> vector<8x512xf32>
    %73 = arith.addf %62, %72 : vector<8x512xf32>
    %74 = vector.extract_strided_slice %0 {offsets = [0, 16], sizes = [3, 496], strides = [1, 1]} : vector<3x512xf32> to vector<3x496xf32>
    %75 = vector.extract_strided_slice %0 {offsets = [0, 0], sizes = [3, 16], strides = [1, 1]} : vector<3x512xf32> to vector<3x16xf32>
    %76 = tpu.concatenate %74, %75 in 1 : vector<3x496xf32>, vector<3x16xf32> -> vector<3x512xf32>
    %c7 = arith.constant 7 : index
    %c0_36 = arith.constant 0 : index
    %77 = vector.load %arg4[%c7, %c0_36] : memref<9x512xf32, #tpu.memory_space<vmem>>, vector<1x512xf32>
    %78 = vector.broadcast %77 : vector<1x512xf32> to vector<3x512xf32>
    %79 = arith.mulf %76, %78 : vector<3x512xf32>
    %c7_37 = arith.constant 7 : index
    %c0_38 = arith.constant 0 : index
    %c0_39 = arith.constant 0 : index
    %80 = vector.load %arg1[%c7_37, %c0_38, %c0_39] : memref<9x8x3xbf16, #tpu.memory_space<vmem>>, vector<1x8x3xbf16>
    %81 = vector.shape_cast %80 : vector<1x8x3xbf16> to vector<8x3xbf16>
    %82 = arith.truncf %79 : vector<3x512xf32> to vector<3x512xbf16>
    %cst_40 = arith.constant dense<0.000000e+00> : vector<8x512xf32>
    %83 = tpu.matmul %81, %82, %cst_40 {dimension_numbers = #tpu.dot_dimension_numbers<[1], [0], [0], [1], [0, 0, 1, 1], [], []>} : vector<8x3xbf16>, vector<3x512xbf16>, vector<8x512xf32> -> vector<8x512xf32>
    %84 = arith.addf %73, %83 : vector<8x512xf32>
    %85 = vector.extract_strided_slice %0 {offsets = [0, 17], sizes = [3, 495], strides = [1, 1]} : vector<3x512xf32> to vector<3x495xf32>
    %86 = vector.extract_strided_slice %0 {offsets = [0, 0], sizes = [3, 17], strides = [1, 1]} : vector<3x512xf32> to vector<3x17xf32>
    %87 = tpu.concatenate %85, %86 in 1 : vector<3x495xf32>, vector<3x17xf32> -> vector<3x512xf32>
    %c8 = arith.constant 8 : index
    %c0_41 = arith.constant 0 : index
    %88 = vector.load %arg4[%c8, %c0_41] : memref<9x512xf32, #tpu.memory_space<vmem>>, vector<1x512xf32>
    %89 = vector.broadcast %88 : vector<1x512xf32> to vector<3x512xf32>
    %90 = arith.mulf %87, %89 : vector<3x512xf32>
    %c8_42 = arith.constant 8 : index
    %c0_43 = arith.constant 0 : index
    %c0_44 = arith.constant 0 : index
    %91 = vector.load %arg1[%c8_42, %c0_43, %c0_44] : memref<9x8x3xbf16, #tpu.memory_space<vmem>>, vector<1x8x3xbf16>
    %92 = vector.shape_cast %91 : vector<1x8x3xbf16> to vector<8x3xbf16>
    %93 = arith.truncf %90 : vector<3x512xf32> to vector<3x512xbf16>
    %cst_45 = arith.constant dense<0.000000e+00> : vector<8x512xf32>
    %94 = tpu.matmul %92, %93, %cst_45 {dimension_numbers = #tpu.dot_dimension_numbers<[1], [0], [0], [1], [0, 0, 1, 1], [], []>} : vector<8x3xbf16>, vector<3x512xbf16>, vector<8x512xf32> -> vector<8x512xf32>
    %95 = arith.addf %84, %94 : vector<8x512xf32>
    %c0_46 = arith.constant 0 : index
    %c0_47 = arith.constant 0 : index
    %96 = vector.load %arg3[%c0_46, %c0_47] : memref<8x1xf32, #tpu.memory_space<vmem>>, vector<8x1xf32>
    %c0_48 = arith.constant 0 : index
    %c0_49 = arith.constant 0 : index
    %97 = vector.load %arg2[%c0_48, %c0_49] : memref<8x1xf32, #tpu.memory_space<vmem>>, vector<8x1xf32>
    %cst_50 = arith.constant dense<0.000000e+00> : vector<8xf32>
    %98 = vector.multi_reduction <add>, %95, %cst_50 [1] : vector<8x512xf32> to vector<8xf32>
    %99 = vector.shape_cast %98 : vector<8xf32> to vector<8x1xf32>
    %cst_51 = arith.constant 5.120000e+02 : f32
    %100 = vector.broadcast %cst_51 : f32 to vector<8x1xf32>
    %101 = arith.divf %99, %100 : vector<8x1xf32>
    %102 = vector.broadcast %101 : vector<8x1xf32> to vector<8x512xf32>
    %103 = arith.subf %95, %102 : vector<8x512xf32>
    %104 = arith.mulf %103, %103 : vector<8x512xf32>
    %cst_52 = arith.constant dense<0.000000e+00> : vector<8xf32>
    %105 = vector.multi_reduction <add>, %104, %cst_52 [1] : vector<8x512xf32> to vector<8xf32>
    %106 = vector.shape_cast %105 : vector<8xf32> to vector<8x1xf32>
    %cst_53 = arith.constant 5.120000e+02 : f32
    %107 = vector.broadcast %cst_53 : f32 to vector<8x1xf32>
    %108 = arith.divf %106, %107 : vector<8x1xf32>
    %cst_54 = arith.constant 9.99999974E-6 : f32
    %109 = vector.broadcast %cst_54 : f32 to vector<8x1xf32>
    %110 = arith.addf %108, %109 : vector<8x1xf32>
    %111 = math.rsqrt %110 : vector<8x1xf32>
    %112 = vector.broadcast %111 : vector<8x1xf32> to vector<8x512xf32>
    %113 = arith.mulf %103, %112 : vector<8x512xf32>
    %114 = vector.broadcast %97 : vector<8x1xf32> to vector<8x512xf32>
    %115 = arith.mulf %113, %114 : vector<8x512xf32>
    %116 = vector.broadcast %96 : vector<8x1xf32> to vector<8x512xf32>
    %117 = arith.addf %115, %116 : vector<8x512xf32>
    %cst_55 = arith.constant 0.000000e+00 : f32
    %118 = vector.broadcast %cst_55 : f32 to vector<8x512xf32>
    %119 = arith.cmpf ogt, %117, %118 : vector<8x512xf32>
    %cst_56 = arith.constant 1.000000e-01 : f32
    %120 = vector.broadcast %cst_56 : f32 to vector<8x512xf32>
    %121 = arith.mulf %120, %117 : vector<8x512xf32>
    %122 = arith.select %119, %117, %121 : vector<8x512xi1>, vector<8x512xf32>
    %123 = vector.extract_strided_slice %122 {offsets = [0, 495], sizes = [8, 17], strides = [1, 1]} : vector<8x512xf32> to vector<8x17xf32>
    %124 = vector.extract_strided_slice %122 {offsets = [0, 0], sizes = [8, 495], strides = [1, 1]} : vector<8x512xf32> to vector<8x495xf32>
    %125 = tpu.concatenate %123, %124 in 1 : vector<8x17xf32>, vector<8x495xf32> -> vector<8x512xf32>
    %c0_57 = arith.constant 0 : index
    %c0_58 = arith.constant 0 : index
    %126 = vector.load %arg8[%c0_57, %c0_58] : memref<9x512xf32, #tpu.memory_space<vmem>>, vector<1x512xf32>
    %127 = vector.broadcast %126 : vector<1x512xf32> to vector<8x512xf32>
    %128 = arith.mulf %125, %127 : vector<8x512xf32>
    %c0_59 = arith.constant 0 : index
    %c0_60 = arith.constant 0 : index
    %c0_61 = arith.constant 0 : index
    %129 = vector.load %arg5[%c0_59, %c0_60, %c0_61] : memref<9x16x8xbf16, #tpu.memory_space<vmem>>, vector<1x16x8xbf16>
    %130 = vector.shape_cast %129 : vector<1x16x8xbf16> to vector<16x8xbf16>
    %131 = arith.truncf %128 : vector<8x512xf32> to vector<8x512xbf16>
    %cst_62 = arith.constant dense<0.000000e+00> : vector<16x512xf32>
    %132 = tpu.matmul %130, %131, %cst_62 {dimension_numbers = #tpu.dot_dimension_numbers<[1], [0], [0], [1], [0, 0, 1, 1], [], []>} : vector<16x8xbf16>, vector<8x512xbf16>, vector<16x512xf32> -> vector<16x512xf32>
    %133 = vector.extract_strided_slice %122 {offsets = [0, 496], sizes = [8, 16], strides = [1, 1]} : vector<8x512xf32> to vector<8x16xf32>
    %134 = vector.extract_strided_slice %122 {offsets = [0, 0], sizes = [8, 496], strides = [1, 1]} : vector<8x512xf32> to vector<8x496xf32>
    %135 = tpu.concatenate %133, %134 in 1 : vector<8x16xf32>, vector<8x496xf32> -> vector<8x512xf32>
    %c1_63 = arith.constant 1 : index
    %c0_64 = arith.constant 0 : index
    %136 = vector.load %arg8[%c1_63, %c0_64] : memref<9x512xf32, #tpu.memory_space<vmem>>, vector<1x512xf32>
    %137 = vector.broadcast %136 : vector<1x512xf32> to vector<8x512xf32>
    %138 = arith.mulf %135, %137 : vector<8x512xf32>
    %c1_65 = arith.constant 1 : index
    %c0_66 = arith.constant 0 : index
    %c0_67 = arith.constant 0 : index
    %139 = vector.load %arg5[%c1_65, %c0_66, %c0_67] : memref<9x16x8xbf16, #tpu.memory_space<vmem>>, vector<1x16x8xbf16>
    %140 = vector.shape_cast %139 : vector<1x16x8xbf16> to vector<16x8xbf16>
    %141 = arith.truncf %138 : vector<8x512xf32> to vector<8x512xbf16>
    %cst_68 = arith.constant dense<0.000000e+00> : vector<16x512xf32>
    %142 = tpu.matmul %140, %141, %cst_68 {dimension_numbers = #tpu.dot_dimension_numbers<[1], [0], [0], [1], [0, 0, 1, 1], [], []>} : vector<16x8xbf16>, vector<8x512xbf16>, vector<16x512xf32> -> vector<16x512xf32>
    %143 = arith.addf %132, %142 : vector<16x512xf32>
    %144 = vector.extract_strided_slice %122 {offsets = [0, 497], sizes = [8, 15], strides = [1, 1]} : vector<8x512xf32> to vector<8x15xf32>
    %145 = vector.extract_strided_slice %122 {offsets = [0, 0], sizes = [8, 497], strides = [1, 1]} : vector<8x512xf32> to vector<8x497xf32>
    %146 = tpu.concatenate %144, %145 in 1 : vector<8x15xf32>, vector<8x497xf32> -> vector<8x512xf32>
    %c2_69 = arith.constant 2 : index
    %c0_70 = arith.constant 0 : index
    %147 = vector.load %arg8[%c2_69, %c0_70] : memref<9x512xf32, #tpu.memory_space<vmem>>, vector<1x512xf32>
    %148 = vector.broadcast %147 : vector<1x512xf32> to vector<8x512xf32>
    %149 = arith.mulf %146, %148 : vector<8x512xf32>
    %c2_71 = arith.constant 2 : index
    %c0_72 = arith.constant 0 : index
    %c0_73 = arith.constant 0 : index
    %150 = vector.load %arg5[%c2_71, %c0_72, %c0_73] : memref<9x16x8xbf16, #tpu.memory_space<vmem>>, vector<1x16x8xbf16>
    %151 = vector.shape_cast %150 : vector<1x16x8xbf16> to vector<16x8xbf16>
    %152 = arith.truncf %149 : vector<8x512xf32> to vector<8x512xbf16>
    %cst_74 = arith.constant dense<0.000000e+00> : vector<16x512xf32>
    %153 = tpu.matmul %151, %152, %cst_74 {dimension_numbers = #tpu.dot_dimension_numbers<[1], [0], [0], [1], [0, 0, 1, 1], [], []>} : vector<16x8xbf16>, vector<8x512xbf16>, vector<16x512xf32> -> vector<16x512xf32>
    %154 = arith.addf %143, %153 : vector<16x512xf32>
    %155 = vector.extract_strided_slice %122 {offsets = [0, 511], sizes = [8, 1], strides = [1, 1]} : vector<8x512xf32> to vector<8x1xf32>
    %156 = vector.extract_strided_slice %122 {offsets = [0, 0], sizes = [8, 511], strides = [1, 1]} : vector<8x512xf32> to vector<8x511xf32>
    %157 = tpu.concatenate %155, %156 in 1 : vector<8x1xf32>, vector<8x511xf32> -> vector<8x512xf32>
    %c3_75 = arith.constant 3 : index
    %c0_76 = arith.constant 0 : index
    %158 = vector.load %arg8[%c3_75, %c0_76] : memref<9x512xf32, #tpu.memory_space<vmem>>, vector<1x512xf32>
    %159 = vector.broadcast %158 : vector<1x512xf32> to vector<8x512xf32>
    %160 = arith.mulf %157, %159 : vector<8x512xf32>
    %c3_77 = arith.constant 3 : index
    %c0_78 = arith.constant 0 : index
    %c0_79 = arith.constant 0 : index
    %161 = vector.load %arg5[%c3_77, %c0_78, %c0_79] : memref<9x16x8xbf16, #tpu.memory_space<vmem>>, vector<1x16x8xbf16>
    %162 = vector.shape_cast %161 : vector<1x16x8xbf16> to vector<16x8xbf16>
    %163 = arith.truncf %160 : vector<8x512xf32> to vector<8x512xbf16>
    %cst_80 = arith.constant dense<0.000000e+00> : vector<16x512xf32>
    %164 = tpu.matmul %162, %163, %cst_80 {dimension_numbers = #tpu.dot_dimension_numbers<[1], [0], [0], [1], [0, 0, 1, 1], [], []>} : vector<16x8xbf16>, vector<8x512xbf16>, vector<16x512xf32> -> vector<16x512xf32>
    %165 = arith.addf %154, %164 : vector<16x512xf32>
    %c4_81 = arith.constant 4 : index
    %c0_82 = arith.constant 0 : index
    %166 = vector.load %arg8[%c4_81, %c0_82] : memref<9x512xf32, #tpu.memory_space<vmem>>, vector<1x512xf32>
    %167 = vector.broadcast %166 : vector<1x512xf32> to vector<8x512xf32>
    %168 = arith.mulf %122, %167 : vector<8x512xf32>
    %c4_83 = arith.constant 4 : index
    %c0_84 = arith.constant 0 : index
    %c0_85 = arith.constant 0 : index
    %169 = vector.load %arg5[%c4_83, %c0_84, %c0_85] : memref<9x16x8xbf16, #tpu.memory_space<vmem>>, vector<1x16x8xbf16>
    %170 = vector.shape_cast %169 : vector<1x16x8xbf16> to vector<16x8xbf16>
    %171 = arith.truncf %168 : vector<8x512xf32> to vector<8x512xbf16>
    %cst_86 = arith.constant dense<0.000000e+00> : vector<16x512xf32>
    %172 = tpu.matmul %170, %171, %cst_86 {dimension_numbers = #tpu.dot_dimension_numbers<[1], [0], [0], [1], [0, 0, 1, 1], [], []>} : vector<16x8xbf16>, vector<8x512xbf16>, vector<16x512xf32> -> vector<16x512xf32>
    %173 = arith.addf %165, %172 : vector<16x512xf32>
    %174 = vector.extract_strided_slice %122 {offsets = [0, 1], sizes = [8, 511], strides = [1, 1]} : vector<8x512xf32> to vector<8x511xf32>
    %175 = vector.extract_strided_slice %122 {offsets = [0, 0], sizes = [8, 1], strides = [1, 1]} : vector<8x512xf32> to vector<8x1xf32>
    %176 = tpu.concatenate %174, %175 in 1 : vector<8x511xf32>, vector<8x1xf32> -> vector<8x512xf32>
    %c5_87 = arith.constant 5 : index
    %c0_88 = arith.constant 0 : index
    %177 = vector.load %arg8[%c5_87, %c0_88] : memref<9x512xf32, #tpu.memory_space<vmem>>, vector<1x512xf32>
    %178 = vector.broadcast %177 : vector<1x512xf32> to vector<8x512xf32>
    %179 = arith.mulf %176, %178 : vector<8x512xf32>
    %c5_89 = arith.constant 5 : index
    %c0_90 = arith.constant 0 : index
    %c0_91 = arith.constant 0 : index
    %180 = vector.load %arg5[%c5_89, %c0_90, %c0_91] : memref<9x16x8xbf16, #tpu.memory_space<vmem>>, vector<1x16x8xbf16>
    %181 = vector.shape_cast %180 : vector<1x16x8xbf16> to vector<16x8xbf16>
    %182 = arith.truncf %179 : vector<8x512xf32> to vector<8x512xbf16>
    %cst_92 = arith.constant dense<0.000000e+00> : vector<16x512xf32>
    %183 = tpu.matmul %181, %182, %cst_92 {dimension_numbers = #tpu.dot_dimension_numbers<[1], [0], [0], [1], [0, 0, 1, 1], [], []>} : vector<16x8xbf16>, vector<8x512xbf16>, vector<16x512xf32> -> vector<16x512xf32>
    %184 = arith.addf %173, %183 : vector<16x512xf32>
    %185 = vector.extract_strided_slice %122 {offsets = [0, 15], sizes = [8, 497], strides = [1, 1]} : vector<8x512xf32> to vector<8x497xf32>
    %186 = vector.extract_strided_slice %122 {offsets = [0, 0], sizes = [8, 15], strides = [1, 1]} : vector<8x512xf32> to vector<8x15xf32>
    %187 = tpu.concatenate %185, %186 in 1 : vector<8x497xf32>, vector<8x15xf32> -> vector<8x512xf32>
    %c6_93 = arith.constant 6 : index
    %c0_94 = arith.constant 0 : index
    %188 = vector.load %arg8[%c6_93, %c0_94] : memref<9x512xf32, #tpu.memory_space<vmem>>, vector<1x512xf32>
    %189 = vector.broadcast %188 : vector<1x512xf32> to vector<8x512xf32>
    %190 = arith.mulf %187, %189 : vector<8x512xf32>
    %c6_95 = arith.constant 6 : index
    %c0_96 = arith.constant 0 : index
    %c0_97 = arith.constant 0 : index
    %191 = vector.load %arg5[%c6_95, %c0_96, %c0_97] : memref<9x16x8xbf16, #tpu.memory_space<vmem>>, vector<1x16x8xbf16>
    %192 = vector.shape_cast %191 : vector<1x16x8xbf16> to vector<16x8xbf16>
    %193 = arith.truncf %190 : vector<8x512xf32> to vector<8x512xbf16>
    %cst_98 = arith.constant dense<0.000000e+00> : vector<16x512xf32>
    %194 = tpu.matmul %192, %193, %cst_98 {dimension_numbers = #tpu.dot_dimension_numbers<[1], [0], [0], [1], [0, 0, 1, 1], [], []>} : vector<16x8xbf16>, vector<8x512xbf16>, vector<16x512xf32> -> vector<16x512xf32>
    %195 = arith.addf %184, %194 : vector<16x512xf32>
    %196 = vector.extract_strided_slice %122 {offsets = [0, 16], sizes = [8, 496], strides = [1, 1]} : vector<8x512xf32> to vector<8x496xf32>
    %197 = vector.extract_strided_slice %122 {offsets = [0, 0], sizes = [8, 16], strides = [1, 1]} : vector<8x512xf32> to vector<8x16xf32>
    %198 = tpu.concatenate %196, %197 in 1 : vector<8x496xf32>, vector<8x16xf32> -> vector<8x512xf32>
    %c7_99 = arith.constant 7 : index
    %c0_100 = arith.constant 0 : index
    %199 = vector.load %arg8[%c7_99, %c0_100] : memref<9x512xf32, #tpu.memory_space<vmem>>, vector<1x512xf32>
    %200 = vector.broadcast %199 : vector<1x512xf32> to vector<8x512xf32>
    %201 = arith.mulf %198, %200 : vector<8x512xf32>
    %c7_101 = arith.constant 7 : index
    %c0_102 = arith.constant 0 : index
    %c0_103 = arith.constant 0 : index
    %202 = vector.load %arg5[%c7_101, %c0_102, %c0_103] : memref<9x16x8xbf16, #tpu.memory_space<vmem>>, vector<1x16x8xbf16>
    %203 = vector.shape_cast %202 : vector<1x16x8xbf16> to vector<16x8xbf16>
    %204 = arith.truncf %201 : vector<8x512xf32> to vector<8x512xbf16>
    %cst_104 = arith.constant dense<0.000000e+00> : vector<16x512xf32>
    %205 = tpu.matmul %203, %204, %cst_104 {dimension_numbers = #tpu.dot_dimension_numbers<[1], [0], [0], [1], [0, 0, 1, 1], [], []>} : vector<16x8xbf16>, vector<8x512xbf16>, vector<16x512xf32> -> vector<16x512xf32>
    %206 = arith.addf %195, %205 : vector<16x512xf32>
    %207 = vector.extract_strided_slice %122 {offsets = [0, 17], sizes = [8, 495], strides = [1, 1]} : vector<8x512xf32> to vector<8x495xf32>
    %208 = vector.extract_strided_slice %122 {offsets = [0, 0], sizes = [8, 17], strides = [1, 1]} : vector<8x512xf32> to vector<8x17xf32>
    %209 = tpu.concatenate %207, %208 in 1 : vector<8x495xf32>, vector<8x17xf32> -> vector<8x512xf32>
    %c8_105 = arith.constant 8 : index
    %c0_106 = arith.constant 0 : index
    %210 = vector.load %arg8[%c8_105, %c0_106] : memref<9x512xf32, #tpu.memory_space<vmem>>, vector<1x512xf32>
    %211 = vector.broadcast %210 : vector<1x512xf32> to vector<8x512xf32>
    %212 = arith.mulf %209, %211 : vector<8x512xf32>
    %c8_107 = arith.constant 8 : index
    %c0_108 = arith.constant 0 : index
    %c0_109 = arith.constant 0 : index
    %213 = vector.load %arg5[%c8_107, %c0_108, %c0_109] : memref<9x16x8xbf16, #tpu.memory_space<vmem>>, vector<1x16x8xbf16>
    %214 = vector.shape_cast %213 : vector<1x16x8xbf16> to vector<16x8xbf16>
    %215 = arith.truncf %212 : vector<8x512xf32> to vector<8x512xbf16>
    %cst_110 = arith.constant dense<0.000000e+00> : vector<16x512xf32>
    %216 = tpu.matmul %214, %215, %cst_110 {dimension_numbers = #tpu.dot_dimension_numbers<[1], [0], [0], [1], [0, 0, 1, 1], [], []>} : vector<16x8xbf16>, vector<8x512xbf16>, vector<16x512xf32> -> vector<16x512xf32>
    %217 = arith.addf %206, %216 : vector<16x512xf32>
    %c0_111 = arith.constant 0 : index
    %c0_112 = arith.constant 0 : index
    %218 = vector.load %arg9[%c0_111, %c0_112] : memref<512x128xf32, #tpu.memory_space<vmem>>, vector<512x128xf32>
    %cst_113 = arith.constant dense<0.000000e+00> : vector<16x128xf32>
    %219 = tpu.matmul %217, %218, %cst_113 {dimension_numbers = #tpu.dot_dimension_numbers<[1], [0], [0], [1], [0, 0, 1, 1], [], []>} : vector<16x512xf32>, vector<512x128xf32>, vector<16x128xf32> -> vector<16x128xf32>
    %c0_114 = arith.constant 0 : index
    %c0_115 = arith.constant 0 : index
    %220 = vector.load %arg7[%c0_114, %c0_115] : memref<16x1xf32, #tpu.memory_space<vmem>>, vector<16x1xf32>
    %c0_116 = arith.constant 0 : index
    %c0_117 = arith.constant 0 : index
    %221 = vector.load %arg6[%c0_116, %c0_117] : memref<16x1xf32, #tpu.memory_space<vmem>>, vector<16x1xf32>
    %cst_118 = arith.constant dense<0.000000e+00> : vector<16xf32>
    %222 = vector.multi_reduction <add>, %219, %cst_118 [1] : vector<16x128xf32> to vector<16xf32>
    %223 = vector.shape_cast %222 : vector<16xf32> to vector<16x1xf32>
    %cst_119 = arith.constant 1.280000e+02 : f32
    %224 = vector.broadcast %cst_119 : f32 to vector<16x1xf32>
    %225 = arith.divf %223, %224 : vector<16x1xf32>
    %226 = vector.broadcast %225 : vector<16x1xf32> to vector<16x128xf32>
    %227 = arith.subf %219, %226 : vector<16x128xf32>
    %228 = arith.mulf %227, %227 : vector<16x128xf32>
    %cst_120 = arith.constant dense<0.000000e+00> : vector<16xf32>
    %229 = vector.multi_reduction <add>, %228, %cst_120 [1] : vector<16x128xf32> to vector<16xf32>
    %230 = vector.shape_cast %229 : vector<16xf32> to vector<16x1xf32>
    %cst_121 = arith.constant 1.280000e+02 : f32
    %231 = vector.broadcast %cst_121 : f32 to vector<16x1xf32>
    %232 = arith.divf %230, %231 : vector<16x1xf32>
    %cst_122 = arith.constant 9.99999974E-6 : f32
    %233 = vector.broadcast %cst_122 : f32 to vector<16x1xf32>
    %234 = arith.addf %232, %233 : vector<16x1xf32>
    %235 = math.rsqrt %234 : vector<16x1xf32>
    %236 = vector.broadcast %235 : vector<16x1xf32> to vector<16x128xf32>
    %237 = arith.mulf %227, %236 : vector<16x128xf32>
    %238 = vector.broadcast %221 : vector<16x1xf32> to vector<16x128xf32>
    %239 = arith.mulf %237, %238 : vector<16x128xf32>
    %240 = vector.broadcast %220 : vector<16x1xf32> to vector<16x128xf32>
    %241 = arith.addf %239, %240 : vector<16x128xf32>
    %cst_123 = arith.constant 0.000000e+00 : f32
    %242 = vector.broadcast %cst_123 : f32 to vector<16x128xf32>
    %243 = arith.cmpf ogt, %241, %242 : vector<16x128xf32>
    %cst_124 = arith.constant 1.000000e-01 : f32
    %244 = vector.broadcast %cst_124 : f32 to vector<16x128xf32>
    %245 = arith.mulf %244, %241 : vector<16x128xf32>
    %246 = arith.select %243, %241, %245 : vector<16x128xi1>, vector<16x128xf32>
    %247 = vector.extract_strided_slice %246 {offsets = [0, 119], sizes = [16, 9], strides = [1, 1]} : vector<16x128xf32> to vector<16x9xf32>
    %248 = vector.extract_strided_slice %246 {offsets = [0, 0], sizes = [16, 119], strides = [1, 1]} : vector<16x128xf32> to vector<16x119xf32>
    %249 = tpu.concatenate %247, %248 in 1 : vector<16x9xf32>, vector<16x119xf32> -> vector<16x128xf32>
    %c0_125 = arith.constant 0 : index
    %c0_126 = arith.constant 0 : index
    %250 = vector.load %arg13[%c0_125, %c0_126] : memref<9x128xf32, #tpu.memory_space<vmem>>, vector<1x128xf32>
    %251 = vector.broadcast %250 : vector<1x128xf32> to vector<16x128xf32>
    %252 = arith.mulf %249, %251 : vector<16x128xf32>
    %c0_127 = arith.constant 0 : index
    %c0_128 = arith.constant 0 : index
    %c0_129 = arith.constant 0 : index
    %253 = vector.load %arg10[%c0_127, %c0_128, %c0_129] : memref<9x16x16xbf16, #tpu.memory_space<vmem>>, vector<1x16x16xbf16>
    %254 = vector.shape_cast %253 : vector<1x16x16xbf16> to vector<16x16xbf16>
    %255 = arith.truncf %252 : vector<16x128xf32> to vector<16x128xbf16>
    %cst_130 = arith.constant dense<0.000000e+00> : vector<16x128xf32>
    %256 = tpu.matmul %254, %255, %cst_130 {dimension_numbers = #tpu.dot_dimension_numbers<[1], [0], [0], [1], [0, 0, 1, 1], [], []>} : vector<16x16xbf16>, vector<16x128xbf16>, vector<16x128xf32> -> vector<16x128xf32>
    %257 = vector.extract_strided_slice %246 {offsets = [0, 120], sizes = [16, 8], strides = [1, 1]} : vector<16x128xf32> to vector<16x8xf32>
    %258 = vector.extract_strided_slice %246 {offsets = [0, 0], sizes = [16, 120], strides = [1, 1]} : vector<16x128xf32> to vector<16x120xf32>
    %259 = tpu.concatenate %257, %258 in 1 : vector<16x8xf32>, vector<16x120xf32> -> vector<16x128xf32>
    %c1_131 = arith.constant 1 : index
    %c0_132 = arith.constant 0 : index
    %260 = vector.load %arg13[%c1_131, %c0_132] : memref<9x128xf32, #tpu.memory_space<vmem>>, vector<1x128xf32>
    %261 = vector.broadcast %260 : vector<1x128xf32> to vector<16x128xf32>
    %262 = arith.mulf %259, %261 : vector<16x128xf32>
    %c1_133 = arith.constant 1 : index
    %c0_134 = arith.constant 0 : index
    %c0_135 = arith.constant 0 : index
    %263 = vector.load %arg10[%c1_133, %c0_134, %c0_135] : memref<9x16x16xbf16, #tpu.memory_space<vmem>>, vector<1x16x16xbf16>
    %264 = vector.shape_cast %263 : vector<1x16x16xbf16> to vector<16x16xbf16>
    %265 = arith.truncf %262 : vector<16x128xf32> to vector<16x128xbf16>
    %cst_136 = arith.constant dense<0.000000e+00> : vector<16x128xf32>
    %266 = tpu.matmul %264, %265, %cst_136 {dimension_numbers = #tpu.dot_dimension_numbers<[1], [0], [0], [1], [0, 0, 1, 1], [], []>} : vector<16x16xbf16>, vector<16x128xbf16>, vector<16x128xf32> -> vector<16x128xf32>
    %267 = arith.addf %256, %266 : vector<16x128xf32>
    %268 = vector.extract_strided_slice %246 {offsets = [0, 121], sizes = [16, 7], strides = [1, 1]} : vector<16x128xf32> to vector<16x7xf32>
    %269 = vector.extract_strided_slice %246 {offsets = [0, 0], sizes = [16, 121], strides = [1, 1]} : vector<16x128xf32> to vector<16x121xf32>
    %270 = tpu.concatenate %268, %269 in 1 : vector<16x7xf32>, vector<16x121xf32> -> vector<16x128xf32>
    %c2_137 = arith.constant 2 : index
    %c0_138 = arith.constant 0 : index
    %271 = vector.load %arg13[%c2_137, %c0_138] : memref<9x128xf32, #tpu.memory_space<vmem>>, vector<1x128xf32>
    %272 = vector.broadcast %271 : vector<1x128xf32> to vector<16x128xf32>
    %273 = arith.mulf %270, %272 : vector<16x128xf32>
    %c2_139 = arith.constant 2 : index
    %c0_140 = arith.constant 0 : index
    %c0_141 = arith.constant 0 : index
    %274 = vector.load %arg10[%c2_139, %c0_140, %c0_141] : memref<9x16x16xbf16, #tpu.memory_space<vmem>>, vector<1x16x16xbf16>
    %275 = vector.shape_cast %274 : vector<1x16x16xbf16> to vector<16x16xbf16>
    %276 = arith.truncf %273 : vector<16x128xf32> to vector<16x128xbf16>
    %cst_142 = arith.constant dense<0.000000e+00> : vector<16x128xf32>
    %277 = tpu.matmul %275, %276, %cst_142 {dimension_numbers = #tpu.dot_dimension_numbers<[1], [0], [0], [1], [0, 0, 1, 1], [], []>} : vector<16x16xbf16>, vector<16x128xbf16>, vector<16x128xf32> -> vector<16x128xf32>
    %278 = arith.addf %267, %277 : vector<16x128xf32>
    %279 = vector.extract_strided_slice %246 {offsets = [0, 127], sizes = [16, 1], strides = [1, 1]} : vector<16x128xf32> to vector<16x1xf32>
    %280 = vector.extract_strided_slice %246 {offsets = [0, 0], sizes = [16, 127], strides = [1, 1]} : vector<16x128xf32> to vector<16x127xf32>
    %281 = tpu.concatenate %279, %280 in 1 : vector<16x1xf32>, vector<16x127xf32> -> vector<16x128xf32>
    %c3_143 = arith.constant 3 : index
    %c0_144 = arith.constant 0 : index
    %282 = vector.load %arg13[%c3_143, %c0_144] : memref<9x128xf32, #tpu.memory_space<vmem>>, vector<1x128xf32>
    %283 = vector.broadcast %282 : vector<1x128xf32> to vector<16x128xf32>
    %284 = arith.mulf %281, %283 : vector<16x128xf32>
    %c3_145 = arith.constant 3 : index
    %c0_146 = arith.constant 0 : index
    %c0_147 = arith.constant 0 : index
    %285 = vector.load %arg10[%c3_145, %c0_146, %c0_147] : memref<9x16x16xbf16, #tpu.memory_space<vmem>>, vector<1x16x16xbf16>
    %286 = vector.shape_cast %285 : vector<1x16x16xbf16> to vector<16x16xbf16>
    %287 = arith.truncf %284 : vector<16x128xf32> to vector<16x128xbf16>
    %cst_148 = arith.constant dense<0.000000e+00> : vector<16x128xf32>
    %288 = tpu.matmul %286, %287, %cst_148 {dimension_numbers = #tpu.dot_dimension_numbers<[1], [0], [0], [1], [0, 0, 1, 1], [], []>} : vector<16x16xbf16>, vector<16x128xbf16>, vector<16x128xf32> -> vector<16x128xf32>
    %289 = arith.addf %278, %288 : vector<16x128xf32>
    %c4_149 = arith.constant 4 : index
    %c0_150 = arith.constant 0 : index
    %290 = vector.load %arg13[%c4_149, %c0_150] : memref<9x128xf32, #tpu.memory_space<vmem>>, vector<1x128xf32>
    %291 = vector.broadcast %290 : vector<1x128xf32> to vector<16x128xf32>
    %292 = arith.mulf %246, %291 : vector<16x128xf32>
    %c4_151 = arith.constant 4 : index
    %c0_152 = arith.constant 0 : index
    %c0_153 = arith.constant 0 : index
    %293 = vector.load %arg10[%c4_151, %c0_152, %c0_153] : memref<9x16x16xbf16, #tpu.memory_space<vmem>>, vector<1x16x16xbf16>
    %294 = vector.shape_cast %293 : vector<1x16x16xbf16> to vector<16x16xbf16>
    %295 = arith.truncf %292 : vector<16x128xf32> to vector<16x128xbf16>
    %cst_154 = arith.constant dense<0.000000e+00> : vector<16x128xf32>
    %296 = tpu.matmul %294, %295, %cst_154 {dimension_numbers = #tpu.dot_dimension_numbers<[1], [0], [0], [1], [0, 0, 1, 1], [], []>} : vector<16x16xbf16>, vector<16x128xbf16>, vector<16x128xf32> -> vector<16x128xf32>
    %297 = arith.addf %289, %296 : vector<16x128xf32>
    %298 = vector.extract_strided_slice %246 {offsets = [0, 1], sizes = [16, 127], strides = [1, 1]} : vector<16x128xf32> to vector<16x127xf32>
    %299 = vector.extract_strided_slice %246 {offsets = [0, 0], sizes = [16, 1], strides = [1, 1]} : vector<16x128xf32> to vector<16x1xf32>
    %300 = tpu.concatenate %298, %299 in 1 : vector<16x127xf32>, vector<16x1xf32> -> vector<16x128xf32>
    %c5_155 = arith.constant 5 : index
    %c0_156 = arith.constant 0 : index
    %301 = vector.load %arg13[%c5_155, %c0_156] : memref<9x128xf32, #tpu.memory_space<vmem>>, vector<1x128xf32>
    %302 = vector.broadcast %301 : vector<1x128xf32> to vector<16x128xf32>
    %303 = arith.mulf %300, %302 : vector<16x128xf32>
    %c5_157 = arith.constant 5 : index
    %c0_158 = arith.constant 0 : index
    %c0_159 = arith.constant 0 : index
    %304 = vector.load %arg10[%c5_157, %c0_158, %c0_159] : memref<9x16x16xbf16, #tpu.memory_space<vmem>>, vector<1x16x16xbf16>
    %305 = vector.shape_cast %304 : vector<1x16x16xbf16> to vector<16x16xbf16>
    %306 = arith.truncf %303 : vector<16x128xf32> to vector<16x128xbf16>
    %cst_160 = arith.constant dense<0.000000e+00> : vector<16x128xf32>
    %307 = tpu.matmul %305, %306, %cst_160 {dimension_numbers = #tpu.dot_dimension_numbers<[1], [0], [0], [1], [0, 0, 1, 1], [], []>} : vector<16x16xbf16>, vector<16x128xbf16>, vector<16x128xf32> -> vector<16x128xf32>
    %308 = arith.addf %297, %307 : vector<16x128xf32>
    %309 = vector.extract_strided_slice %246 {offsets = [0, 7], sizes = [16, 121], strides = [1, 1]} : vector<16x128xf32> to vector<16x121xf32>
    %310 = vector.extract_strided_slice %246 {offsets = [0, 0], sizes = [16, 7], strides = [1, 1]} : vector<16x128xf32> to vector<16x7xf32>
    %311 = tpu.concatenate %309, %310 in 1 : vector<16x121xf32>, vector<16x7xf32> -> vector<16x128xf32>
    %c6_161 = arith.constant 6 : index
    %c0_162 = arith.constant 0 : index
    %312 = vector.load %arg13[%c6_161, %c0_162] : memref<9x128xf32, #tpu.memory_space<vmem>>, vector<1x128xf32>
    %313 = vector.broadcast %312 : vector<1x128xf32> to vector<16x128xf32>
    %314 = arith.mulf %311, %313 : vector<16x128xf32>
    %c6_163 = arith.constant 6 : index
    %c0_164 = arith.constant 0 : index
    %c0_165 = arith.constant 0 : index
    %315 = vector.load %arg10[%c6_163, %c0_164, %c0_165] : memref<9x16x16xbf16, #tpu.memory_space<vmem>>, vector<1x16x16xbf16>
    %316 = vector.shape_cast %315 : vector<1x16x16xbf16> to vector<16x16xbf16>
    %317 = arith.truncf %314 : vector<16x128xf32> to vector<16x128xbf16>
    %cst_166 = arith.constant dense<0.000000e+00> : vector<16x128xf32>
    %318 = tpu.matmul %316, %317, %cst_166 {dimension_numbers = #tpu.dot_dimension_numbers<[1], [0], [0], [1], [0, 0, 1, 1], [], []>} : vector<16x16xbf16>, vector<16x128xbf16>, vector<16x128xf32> -> vector<16x128xf32>
    %319 = arith.addf %308, %318 : vector<16x128xf32>
    %320 = vector.extract_strided_slice %246 {offsets = [0, 8], sizes = [16, 120], strides = [1, 1]} : vector<16x128xf32> to vector<16x120xf32>
    %321 = vector.extract_strided_slice %246 {offsets = [0, 0], sizes = [16, 8], strides = [1, 1]} : vector<16x128xf32> to vector<16x8xf32>
    %322 = tpu.concatenate %320, %321 in 1 : vector<16x120xf32>, vector<16x8xf32> -> vector<16x128xf32>
    %c7_167 = arith.constant 7 : index
    %c0_168 = arith.constant 0 : index
    %323 = vector.load %arg13[%c7_167, %c0_168] : memref<9x128xf32, #tpu.memory_space<vmem>>, vector<1x128xf32>
    %324 = vector.broadcast %323 : vector<1x128xf32> to vector<16x128xf32>
    %325 = arith.mulf %322, %324 : vector<16x128xf32>
    %c7_169 = arith.constant 7 : index
    %c0_170 = arith.constant 0 : index
    %c0_171 = arith.constant 0 : index
    %326 = vector.load %arg10[%c7_169, %c0_170, %c0_171] : memref<9x16x16xbf16, #tpu.memory_space<vmem>>, vector<1x16x16xbf16>
    %327 = vector.shape_cast %326 : vector<1x16x16xbf16> to vector<16x16xbf16>
    %328 = arith.truncf %325 : vector<16x128xf32> to vector<16x128xbf16>
    %cst_172 = arith.constant dense<0.000000e+00> : vector<16x128xf32>
    %329 = tpu.matmul %327, %328, %cst_172 {dimension_numbers = #tpu.dot_dimension_numbers<[1], [0], [0], [1], [0, 0, 1, 1], [], []>} : vector<16x16xbf16>, vector<16x128xbf16>, vector<16x128xf32> -> vector<16x128xf32>
    %330 = arith.addf %319, %329 : vector<16x128xf32>
    %331 = vector.extract_strided_slice %246 {offsets = [0, 9], sizes = [16, 119], strides = [1, 1]} : vector<16x128xf32> to vector<16x119xf32>
    %332 = vector.extract_strided_slice %246 {offsets = [0, 0], sizes = [16, 9], strides = [1, 1]} : vector<16x128xf32> to vector<16x9xf32>
    %333 = tpu.concatenate %331, %332 in 1 : vector<16x119xf32>, vector<16x9xf32> -> vector<16x128xf32>
    %c8_173 = arith.constant 8 : index
    %c0_174 = arith.constant 0 : index
    %334 = vector.load %arg13[%c8_173, %c0_174] : memref<9x128xf32, #tpu.memory_space<vmem>>, vector<1x128xf32>
    %335 = vector.broadcast %334 : vector<1x128xf32> to vector<16x128xf32>
    %336 = arith.mulf %333, %335 : vector<16x128xf32>
    %c8_175 = arith.constant 8 : index
    %c0_176 = arith.constant 0 : index
    %c0_177 = arith.constant 0 : index
    %337 = vector.load %arg10[%c8_175, %c0_176, %c0_177] : memref<9x16x16xbf16, #tpu.memory_space<vmem>>, vector<1x16x16xbf16>
    %338 = vector.shape_cast %337 : vector<1x16x16xbf16> to vector<16x16xbf16>
    %339 = arith.truncf %336 : vector<16x128xf32> to vector<16x128xbf16>
    %cst_178 = arith.constant dense<0.000000e+00> : vector<16x128xf32>
    %340 = tpu.matmul %338, %339, %cst_178 {dimension_numbers = #tpu.dot_dimension_numbers<[1], [0], [0], [1], [0, 0, 1, 1], [], []>} : vector<16x16xbf16>, vector<16x128xbf16>, vector<16x128xf32> -> vector<16x128xf32>
    %341 = arith.addf %330, %340 : vector<16x128xf32>
    %c0_179 = arith.constant 0 : index
    %c0_180 = arith.constant 0 : index
    %342 = vector.load %arg12[%c0_179, %c0_180] : memref<16x1xf32, #tpu.memory_space<vmem>>, vector<16x1xf32>
    %c0_181 = arith.constant 0 : index
    %c0_182 = arith.constant 0 : index
    %343 = vector.load %arg11[%c0_181, %c0_182] : memref<16x1xf32, #tpu.memory_space<vmem>>, vector<16x1xf32>
    %cst_183 = arith.constant dense<0.000000e+00> : vector<16xf32>
    %344 = vector.multi_reduction <add>, %341, %cst_183 [1] : vector<16x128xf32> to vector<16xf32>
    %345 = vector.shape_cast %344 : vector<16xf32> to vector<16x1xf32>
    %cst_184 = arith.constant 1.280000e+02 : f32
    %346 = vector.broadcast %cst_184 : f32 to vector<16x1xf32>
    %347 = arith.divf %345, %346 : vector<16x1xf32>
    %348 = vector.broadcast %347 : vector<16x1xf32> to vector<16x128xf32>
    %349 = arith.subf %341, %348 : vector<16x128xf32>
    %350 = arith.mulf %349, %349 : vector<16x128xf32>
    %cst_185 = arith.constant dense<0.000000e+00> : vector<16xf32>
    %351 = vector.multi_reduction <add>, %350, %cst_185 [1] : vector<16x128xf32> to vector<16xf32>
    %352 = vector.shape_cast %351 : vector<16xf32> to vector<16x1xf32>
    %cst_186 = arith.constant 1.280000e+02 : f32
    %353 = vector.broadcast %cst_186 : f32 to vector<16x1xf32>
    %354 = arith.divf %352, %353 : vector<16x1xf32>
    %cst_187 = arith.constant 9.99999974E-6 : f32
    %355 = vector.broadcast %cst_187 : f32 to vector<16x1xf32>
    %356 = arith.addf %354, %355 : vector<16x1xf32>
    %357 = math.rsqrt %356 : vector<16x1xf32>
    %358 = vector.broadcast %357 : vector<16x1xf32> to vector<16x128xf32>
    %359 = arith.mulf %349, %358 : vector<16x128xf32>
    %360 = vector.broadcast %343 : vector<16x1xf32> to vector<16x128xf32>
    %361 = arith.mulf %359, %360 : vector<16x128xf32>
    %362 = vector.broadcast %342 : vector<16x1xf32> to vector<16x128xf32>
    %363 = arith.addf %361, %362 : vector<16x128xf32>
    %cst_188 = arith.constant 0.000000e+00 : f32
    %364 = vector.broadcast %cst_188 : f32 to vector<16x128xf32>
    %365 = arith.cmpf ogt, %363, %364 : vector<16x128xf32>
    %cst_189 = arith.constant 1.000000e-01 : f32
    %366 = vector.broadcast %cst_189 : f32 to vector<16x128xf32>
    %367 = arith.mulf %366, %363 : vector<16x128xf32>
    %368 = arith.select %365, %363, %367 : vector<16x128xi1>, vector<16x128xf32>
    %369 = arith.addf %368, %246 : vector<16x128xf32>
    %c0_190 = arith.constant 0 : index
    %c0_191 = arith.constant 0 : index
    %c0_192 = arith.constant 0 : index
    %370 = vector.load %arg14[%c0_190, %c0_191, %c0_192] : memref<1x18x16xbf16, #tpu.memory_space<vmem>>, vector<1x18x16xbf16>
    %371 = vector.shape_cast %370 : vector<1x18x16xbf16> to vector<18x16xbf16>
    %372 = arith.truncf %369 : vector<16x128xf32> to vector<16x128xbf16>
    %cst_193 = arith.constant dense<0.000000e+00> : vector<18x128xf32>
    %373 = tpu.matmul %371, %372, %cst_193 {dimension_numbers = #tpu.dot_dimension_numbers<[1], [0], [0], [1], [0, 0, 1, 1], [], []>} : vector<18x16xbf16>, vector<16x128xbf16>, vector<18x128xf32> -> vector<18x128xf32>
    %c0_194 = arith.constant 0 : index
    %c0_195 = arith.constant 0 : index
    %374 = vector.load %arg15[%c0_194, %c0_195] : memref<18x1xf32, #tpu.memory_space<vmem>>, vector<18x1xf32>
    %375 = vector.broadcast %374 : vector<18x1xf32> to vector<18x128xf32>
    %376 = arith.addf %373, %375 : vector<18x128xf32>
    %c0_196 = arith.constant 0 : index
    %c0_197 = arith.constant 0 : index
    %377 = vector.load %arg16[%c0_196, %c0_197] : memref<18x128xf32, #tpu.memory_space<vmem>>, vector<18x128xf32>
    %c0_198 = arith.constant 0 : index
    %c0_199 = arith.constant 0 : index
    %378 = vector.load %arg17[%c0_198, %c0_199] : memref<18x1xf32, #tpu.memory_space<vmem>>, vector<18x1xf32>
    %c0_200 = arith.constant 0 : index
    %c0_201 = arith.constant 0 : index
    %379 = vector.load %arg18[%c0_200, %c0_201] : memref<18x1xf32, #tpu.memory_space<vmem>>, vector<18x1xf32>
    %c0_202 = arith.constant 0 : index
    %c0_203 = arith.constant 0 : index
    %380 = vector.load %arg19[%c0_202, %c0_203] : memref<18x1xf32, #tpu.memory_space<vmem>>, vector<18x1xf32>
    %cst_204 = arith.constant 5.000000e-01 : f32
    %381 = vector.broadcast %cst_204 : f32 to vector<18x1xf32>
    %382 = arith.cmpf ogt, %378, %381 : vector<18x1xf32>
    %cst_205 = arith.constant 0.000000e+00 : f32
    %383 = vector.shape_cast %382 : vector<18x1xi1> to vector<18x1xi1>
    %384 = vector.broadcast %383 : vector<18x1xi1> to vector<18x128xi1>
    %385 = vector.broadcast %cst_205 : f32 to vector<18x128xf32>
    %386 = arith.select %384, %376, %385 : vector<18x128xi1>, vector<18x128xf32>
    %387 = math.exp %386 : vector<18x128xf32>
    %388 = vector.broadcast %379 : vector<18x1xf32> to vector<18x128xf32>
    %389 = arith.mulf %387, %388 : vector<18x128xf32>
    %390 = arith.negf %376 : vector<18x128xf32>
    %391 = math.exp %390 : vector<18x128xf32>
    %cst_206 = arith.constant 1.000000e+00 : f32
    %392 = vector.broadcast %cst_206 : f32 to vector<18x128xf32>
    %393 = arith.addf %392, %391 : vector<18x128xf32>
    %394 = arith.divf %392, %393 : vector<18x128xf32>
    %395 = arith.addf %394, %377 : vector<18x128xf32>
    %396 = vector.broadcast %380 : vector<18x1xf32> to vector<18x128xf32>
    %397 = arith.mulf %395, %396 : vector<18x128xf32>
    %398 = vector.shape_cast %382 : vector<18x1xi1> to vector<18x1xi1>
    %399 = vector.broadcast %398 : vector<18x1xi1> to vector<18x128xi1>
    %400 = arith.select %399, %389, %397 : vector<18x128xi1>, vector<18x128xf32>
    %c0_207 = arith.constant 0 : index
    %c0_208 = arith.constant 0 : index
    %401 = vector.load %arg31[%c0_207, %c0_208] : memref<18x128xf32, #tpu.memory_space<vmem>>, vector<18x128xf32>
    tpu.vector_store %arg31[%c0_207, %c0_208], %400 {strides = array<i32>} : memref<18x128xf32, #tpu.memory_space<vmem>>, vector<18x128xf32>,
    %c0_209 = arith.constant 0 : index
    %c0_210 = arith.constant 0 : index
    %c0_211 = arith.constant 0 : index
    %402 = vector.load %arg20[%c0_209, %c0_210, %c0_211] : memref<1x8x16xbf16, #tpu.memory_space<vmem>>, vector<1x8x16xbf16>
    %403 = vector.shape_cast %402 : vector<1x8x16xbf16> to vector<8x16xbf16>
    %404 = arith.truncf %369 : vector<16x128xf32> to vector<16x128xbf16>
    %cst_212 = arith.constant dense<0.000000e+00> : vector<8x128xf32>
    %405 = tpu.matmul %403, %404, %cst_212 {dimension_numbers = #tpu.dot_dimension_numbers<[1], [0], [0], [1], [0, 0, 1, 1], [], []>} : vector<8x16xbf16>, vector<16x128xbf16>, vector<8x128xf32> -> vector<8x128xf32>
    %c0_213 = arith.constant 0 : index
    %c0_214 = arith.constant 0 : index
    %406 = vector.load %arg22[%c0_213, %c0_214] : memref<8x1xf32, #tpu.memory_space<vmem>>, vector<8x1xf32>
    %c0_215 = arith.constant 0 : index
    %c0_216 = arith.constant 0 : index
    %407 = vector.load %arg21[%c0_215, %c0_216] : memref<8x1xf32, #tpu.memory_space<vmem>>, vector<8x1xf32>
    %cst_217 = arith.constant dense<0.000000e+00> : vector<8xf32>
    %408 = vector.multi_reduction <add>, %405, %cst_217 [1] : vector<8x128xf32> to vector<8xf32>
    %409 = vector.shape_cast %408 : vector<8xf32> to vector<8x1xf32>
    %cst_218 = arith.constant 1.280000e+02 : f32
    %410 = vector.broadcast %cst_218 : f32 to vector<8x1xf32>
    %411 = arith.divf %409, %410 : vector<8x1xf32>
    %412 = vector.broadcast %411 : vector<8x1xf32> to vector<8x128xf32>
    %413 = arith.subf %405, %412 : vector<8x128xf32>
    %414 = arith.mulf %413, %413 : vector<8x128xf32>
    %cst_219 = arith.constant dense<0.000000e+00> : vector<8xf32>
    %415 = vector.multi_reduction <add>, %414, %cst_219 [1] : vector<8x128xf32> to vector<8xf32>
    %416 = vector.shape_cast %415 : vector<8xf32> to vector<8x1xf32>
    %cst_220 = arith.constant 1.280000e+02 : f32
    %417 = vector.broadcast %cst_220 : f32 to vector<8x1xf32>
    %418 = arith.divf %416, %417 : vector<8x1xf32>
    %cst_221 = arith.constant 9.99999974E-6 : f32
    %419 = vector.broadcast %cst_221 : f32 to vector<8x1xf32>
    %420 = arith.addf %418, %419 : vector<8x1xf32>
    %421 = math.rsqrt %420 : vector<8x1xf32>
    %422 = vector.broadcast %421 : vector<8x1xf32> to vector<8x128xf32>
    %423 = arith.mulf %413, %422 : vector<8x128xf32>
    %424 = vector.broadcast %407 : vector<8x1xf32> to vector<8x128xf32>
    %425 = arith.mulf %423, %424 : vector<8x128xf32>
    %426 = vector.broadcast %406 : vector<8x1xf32> to vector<8x128xf32>
    %427 = arith.addf %425, %426 : vector<8x128xf32>
    %cst_222 = arith.constant 0.000000e+00 : f32
    %428 = vector.broadcast %cst_222 : f32 to vector<8x128xf32>
    %429 = arith.cmpf ogt, %427, %428 : vector<8x128xf32>
    %cst_223 = arith.constant 1.000000e-01 : f32
    %430 = vector.broadcast %cst_223 : f32 to vector<8x128xf32>
    %431 = arith.mulf %430, %427 : vector<8x128xf32>
    %432 = arith.select %429, %427, %431 : vector<8x128xi1>, vector<8x128xf32>
    %c0_224 = arith.constant 0 : index
    %c0_225 = arith.constant 0 : index
    %433 = vector.load %arg23[%c0_224, %c0_225] : memref<128x512xf32, #tpu.memory_space<vmem>>, vector<128x512xf32>
    %cst_226 = arith.constant dense<0.000000e+00> : vector<8x512xf32>
    %434 = tpu.matmul %432, %433, %cst_226 {dimension_numbers = #tpu.dot_dimension_numbers<[1], [0], [0], [1], [0, 0, 1, 1], [], []>} : vector<8x128xf32>, vector<128x512xf32>, vector<8x512xf32> -> vector<8x512xf32>
    %435 = tpu.concatenate %434, %122 in 0 : vector<8x512xf32>, vector<8x512xf32> -> vector<16x512xf32>
    %436 = vector.extract_strided_slice %435 {offsets = [0, 495], sizes = [16, 17], strides = [1, 1]} : vector<16x512xf32> to vector<16x17xf32>
    %437 = vector.extract_strided_slice %435 {offsets = [0, 0], sizes = [16, 495], strides = [1, 1]} : vector<16x512xf32> to vector<16x495xf32>
    %438 = tpu.concatenate %436, %437 in 1 : vector<16x17xf32>, vector<16x495xf32> -> vector<16x512xf32>
    %c0_227 = arith.constant 0 : index
    %c0_228 = arith.constant 0 : index
    %439 = vector.load %arg26[%c0_227, %c0_228] : memref<9x512xf32, #tpu.memory_space<vmem>>, vector<1x512xf32>
    %440 = vector.broadcast %439 : vector<1x512xf32> to vector<16x512xf32>
    %441 = arith.mulf %438, %440 : vector<16x512xf32>
    %c0_229 = arith.constant 0 : index
    %c0_230 = arith.constant 0 : index
    %c0_231 = arith.constant 0 : index
    %442 = vector.load %arg24[%c0_229, %c0_230, %c0_231] : memref<9x18x16xbf16, #tpu.memory_space<vmem>>, vector<1x18x16xbf16>
    %443 = vector.shape_cast %442 : vector<1x18x16xbf16> to vector<18x16xbf16>
    %444 = arith.truncf %441 : vector<16x512xf32> to vector<16x512xbf16>
    %cst_232 = arith.constant dense<0.000000e+00> : vector<18x512xf32>
    %445 = tpu.matmul %443, %444, %cst_232 {dimension_numbers = #tpu.dot_dimension_numbers<[1], [0], [0], [1], [0, 0, 1, 1], [], []>} : vector<18x16xbf16>, vector<16x512xbf16>, vector<18x512xf32> -> vector<18x512xf32>
    %446 = vector.extract_strided_slice %435 {offsets = [0, 496], sizes = [16, 16], strides = [1, 1]} : vector<16x512xf32> to vector<16x16xf32>
    %447 = vector.extract_strided_slice %435 {offsets = [0, 0], sizes = [16, 496], strides = [1, 1]} : vector<16x512xf32> to vector<16x496xf32>
    %448 = tpu.concatenate %446, %447 in 1 : vector<16x16xf32>, vector<16x496xf32> -> vector<16x512xf32>
    %c1_233 = arith.constant 1 : index
    %c0_234 = arith.constant 0 : index
    %449 = vector.load %arg26[%c1_233, %c0_234] : memref<9x512xf32, #tpu.memory_space<vmem>>, vector<1x512xf32>
    %450 = vector.broadcast %449 : vector<1x512xf32> to vector<16x512xf32>
    %451 = arith.mulf %448, %450 : vector<16x512xf32>
    %c1_235 = arith.constant 1 : index
    %c0_236 = arith.constant 0 : index
    %c0_237 = arith.constant 0 : index
    %452 = vector.load %arg24[%c1_235, %c0_236, %c0_237] : memref<9x18x16xbf16, #tpu.memory_space<vmem>>, vector<1x18x16xbf16>
    %453 = vector.shape_cast %452 : vector<1x18x16xbf16> to vector<18x16xbf16>
    %454 = arith.truncf %451 : vector<16x512xf32> to vector<16x512xbf16>
    %cst_238 = arith.constant dense<0.000000e+00> : vector<18x512xf32>
    %455 = tpu.matmul %453, %454, %cst_238 {dimension_numbers = #tpu.dot_dimension_numbers<[1], [0], [0], [1], [0, 0, 1, 1], [], []>} : vector<18x16xbf16>, vector<16x512xbf16>, vector<18x512xf32> -> vector<18x512xf32>
    %456 = arith.addf %445, %455 : vector<18x512xf32>
    %457 = vector.extract_strided_slice %435 {offsets = [0, 497], sizes = [16, 15], strides = [1, 1]} : vector<16x512xf32> to vector<16x15xf32>
    %458 = vector.extract_strided_slice %435 {offsets = [0, 0], sizes = [16, 497], strides = [1, 1]} : vector<16x512xf32> to vector<16x497xf32>
    %459 = tpu.concatenate %457, %458 in 1 : vector<16x15xf32>, vector<16x497xf32> -> vector<16x512xf32>
    %c2_239 = arith.constant 2 : index
    %c0_240 = arith.constant 0 : index
    %460 = vector.load %arg26[%c2_239, %c0_240] : memref<9x512xf32, #tpu.memory_space<vmem>>, vector<1x512xf32>
    %461 = vector.broadcast %460 : vector<1x512xf32> to vector<16x512xf32>
    %462 = arith.mulf %459, %461 : vector<16x512xf32>
    %c2_241 = arith.constant 2 : index
    %c0_242 = arith.constant 0 : index
    %c0_243 = arith.constant 0 : index
    %463 = vector.load %arg24[%c2_241, %c0_242, %c0_243] : memref<9x18x16xbf16, #tpu.memory_space<vmem>>, vector<1x18x16xbf16>
    %464 = vector.shape_cast %463 : vector<1x18x16xbf16> to vector<18x16xbf16>
    %465 = arith.truncf %462 : vector<16x512xf32> to vector<16x512xbf16>
    %cst_244 = arith.constant dense<0.000000e+00> : vector<18x512xf32>
    %466 = tpu.matmul %464, %465, %cst_244 {dimension_numbers = #tpu.dot_dimension_numbers<[1], [0], [0], [1], [0, 0, 1, 1], [], []>} : vector<18x16xbf16>, vector<16x512xbf16>, vector<18x512xf32> -> vector<18x512xf32>
    %467 = arith.addf %456, %466 : vector<18x512xf32>
    %468 = vector.extract_strided_slice %435 {offsets = [0, 511], sizes = [16, 1], strides = [1, 1]} : vector<16x512xf32> to vector<16x1xf32>
    %469 = vector.extract_strided_slice %435 {offsets = [0, 0], sizes = [16, 511], strides = [1, 1]} : vector<16x512xf32> to vector<16x511xf32>
    %470 = tpu.concatenate %468, %469 in 1 : vector<16x1xf32>, vector<16x511xf32> -> vector<16x512xf32>
    %c3_245 = arith.constant 3 : index
    %c0_246 = arith.constant 0 : index
    %471 = vector.load %arg26[%c3_245, %c0_246] : memref<9x512xf32, #tpu.memory_space<vmem>>, vector<1x512xf32>
    %472 = vector.broadcast %471 : vector<1x512xf32> to vector<16x512xf32>
    %473 = arith.mulf %470, %472 : vector<16x512xf32>
    %c3_247 = arith.constant 3 : index
    %c0_248 = arith.constant 0 : index
    %c0_249 = arith.constant 0 : index
    %474 = vector.load %arg24[%c3_247, %c0_248, %c0_249] : memref<9x18x16xbf16, #tpu.memory_space<vmem>>, vector<1x18x16xbf16>
    %475 = vector.shape_cast %474 : vector<1x18x16xbf16> to vector<18x16xbf16>
    %476 = arith.truncf %473 : vector<16x512xf32> to vector<16x512xbf16>
    %cst_250 = arith.constant dense<0.000000e+00> : vector<18x512xf32>
    %477 = tpu.matmul %475, %476, %cst_250 {dimension_numbers = #tpu.dot_dimension_numbers<[1], [0], [0], [1], [0, 0, 1, 1], [], []>} : vector<18x16xbf16>, vector<16x512xbf16>, vector<18x512xf32> -> vector<18x512xf32>
    %478 = arith.addf %467, %477 : vector<18x512xf32>
    %c4_251 = arith.constant 4 : index
    %c0_252 = arith.constant 0 : index
    %479 = vector.load %arg26[%c4_251, %c0_252] : memref<9x512xf32, #tpu.memory_space<vmem>>, vector<1x512xf32>
    %480 = vector.broadcast %479 : vector<1x512xf32> to vector<16x512xf32>
    %481 = arith.mulf %435, %480 : vector<16x512xf32>
    %c4_253 = arith.constant 4 : index
    %c0_254 = arith.constant 0 : index
    %c0_255 = arith.constant 0 : index
    %482 = vector.load %arg24[%c4_253, %c0_254, %c0_255] : memref<9x18x16xbf16, #tpu.memory_space<vmem>>, vector<1x18x16xbf16>
    %483 = vector.shape_cast %482 : vector<1x18x16xbf16> to vector<18x16xbf16>
    %484 = arith.truncf %481 : vector<16x512xf32> to vector<16x512xbf16>
    %cst_256 = arith.constant dense<0.000000e+00> : vector<18x512xf32>
    %485 = tpu.matmul %483, %484, %cst_256 {dimension_numbers = #tpu.dot_dimension_numbers<[1], [0], [0], [1], [0, 0, 1, 1], [], []>} : vector<18x16xbf16>, vector<16x512xbf16>, vector<18x512xf32> -> vector<18x512xf32>
    %486 = arith.addf %478, %485 : vector<18x512xf32>
    %487 = vector.extract_strided_slice %435 {offsets = [0, 1], sizes = [16, 511], strides = [1, 1]} : vector<16x512xf32> to vector<16x511xf32>
    %488 = vector.extract_strided_slice %435 {offsets = [0, 0], sizes = [16, 1], strides = [1, 1]} : vector<16x512xf32> to vector<16x1xf32>
    %489 = tpu.concatenate %487, %488 in 1 : vector<16x511xf32>, vector<16x1xf32> -> vector<16x512xf32>
    %c5_257 = arith.constant 5 : index
    %c0_258 = arith.constant 0 : index
    %490 = vector.load %arg26[%c5_257, %c0_258] : memref<9x512xf32, #tpu.memory_space<vmem>>, vector<1x512xf32>
    %491 = vector.broadcast %490 : vector<1x512xf32> to vector<16x512xf32>
    %492 = arith.mulf %489, %491 : vector<16x512xf32>
    %c5_259 = arith.constant 5 : index
    %c0_260 = arith.constant 0 : index
    %c0_261 = arith.constant 0 : index
    %493 = vector.load %arg24[%c5_259, %c0_260, %c0_261] : memref<9x18x16xbf16, #tpu.memory_space<vmem>>, vector<1x18x16xbf16>
    %494 = vector.shape_cast %493 : vector<1x18x16xbf16> to vector<18x16xbf16>
    %495 = arith.truncf %492 : vector<16x512xf32> to vector<16x512xbf16>
    %cst_262 = arith.constant dense<0.000000e+00> : vector<18x512xf32>
    %496 = tpu.matmul %494, %495, %cst_262 {dimension_numbers = #tpu.dot_dimension_numbers<[1], [0], [0], [1], [0, 0, 1, 1], [], []>} : vector<18x16xbf16>, vector<16x512xbf16>, vector<18x512xf32> -> vector<18x512xf32>
    %497 = arith.addf %486, %496 : vector<18x512xf32>
    %498 = vector.extract_strided_slice %435 {offsets = [0, 15], sizes = [16, 497], strides = [1, 1]} : vector<16x512xf32> to vector<16x497xf32>
    %499 = vector.extract_strided_slice %435 {offsets = [0, 0], sizes = [16, 15], strides = [1, 1]} : vector<16x512xf32> to vector<16x15xf32>
    %500 = tpu.concatenate %498, %499 in 1 : vector<16x497xf32>, vector<16x15xf32> -> vector<16x512xf32>
    %c6_263 = arith.constant 6 : index
    %c0_264 = arith.constant 0 : index
    %501 = vector.load %arg26[%c6_263, %c0_264] : memref<9x512xf32, #tpu.memory_space<vmem>>, vector<1x512xf32>
    %502 = vector.broadcast %501 : vector<1x512xf32> to vector<16x512xf32>
    %503 = arith.mulf %500, %502 : vector<16x512xf32>
    %c6_265 = arith.constant 6 : index
    %c0_266 = arith.constant 0 : index
    %c0_267 = arith.constant 0 : index
    %504 = vector.load %arg24[%c6_265, %c0_266, %c0_267] : memref<9x18x16xbf16, #tpu.memory_space<vmem>>, vector<1x18x16xbf16>
    %505 = vector.shape_cast %504 : vector<1x18x16xbf16> to vector<18x16xbf16>
    %506 = arith.truncf %503 : vector<16x512xf32> to vector<16x512xbf16>
    %cst_268 = arith.constant dense<0.000000e+00> : vector<18x512xf32>
    %507 = tpu.matmul %505, %506, %cst_268 {dimension_numbers = #tpu.dot_dimension_numbers<[1], [0], [0], [1], [0, 0, 1, 1], [], []>} : vector<18x16xbf16>, vector<16x512xbf16>, vector<18x512xf32> -> vector<18x512xf32>
    %508 = arith.addf %497, %507 : vector<18x512xf32>
    %509 = vector.extract_strided_slice %435 {offsets = [0, 16], sizes = [16, 496], strides = [1, 1]} : vector<16x512xf32> to vector<16x496xf32>
    %510 = vector.extract_strided_slice %435 {offsets = [0, 0], sizes = [16, 16], strides = [1, 1]} : vector<16x512xf32> to vector<16x16xf32>
    %511 = tpu.concatenate %509, %510 in 1 : vector<16x496xf32>, vector<16x16xf32> -> vector<16x512xf32>
    %c7_269 = arith.constant 7 : index
    %c0_270 = arith.constant 0 : index
    %512 = vector.load %arg26[%c7_269, %c0_270] : memref<9x512xf32, #tpu.memory_space<vmem>>, vector<1x512xf32>
    %513 = vector.broadcast %512 : vector<1x512xf32> to vector<16x512xf32>
    %514 = arith.mulf %511, %513 : vector<16x512xf32>
    %c7_271 = arith.constant 7 : index
    %c0_272 = arith.constant 0 : index
    %c0_273 = arith.constant 0 : index
    %515 = vector.load %arg24[%c7_271, %c0_272, %c0_273] : memref<9x18x16xbf16, #tpu.memory_space<vmem>>, vector<1x18x16xbf16>
    %516 = vector.shape_cast %515 : vector<1x18x16xbf16> to vector<18x16xbf16>
    %517 = arith.truncf %514 : vector<16x512xf32> to vector<16x512xbf16>
    %cst_274 = arith.constant dense<0.000000e+00> : vector<18x512xf32>
    %518 = tpu.matmul %516, %517, %cst_274 {dimension_numbers = #tpu.dot_dimension_numbers<[1], [0], [0], [1], [0, 0, 1, 1], [], []>} : vector<18x16xbf16>, vector<16x512xbf16>, vector<18x512xf32> -> vector<18x512xf32>
    %519 = arith.addf %508, %518 : vector<18x512xf32>
    %520 = vector.extract_strided_slice %435 {offsets = [0, 17], sizes = [16, 495], strides = [1, 1]} : vector<16x512xf32> to vector<16x495xf32>
    %521 = vector.extract_strided_slice %435 {offsets = [0, 0], sizes = [16, 17], strides = [1, 1]} : vector<16x512xf32> to vector<16x17xf32>
    %522 = tpu.concatenate %520, %521 in 1 : vector<16x495xf32>, vector<16x17xf32> -> vector<16x512xf32>
    %c8_275 = arith.constant 8 : index
    %c0_276 = arith.constant 0 : index
    %523 = vector.load %arg26[%c8_275, %c0_276] : memref<9x512xf32, #tpu.memory_space<vmem>>, vector<1x512xf32>
    %524 = vector.broadcast %523 : vector<1x512xf32> to vector<16x512xf32>
    %525 = arith.mulf %522, %524 : vector<16x512xf32>
    %c8_277 = arith.constant 8 : index
    %c0_278 = arith.constant 0 : index
    %c0_279 = arith.constant 0 : index
    %526 = vector.load %arg24[%c8_277, %c0_278, %c0_279] : memref<9x18x16xbf16, #tpu.memory_space<vmem>>, vector<1x18x16xbf16>
    %527 = vector.shape_cast %526 : vector<1x18x16xbf16> to vector<18x16xbf16>
    %528 = arith.truncf %525 : vector<16x512xf32> to vector<16x512xbf16>
    %cst_280 = arith.constant dense<0.000000e+00> : vector<18x512xf32>
    %529 = tpu.matmul %527, %528, %cst_280 {dimension_numbers = #tpu.dot_dimension_numbers<[1], [0], [0], [1], [0, 0, 1, 1], [], []>} : vector<18x16xbf16>, vector<16x512xbf16>, vector<18x512xf32> -> vector<18x512xf32>
    %530 = arith.addf %519, %529 : vector<18x512xf32>
    %c0_281 = arith.constant 0 : index
    %c0_282 = arith.constant 0 : index
    %531 = vector.load %arg25[%c0_281, %c0_282] : memref<18x1xf32, #tpu.memory_space<vmem>>, vector<18x1xf32>
    %532 = vector.broadcast %531 : vector<18x1xf32> to vector<18x512xf32>
    %533 = arith.addf %530, %532 : vector<18x512xf32>
    %c0_283 = arith.constant 0 : index
    %c0_284 = arith.constant 0 : index
    %534 = vector.load %arg27[%c0_283, %c0_284] : memref<18x512xf32, #tpu.memory_space<vmem>>, vector<18x512xf32>
    %c0_285 = arith.constant 0 : index
    %c0_286 = arith.constant 0 : index
    %535 = vector.load %arg28[%c0_285, %c0_286] : memref<18x1xf32, #tpu.memory_space<vmem>>, vector<18x1xf32>
    %c0_287 = arith.constant 0 : index
    %c0_288 = arith.constant 0 : index
    %536 = vector.load %arg29[%c0_287, %c0_288] : memref<18x1xf32, #tpu.memory_space<vmem>>, vector<18x1xf32>
    %c0_289 = arith.constant 0 : index
    %c0_290 = arith.constant 0 : index
    %537 = vector.load %arg30[%c0_289, %c0_290] : memref<18x1xf32, #tpu.memory_space<vmem>>, vector<18x1xf32>
    %cst_291 = arith.constant 5.000000e-01 : f32
    %538 = vector.broadcast %cst_291 : f32 to vector<18x1xf32>
    %539 = arith.cmpf ogt, %535, %538 : vector<18x1xf32>
    %cst_292 = arith.constant 0.000000e+00 : f32
    %540 = vector.shape_cast %539 : vector<18x1xi1> to vector<18x1xi1>
    %541 = vector.broadcast %540 : vector<18x1xi1> to vector<18x512xi1>
    %542 = vector.broadcast %cst_292 : f32 to vector<18x512xf32>
    %543 = arith.select %541, %533, %542 : vector<18x512xi1>, vector<18x512xf32>
    %544 = math.exp %543 : vector<18x512xf32>
    %545 = vector.broadcast %536 : vector<18x1xf32> to vector<18x512xf32>
    %546 = arith.mulf %544, %545 : vector<18x512xf32>
    %547 = arith.negf %533 : vector<18x512xf32>
    %548 = math.exp %547 : vector<18x512xf32>
    %cst_293 = arith.constant 1.000000e+00 : f32
    %549 = vector.broadcast %cst_293 : f32 to vector<18x512xf32>
    %550 = arith.addf %549, %548 : vector<18x512xf32>
    %551 = arith.divf %549, %550 : vector<18x512xf32>
    %552 = arith.addf %551, %534 : vector<18x512xf32>
    %553 = vector.broadcast %537 : vector<18x1xf32> to vector<18x512xf32>
    %554 = arith.mulf %552, %553 : vector<18x512xf32>
    %555 = vector.shape_cast %539 : vector<18x1xi1> to vector<18x1xi1>
    %556 = vector.broadcast %555 : vector<18x1xi1> to vector<18x512xi1>
    %557 = arith.select %556, %546, %554 : vector<18x512xi1>, vector<18x512xf32>
    %c0_294 = arith.constant 0 : index
    %c0_295 = arith.constant 0 : index
    %558 = vector.load %arg32[%c0_294, %c0_295] : memref<18x512xf32, #tpu.memory_space<vmem>>, vector<18x512xf32>
    tpu.vector_store %arg32[%c0_294, %c0_295], %557 {strides = array<i32>} : memref<18x512xf32, #tpu.memory_space<vmem>>, vector<18x512xf32>,
    return
  }
}

</mosaic_0001>

<bundles_post_ra>
// kernel: forward.1
= control target key start
LH: loop header
LB: loop body
LE: loop exit
PB: predicated region body
PF: predicated region fallthrough
CT: control target
= control target key end

     0   :  { %s7888_s6 = smov 1   ;;  %s7889_s10 = smov 2   ;;  %s9511_s0 = inlined_call_operand.smem [shape: u32[33], index: -1, kind: input, shape index: {}] }
   0x1   :  { %s7980_s5 = sld [smem:[%s9511_s0]]   ;;  %s7890_s14 = smov 3  }
   0x2   :  { %s7985_s9 = sld [smem:[%s9511_s0 + %s7888_s6]]   ;;  %s7891_s18 = smov 4  }
   0x3   :  { %s7990_s13 = sld [smem:[%s9511_s0 + %s7889_s10]]   ;;  %s7892_s22 = smov 5  }
   0x4   :  { %s7995_s17 = sld [smem:[%s9511_s0 + %s7890_s14]]   ;;  %s7893_s26 = smov 6  }
   0x5   :  { %s8000_s21 = sld [smem:[%s9511_s0 + %s7891_s18]]   ;;  %s7894_s30 = smov 7  }
   0x6   :  { %s8005_s25 = sld [smem:[%s9511_s0 + %s7892_s22]]   ;;  %s7895_s4 = smov 8  }
   0x7   :  { %9560 = sst [smem:[#allocation61_spill]] %s7980_s5  ;;  %s7896_s10 = smov 9  }
   0x8   :  { %9561 = sst [smem:[#allocation62_spill]] %s7985_s9  ;;  %s7897_s15 = smov 10  }
   0x9   :  { %s8010_s29 = sld [smem:[%s9511_s0 + %s7893_s26]]   ;;  %s7898_s20 = smov 11  }
   0xa   :  { %9562 = sst [smem:[#allocation63_spill]] %s7995_s17  ;;  %s7899_s26 = smov 12  }
   0xb   :  { %s8015_s3 = sld [smem:[%s9511_s0 + %s7894_s30]]   ;;  %s7900_s1 = smov 13  }
   0xc   :  { %9563 = sst [smem:[#allocation64_spill]] %s8005_s25  ;;  %s7901_s7 = smov 14  }
   0xd   :  { %s8020_s8 = sld [smem:[%s9511_s0 + %s7895_s4]]   ;;  %s7903_s22 = smov 16  }
   0xe   :  { %s8025_s14 = sld [smem:[%s9511_s0 + %s7896_s10]]   ;;  %s7904_s28 = smov 17  }
   0xf   :  { %s8030_s19 = sld [smem:[%s9511_s0 + %s7897_s15]]   ;;  %s7902_s15 = smov 15  }
  0x10   :  { %s8035_s24 = sld [smem:[%s9511_s0 + %s7898_s20]]  }
  0x11   :  { %9564 = sst [smem:[#allocation65_spill]] %s8015_s3 }
  0x12   :  { %s8040_s30 = sld [smem:[%s9511_s0 + %s7899_s26]]  }
  0x13   :  { %s8045_s6 = sld [smem:[%s9511_s0 + %s7900_s1]]  }
  0x14   :  { %9565 = sst [smem:[#allocation66_spill]] %s8025_s14 }
  0x15   :  { %s8050_s12 = sld [smem:[%s9511_s0 + %s7901_s7]]   ;;  %s7905_s7 = smov 18  }
  0x16   :  { %9566 = sst [smem:[#allocation67_spill]] %s8035_s24 }
  0x17   :  { %s8055_s20 = sld [smem:[%s9511_s0 + %s7902_s15]]   ;;  %s7906_s15 = smov 19  }
  0x18   :  { %s8060_s27 = sld [smem:[%s9511_s0 + %s7903_s22]]   ;;  %s7907_s22 = smov 20  }
  0x19   :  { %9567 = sst [smem:[#allocation68_spill]] %s8045_s6 }
  0x1a   :  { %s8065_s4 = sld [smem:[%s9511_s0 + %s7904_s28]]   ;;  %s7908_s28 = smov 21  }
  0x1b   :  { %s8070_s5 = sld [smem:[%s9511_s0 + %s7905_s7]]   ;;  %s7909_s7 = smov 22  }
  0x1c   :  { %s8080_s6 = sld [smem:[%s9511_s0 + %s7907_s22]]   ;;  %s7911_s22 = smov 24  }
  0x1d   :  { %9568 = sst [smem:[#allocation69_spill]] %s8055_s20 }
  0x1e   :  { %s8075_s20 = sld [smem:[%s9511_s0 + %s7906_s15]]   ;;  %s7910_s15 = smov 23  }
  0x1f   :  { %s8090_s24 = sld [smem:[%s9511_s0 + %s7909_s7]]   ;;  %s7913_s7 = smov 26  }
  0x20   :  { %9569 = sst [smem:[#allocation70_spill]] %s8065_s4 }
  0x21   :  { %s8085_s4 = sld [smem:[%s9511_s0 + %s7908_s28]]   ;;  %s7912_s28 = smov 25  }
  0x22   :  { %s8100_s14 = sld [smem:[%s9511_s0 + %s7911_s22]]   ;;  %s7915_s22 = smov 28  }
  0x23   :  { %s8110_s3 = sld [smem:[%s9511_s0 + %s7913_s7]]   ;;  %s7917_s7 = smov 30  }
  0x24   :  { %9570 = sst [smem:[#allocation71_spill]] %s8075_s20 }
  0x25   :  { %s8095_s20 = sld [smem:[%s9511_s0 + %s7910_s15]]   ;;  %s7914_s15 = smov 27  }
  0x26   :  { %s8120_s25 = sld [smem:[%s9511_s0 + %s7915_s22]]   ;;  %s7919_s22 = smov 32  }
  0x27   :  { %9571 = sst [smem:[#allocation72_spill]] %s8085_s4 }
  0x28   :  { %s8105_s4 = sld [smem:[%s9511_s0 + %s7912_s28]]   ;;  %s7916_s28 = smov 29  }
  0x29   :  { %s8130_s17 = sld [smem:[%s9511_s0 + %s7917_s7]]  }
  0x2a   :  { %s8140_s9 = sld [smem:[%s9511_s0 + %s7919_s22]]  }
  0x2b   :  { %9572 = sst [smem:[#allocation73_spill]] %s8095_s20 }
  0x2c   :  { %s8115_s20 = sld [smem:[%s9511_s0 + %s7914_s15]]   ;;  %s7918_s15 = smov 31  }
  0x2e   :  { %9573 = sst [smem:[#allocation74_spill]] %s8105_s4 }
  0x2f   :  { %s8125_s4 = sld [smem:[%s9511_s0 + %s7916_s28]]  }
  0x32   :  { %9574 = sst [smem:[#allocation75_spill]] %s8115_s20 }
  0x33   :  { %s8135_s20 = sld [smem:[%s9511_s0 + %s7918_s15]]  }
  0x34   :  { %71 = vsyncpa [#allocation3], 0 }
  0x35   :  { %72 = vsyncpa [#allocation5], 0 }
  0x36   :  { %73 = vsyncpa [#allocation8], 0 }
  0x37   :  { %74 = vsyncpa [#allocation11], 0 }
  0x38   :  { %75 = vsyncpa [#allocation14], 0 }
  0x39   :  { %76 = vsyncpa [#allocation17], 0 }
  0x3a   :  { %77 = vsyncpa [#allocation20], 0 }
  0x3b   :  { %78 = vsyncpa [#allocation23], 0 }
  0x3c   :  { %79 = vsyncpa [#allocation26], 0 }
  0x3d   :  { %80 = vsyncpa [#allocation29], 0 }
  0x3e   :  { %81 = vsyncpa [#allocation32], 0 }
  0x3f   :  { %82 = vsyncpa [#allocation35], 0 }
  0x40   :  { %83 = vsyncpa [#allocation38], 0 }
  0x41   :  { %84 = vsyncpa [#allocation41], 0 }
  0x42   :  { %85 = vsyncpa [#allocation44], 0  ;;  %s7920_s28 = smov [#allocation4]   ;;  %s7921_s2 = smov [#allocation7]  }
  0x43   :  { %s106_s1 = sshll.u32 %s7920_s28, 4  ;;  %s125_s0 = sshll.u32 %s7921_s2, 4  ;;  %s107_s1 = int_to_ptr.vmem [resolvable:$true] %s106_s1  ;;  %s126_s0 = int_to_ptr.vmem [resolvable:$true] %s125_s0 }
  0x44   :  { %s7286_s7 = scalar_lea.vmem %s107_s1, 128  ;;  %p7291_p1 = scmp.lt.s32.totalorder %s107_s1, %s107_s1 }
  0x45   :  { %p7287_p0 = scmp.ne.s32.totalorder %s107_s1, %s7286_s7  ;;  %p7292_p2 = scmp.lt.s32.totalorder %s7286_s7, %s7286_s7 }
  0x47   :  { %p7293_p3 = por %p7292_p2, %p7291_p1 }
  0x49   :  { %p7294_p4 = pnand %p7293_p3, %p7287_p0 }
  0x4b   :  { %7297 = shalt.err (!%p7294_p4)
}
  0x4c   :  { %109 = dma.hbm_to_vmem [thread:$0]  %s7990_s13, 128, %s107_s1, [#allocation5]  }
  0x4d   :  { %s7306_s10 = scalar_lea.vmem %s126_s0, 1024  ;;  %p7311_p6 = scmp.lt.s32.totalorder %s126_s0, %s126_s0 }
  0x4e   :  { %p7307_p5 = scmp.ne.s32.totalorder %s126_s0, %s7306_s10  ;;  %p7312_p7 = scmp.lt.s32.totalorder %s7306_s10, %s7306_s10 }
  0x50   :  { %p7313_p8 = por %p7312_p7, %p7311_p6 }
  0x52   :  { %p7314_p9 = pnand %p7313_p8, %p7307_p5 }
  0x54   :  { %7317 = shalt.err (!%p7314_p9)
}
  0x55   :  { %s7922_s11 = smov 512   ;;  %s7923_s15 = smov 32  }
  0x56   :  { %131 = dma.hbm_to_vmem [thread:$0]  %s8000_s21, 1024, %s126_s0, [#allocation8], %s7922_s11, %s7922_s11, %s7923_s15  }
  0x57   :  { %s7924_s16 = smov [#allocation10]  }
  0x58   :  { %s149_s18 = sshll.u32 %s7924_s16, 4  ;;  %s150_s18 = int_to_ptr.vmem [resolvable:$true] %s149_s18 }
  0x59   :  { %s7326_s22 = scalar_lea.vmem %s150_s18, 256  ;;  %p7331_p11 = scmp.lt.s32.totalorder %s150_s18, %s150_s18 }
  0x5a   :  { %p7327_p10 = scmp.ne.s32.totalorder %s150_s18, %s7326_s22  ;;  %p7332_p12 = scmp.lt.s32.totalorder %s7326_s22, %s7326_s22 }
  0x5c   :  { %p7333_p13 = por %p7332_p12, %p7331_p11 }
  0x5e   :  { %p7334_p0 = pnand %p7333_p13, %p7327_p10 }
  0x60   :  { %7337 = shalt.err (!%p7334_p0)
}
  0x61   :  { %s7925_s13 = smov 128   ;;  %s7926_s23 = smov 8  }
  0x62   :  { %155 = dma.hbm_to_vmem [thread:$0]  %s8010_s29, 256, %s150_s18, [#allocation11], %s7925_s13, %s7925_s13, %s7926_s23  }
  0x63   :  { %s7927_s26 = smov [#allocation13]  }
  0x64   :  { %s173_s28 = sshll.u32 %s7927_s26, 4  ;;  %s174_s28 = int_to_ptr.vmem [resolvable:$true] %s173_s28 }
  0x65   :  { %s7346_s21 = scalar_lea.vmem %s174_s28, 1024  ;;  %p7351_p2 = scmp.lt.s32.totalorder %s174_s28, %s174_s28 }
  0x66   :  { %p7347_p1 = scmp.ne.s32.totalorder %s174_s28, %s7346_s21  ;;  %p7352_p3 = scmp.lt.s32.totalorder %s7346_s21, %s7346_s21 }
  0x68   :  { %p7353_p4 = por %p7352_p3, %p7351_p2 }
  0x6a   :  { %p7354_p5 = pnand %p7353_p4, %p7347_p1 }
  0x6c   :  { %7357 = shalt.err (!%p7354_p5)
}
  0x6d   :  { %179 = dma.hbm_to_vmem [thread:$0]  %s8020_s8, 1024, %s174_s28, [#allocation14], %s7922_s11, %s7922_s11, %s7923_s15  }
  0x6e   :  { %s7928_s1 = smov [#allocation16]   ;;  %s7929_s0 = smov [#allocation19]  }
  0x6f   :  { %s197_s2 = sshll.u32 %s7928_s1, 4  ;;  %s221_s7 = sshll.u32 %s7929_s0, 4  ;;  %s198_s2 = int_to_ptr.vmem [resolvable:$true] %s197_s2  ;;  %s222_s7 = int_to_ptr.vmem [resolvable:$true] %s221_s7 }
  0x70   :  { %s7366_s29 = scalar_lea.vmem %s198_s2, 1152  ;;  %p7371_p7 = scmp.lt.s32.totalorder %s198_s2, %s198_s2 }
  0x71   :  { %p7367_p6 = scmp.ne.s32.totalorder %s198_s2, %s7366_s29  ;;  %p7372_p8 = scmp.lt.s32.totalorder %s7366_s29, %s7366_s29 }
  0x73   :  { %p7373_p9 = por %p7372_p8, %p7371_p7 }
  0x75   :  { %p7374_p10 = pnand %p7373_p9, %p7367_p6 }
  0x77   :  { %7377 = shalt.err (!%p7374_p10)
}
  0x78   :  { %s7930_s10 = smov 64   ;;  %s7931_s16 = smov 4  }
  0x79   :  { %203 = dma.hbm_to_vmem [thread:$0]  %s8030_s19, 1152, %s198_s2, [#allocation17], %s7930_s10, %s7930_s10, %s7931_s16  }
  0x7a   :  { %s7386_s8 = scalar_lea.vmem %s222_s7, 256  ;;  %p7391_p12 = scmp.lt.s32.totalorder %s222_s7, %s222_s7 }
  0x7b   :  { %p7387_p11 = scmp.ne.s32.totalorder %s222_s7, %s7386_s8  ;;  %p7392_p13 = scmp.lt.s32.totalorder %s7386_s8, %s7386_s8 }
  0x7d   :  { %p7393_p0 = por %p7392_p13, %p7391_p12 }
  0x7f   :  { %p7394_p1 = pnand %p7393_p0, %p7387_p11 }
  0x81   :  { %7397 = shalt.err (!%p7394_p1)
}
  0x82   :  { %227 = dma.hbm_to_vmem [thread:$0]  %s8040_s30, 256, %s222_s7, [#allocation20], %s7925_s13, %s7925_s13, %s7926_s23  }
  0x83   :  { %s7932_s18 = smov [#allocation22]   ;;  %s7933_s26 = smov [#allocation25]  }
  0x84   :  { %s245_s22 = sshll.u32 %s7932_s18, 4  ;;  %s269_s28 = sshll.u32 %s7933_s26, 4  ;;  %s246_s22 = int_to_ptr.vmem [resolvable:$true] %s245_s22  ;;  %s270_s28 = int_to_ptr.vmem [resolvable:$true] %s269_s28 }
  0x85   :  { %s7406_s21 = scalar_lea.vmem %s246_s22, 192  ;;  %p7411_p3 = scmp.lt.s32.totalorder %s246_s22, %s246_s22 }
  0x86   :  { %p7407_p2 = scmp.ne.s32.totalorder %s246_s22, %s7406_s21  ;;  %p7412_p4 = scmp.lt.s32.totalorder %s7406_s21, %s7406_s21 }
  0x88   :  { %p7413_p5 = por %p7412_p4, %p7411_p3 }
  0x8a   :  { %p7414_p6 = pnand %p7413_p5, %p7407_p2 }
  0x8c   :  { %7417 = shalt.err (!%p7414_p6)
}
  0x8d   :  { %251 = dma.hbm_to_vmem [thread:$0]  %s8050_s12, 192, %s246_s22, [#allocation23], %s7930_s10, %s7930_s10, %s7931_s16  }
  0x8e   :  { %s7426_s19 = scalar_lea.vmem %s270_s28, 384  ;;  %p7431_p8 = scmp.lt.s32.totalorder %s270_s28, %s270_s28 }
  0x8f   :  { %p7427_p7 = scmp.ne.s32.totalorder %s270_s28, %s7426_s19  ;;  %p7432_p9 = scmp.lt.s32.totalorder %s7426_s19, %s7426_s19 }
  0x91   :  { %p7433_p10 = por %p7432_p9, %p7431_p8 }
  0x93   :  { %p7434_p11 = pnand %p7433_p10, %p7427_p7 }
  0x95   :  { %7437 = shalt.err (!%p7434_p11)
}
  0x96   :  { %275 = dma.hbm_to_vmem [thread:$0]  %s8060_s27, 384, %s270_s28, [#allocation26], %s7925_s13, %s7925_s13, %s7926_s23  }
  0x97   :  { %s7934_s30 = smov [#allocation28]   ;;  %s7935_s2 = smov [#allocation31]  }
  0x98   :  { %s293_s1 = sshll.u32 %s7934_s30, 4  ;;  %s318_s0 = sshll.u32 %s7935_s2, 4  ;;  %s294_s1 = int_to_ptr.vmem [resolvable:$true] %s293_s1  ;;  %s319_s0 = int_to_ptr.vmem [resolvable:$true] %s318_s0 }
  0x99   :  { %s7446_s7 = scalar_lea.vmem %s294_s1, 384  ;;  %p7451_p13 = scmp.lt.s32.totalorder %s294_s1, %s294_s1 }
  0x9a   :  { %p7447_p12 = scmp.ne.s32.totalorder %s294_s1, %s7446_s7  ;;  %p7452_p0 = scmp.lt.s32.totalorder %s7446_s7, %s7446_s7 }
  0x9c   :  { %p7453_p1 = por %p7452_p0, %p7451_p13 }
  0x9e   :  { %p7454_p2 = pnand %p7453_p1, %p7447_p12 }
  0xa0   :  { %7457 = shalt.err (!%p7454_p2)
}
  0xa1   :  { %299 = dma.hbm_to_vmem [thread:$0]  %s8070_s5, 384, %s294_s1, [#allocation29], %s7925_s13, %s7925_s13, %s7926_s23  }
  0xa2   :  { %s7466_s12 = scalar_lea.vmem %s319_s0, 64  ;;  %p7471_p4 = scmp.lt.s32.totalorder %s319_s0, %s319_s0 }
  0xa3   :  { %p7467_p3 = scmp.ne.s32.totalorder %s319_s0, %s7466_s12  ;;  %p7472_p5 = scmp.lt.s32.totalorder %s7466_s12, %s7466_s12 }
  0xa5   :  { %p7473_p6 = por %p7472_p5, %p7471_p4 }
  0xa7   :  { %p7474_p7 = pnand %p7473_p6, %p7467_p3 }
  0xa9   :  { %7477 = shalt.err (!%p7474_p7)
}
  0xaa   :  { %321 = dma.hbm_to_vmem [thread:$0]  %s8080_s6, 64, %s319_s0, [#allocation32]  }
  0xab   :  { %s7936_s27 = smov [#allocation34]   ;;  %s7937_s8 = smov [#allocation37]  }
  0xac   :  { %s338_s29 = sshll.u32 %s7936_s27, 4  ;;  %s359_s18 = sshll.u32 %s7937_s8, 4  ;;  %s339_s29 = int_to_ptr.vmem [resolvable:$true] %s338_s29  ;;  %s360_s18 = int_to_ptr.vmem [resolvable:$true] %s359_s18 }
  0xad   :  { %s7486_s22 = scalar_lea.vmem %s339_s29, 128  ;;  %p7491_p9 = scmp.lt.s32.totalorder %s339_s29, %s339_s29 }
  0xae   :  { %p7487_p8 = scmp.ne.s32.totalorder %s339_s29, %s7486_s22  ;;  %p7492_p10 = scmp.lt.s32.totalorder %s7486_s22, %s7486_s22 }
  0xb0   :  { %p7493_p11 = por %p7492_p10, %p7491_p9 }
  0xb2   :  { %p7494_p12 = pnand %p7493_p11, %p7487_p8 }
  0xb4   :  { %7497 = shalt.err (!%p7494_p12)
}
  0xb5   :  { %341 = dma.hbm_to_vmem [thread:$0]  %s8090_s24, 128, %s339_s29, [#allocation35]  }
  0xb6   :  { %s7506_s5 = scalar_lea.vmem %s360_s18, 1728  ;;  %p7511_p0 = scmp.lt.s32.totalorder %s360_s18, %s360_s18 }
  0xb7   :  { %p7507_p13 = scmp.ne.s32.totalorder %s360_s18, %s7506_s5  ;;  %p7512_p1 = scmp.lt.s32.totalorder %s7506_s5, %s7506_s5 }
  0xb9   :  { %p7513_p2 = por %p7512_p1, %p7511_p0 }
  0xbb   :  { %p7514_p3 = pnand %p7513_p2, %p7507_p13 }
  0xbd   :  { %7517 = shalt.err (!%p7514_p3)
}
  0xbe   :  { %365 = dma.hbm_to_vmem [thread:$0]  %s8100_s14, 1728, %s360_s18, [#allocation38], %s7930_s10, %s7930_s10, %s7931_s16  }
  0xbf   :  { %s7938_s6 = smov [#allocation40]   ;;  %s7939_s28 = smov [#allocation43]  }
  0xc0   :  { %s383_s26 = sshll.u32 %s7938_s6, 4  ;;  %s407_s21 = sshll.u32 %s7939_s28, 4  ;;  %s384_s26 = int_to_ptr.vmem [resolvable:$true] %s383_s26  ;;  %s408_s21 = int_to_ptr.vmem [resolvable:$true] %s407_s21 }
  0xc1   :  { %s7526_s19 = scalar_lea.vmem %s384_s26, 1024  ;;  %p7531_p5 = scmp.lt.s32.totalorder %s384_s26, %s384_s26 }
  0xc2   :  { %p7527_p4 = scmp.ne.s32.totalorder %s384_s26, %s7526_s19  ;;  %p7532_p6 = scmp.lt.s32.totalorder %s7526_s19, %s7526_s19 }
  0xc4   :  { %p7533_p7 = por %p7532_p6, %p7531_p5 }
  0xc6   :  { %p7534_p8 = pnand %p7533_p7, %p7527_p4 }
  0xc8   :  { %7537 = shalt.err (!%p7534_p8)
}
  0xc9   :  { %389 = dma.hbm_to_vmem [thread:$0]  %s8110_s3, 1024, %s384_s26, [#allocation41], %s7922_s11, %s7922_s11, %s7923_s15  }
  0xca   :  { %s7546_s24 = scalar_lea.vmem %s408_s21, 384  ;;  %p7551_p10 = scmp.lt.s32.totalorder %s408_s21, %s408_s21 }
  0xcb   :  { %p7547_p9 = scmp.ne.s32.totalorder %s408_s21, %s7546_s24  ;;  %p7552_p11 = scmp.lt.s32.totalorder %s7546_s24, %s7546_s24 }
  0xcd   :  { %p7553_p12 = por %p7552_p11, %p7551_p10 }
  0xcf   :  { %p7554_p13 = pnand %p7553_p12, %p7547_p9 }
  0xd1   :  { %7557 = shalt.err (!%p7554_p13)
}
  0xd2   :  { %413 = dma.hbm_to_vmem [thread:$0]  %s8120_s25, 384, %s408_s21, [#allocation44], %s7925_s13, %s7925_s13, %s7926_s23  }
  0xd3   :  { %s7940_s14 = smov [#allocation2]   ;;  %s7941_s1 = smov [#allocation6]  }
  0xd4   :  { %s93_s30 = sshll.u32 %s7940_s14, 4  ;;  %s116_s2 = sshll.u32 %s7941_s1, 4  ;;  %s94_s30 = int_to_ptr.vmem [resolvable:$true] %s93_s30  ;;  %s117_s2 = int_to_ptr.vmem [resolvable:$true] %s116_s2 }
  0xd5   :  { %s7566_s0 = scalar_lea.vmem %s94_s30, 576  ;;  %p7571_p1 = scmp.lt.s32.totalorder %s94_s30, %s94_s30 }
  0xd6   :  { %p7567_p0 = scmp.ne.s32.totalorder %s94_s30, %s7566_s0  ;;  %p7572_p2 = scmp.lt.s32.totalorder %s7566_s0, %s7566_s0 }
  0xd8   :  { %p7573_p3 = por %p7572_p2, %p7571_p1 }
  0xda   :  { %p7574_p4 = pnand %p7573_p3, %p7567_p0 }
  0xdc   :  { %7577 = shalt.err (!%p7574_p4)
}
  0xdd   :  { %s9575_s3 = sld [smem:[#allocation62_spill]]  ;;  %s7586_s7 = scalar_lea.vmem %s117_s2, 128 }
  0xde   :  { %p7587_p5 = scmp.ne.s32.totalorder %s117_s2, %s7586_s7  ;;  %p7591_p6 = scmp.lt.s32.totalorder %s117_s2, %s117_s2 }
  0xdf   :  { %p7592_p7 = scmp.lt.s32.totalorder %s7586_s7, %s7586_s7 }
  0xe1   :  { %p7593_p8 = por %p7592_p7, %p7591_p6 }
  0xe3   :  { %99 = dma.hbm_to_vmem [thread:$0]  %s9575_s3, 576, %s94_s30, [#allocation3], %s7930_s10, %s7930_s10, %s7931_s16  }
  0xe4   :  { %p7594_p9 = pnand %p7593_p8, %p7587_p5 }
  0xe6   :  { %7597 = shalt.err (!%p7594_p9)
}
  0xe7   :  { %s9576_s25 = sld [smem:[#allocation63_spill]]  ;;  %s7942_s12 = smov [#allocation9]  }
  0xe8   :  { %s137_s27 = sshll.u32 %s7942_s12, 4  ;;  %s7943_s29 = smov [#allocation12]   ;;  %s138_s27 = int_to_ptr.vmem [resolvable:$true] %s137_s27 }
  0xe9   :  { %s161_s8 = sshll.u32 %s7943_s29, 4  ;;  %s7606_s18 = scalar_lea.vmem %s138_s27, 1152  ;;  %s162_s8 = int_to_ptr.vmem [resolvable:$true] %s161_s8 }
  0xea   :  { %p7607_p10 = scmp.ne.s32.totalorder %s138_s27, %s7606_s18  ;;  %p7611_p11 = scmp.lt.s32.totalorder %s138_s27, %s138_s27 }
  0xeb   :  { %p7612_p12 = scmp.lt.s32.totalorder %s7606_s18, %s7606_s18 }
  0xed   :  { %119 = dma.hbm_to_vmem [thread:$0]  %s9576_s25, 128, %s117_s2, [#allocation5]  }
  0xee   :  { %p7613_p13 = por %p7612_p12, %p7611_p11 }
  0xf0   :  { %p7614_p0 = pnand %p7613_p13, %p7607_p10 }
  0xf2   :  { %7617 = shalt.err (!%p7614_p0)
}
  0xf3   :  { %s9577_s22 = sld [smem:[#allocation64_spill]]  ;;  %s7626_s5 = scalar_lea.vmem %s162_s8, 256 }
  0xf4   :  { %p7627_p1 = scmp.ne.s32.totalorder %s162_s8, %s7626_s5  ;;  %p7631_p2 = scmp.lt.s32.totalorder %s162_s8, %s162_s8 }
  0xf5   :  { %p7632_p3 = scmp.lt.s32.totalorder %s7626_s5, %s7626_s5 }
  0xf7   :  { %p7633_p4 = por %p7632_p3, %p7631_p2 }
  0xf9   :  { %143 = dma.hbm_to_vmem [thread:$0]  %s9577_s22, 1152, %s138_s27, [#allocation8], %s7930_s10, %s7930_s10, %s7931_s16  }
  0xfa   :  { %p7634_p5 = pnand %p7633_p4, %p7627_p1 }
  0xfc   :  { %7637 = shalt.err (!%p7634_p5)
}
  0xfd   :  { %s9578_s6 = sld [smem:[#allocation65_spill]]  ;;  %s7944_s26 = smov [#allocation15]  }
  0xfe   :  { %s185_s28 = sshll.u32 %s7944_s26, 4  ;;  %s7945_s21 = smov [#allocation18]   ;;  %s186_s28 = int_to_ptr.vmem [resolvable:$true] %s185_s28 }
  0xff   :  { %s209_s19 = sshll.u32 %s7945_s21, 4  ;;  %s7646_s24 = scalar_lea.vmem %s186_s28, 8192  ;;  %s210_s19 = int_to_ptr.vmem [resolvable:$true] %s209_s19 }
 0x100   :  { %p7647_p6 = scmp.ne.s32.totalorder %s186_s28, %s7646_s24  ;;  %p7651_p7 = scmp.lt.s32.totalorder %s186_s28, %s186_s28 }
 0x101   :  { %p7652_p8 = scmp.lt.s32.totalorder %s7646_s24, %s7646_s24 }
 0x103   :  { %167 = dma.hbm_to_vmem [thread:$0]  %s9578_s6, 256, %s162_s8, [#allocation11], %s7925_s13, %s7925_s13, %s7926_s23  }
 0x104   :  { %p7653_p9 = por %p7652_p8, %p7651_p7 }
 0x106   :  { %p7654_p10 = pnand %p7653_p9, %p7647_p6 }
 0x108   :  { %7657 = shalt.err (!%p7654_p10)
}
 0x109   :  { %s9579_s10 = sld [smem:[#allocation66_spill]]  ;;  %s7666_s16 = scalar_lea.vmem %s210_s19, 256 }
 0x10a   :  { %p7667_p11 = scmp.ne.s32.totalorder %s210_s19, %s7666_s16  ;;  %p7671_p12 = scmp.lt.s32.totalorder %s210_s19, %s210_s19 }
 0x10b   :  { %p7672_p13 = scmp.lt.s32.totalorder %s7666_s16, %s7666_s16 }
 0x10d   :  { %p7673_p0 = por %p7672_p13, %p7671_p12 }
 0x10f   :  { %191 = dma.hbm_to_vmem [thread:$0]  %s9579_s10, 8192, %s186_s28, [#allocation14], %s7925_s13, %s7925_s13, %s7926_s23  }
 0x110   :  { %p7674_p1 = pnand %p7673_p0, %p7667_p11 }
 0x112   :  { %7677 = shalt.err (!%p7674_p1)
}
 0x113   :  { %s9580_s14 = sld [smem:[#allocation67_spill]]  ;;  %s7946_s30 = smov [#allocation21]  }
 0x114   :  { %s233_s1 = sshll.u32 %s7946_s30, 4  ;;  %s7947_s2 = smov [#allocation24]   ;;  %s234_s1 = int_to_ptr.vmem [resolvable:$true] %s233_s1 }
 0x115   :  { %s257_s0 = sshll.u32 %s7947_s2, 4  ;;  %s7686_s3 = scalar_lea.vmem %s234_s1, 256  ;;  %s258_s0 = int_to_ptr.vmem [resolvable:$true] %s257_s0 }
 0x116   :  { %p7687_p2 = scmp.ne.s32.totalorder %s234_s1, %s7686_s3  ;;  %p7691_p3 = scmp.lt.s32.totalorder %s234_s1, %s234_s1 }
 0x117   :  { %p7692_p4 = scmp.lt.s32.totalorder %s7686_s3, %s7686_s3 }
 0x119   :  { %215 = dma.hbm_to_vmem [thread:$0]  %s9580_s14, 256, %s210_s19, [#allocation17], %s7925_s13, %s7925_s13, %s7926_s23  }
 0x11a   :  { %p7693_p5 = por %p7692_p4, %p7691_p3 }
 0x11c   :  { %p7694_p6 = pnand %p7693_p5, %p7687_p2 }
 0x11e   :  { %7697 = shalt.err (!%p7694_p6)
}
 0x11f   :  { %s9581_s7 = sld [smem:[#allocation68_spill]]  ;;  %s7706_s25 = scalar_lea.vmem %s258_s0, 384 }
 0x120   :  { %p7707_p7 = scmp.ne.s32.totalorder %s258_s0, %s7706_s25  ;;  %p7711_p8 = scmp.lt.s32.totalorder %s258_s0, %s258_s0 }
 0x121   :  { %p7712_p9 = scmp.lt.s32.totalorder %s7706_s25, %s7706_s25 }
 0x123   :  { %p7713_p10 = por %p7712_p9, %p7711_p8 }
 0x125   :  { %239 = dma.hbm_to_vmem [thread:$0]  %s9581_s7, 256, %s234_s1, [#allocation20], %s7925_s13, %s7925_s13, %s7926_s23  }
 0x126   :  { %p7714_p11 = pnand %p7713_p10, %p7707_p7 }
 0x128   :  { %7717 = shalt.err (!%p7714_p11)
}
 0x129   :  { %s9582_s12 = sld [smem:[#allocation69_spill]]  ;;  %s7948_s27 = smov [#allocation27]  }
 0x12a   :  { %s281_s29 = sshll.u32 %s7948_s27, 4  ;;  %s7949_s8 = smov [#allocation30]   ;;  %s282_s29 = int_to_ptr.vmem [resolvable:$true] %s281_s29 }
 0x12b   :  { %s305_s18 = sshll.u32 %s7949_s8, 4  ;;  %s7726_s22 = scalar_lea.vmem %s282_s29, 384  ;;  %s306_s18 = int_to_ptr.vmem [resolvable:$true] %s305_s18 }
 0x12c   :  { %p7727_p12 = scmp.ne.s32.totalorder %s282_s29, %s7726_s22  ;;  %p7731_p13 = scmp.lt.s32.totalorder %s282_s29, %s282_s29 }
 0x12d   :  { %p7732_p0 = scmp.lt.s32.totalorder %s7726_s22, %s7726_s22 }
 0x12f   :  { %263 = dma.hbm_to_vmem [thread:$0]  %s9582_s12, 384, %s258_s0, [#allocation23], %s7925_s13, %s7925_s13, %s7926_s23  }
 0x130   :  { %p7733_p1 = por %p7732_p0, %p7731_p13 }
 0x132   :  { %p7734_p2 = pnand %p7733_p1, %p7727_p12 }
 0x134   :  { %7737 = shalt.err (!%p7734_p2)
}
 0x135   :  { %s9583_s5 = sld [smem:[#allocation70_spill]]  ;;  %s7746_s6 = scalar_lea.vmem %s306_s18, 384 }
 0x136   :  { %p7747_p3 = scmp.ne.s32.totalorder %s306_s18, %s7746_s6  ;;  %p7751_p4 = scmp.lt.s32.totalorder %s306_s18, %s306_s18 }
 0x137   :  { %p7752_p5 = scmp.lt.s32.totalorder %s7746_s6, %s7746_s6 }
 0x139   :  { %p7753_p6 = por %p7752_p5, %p7751_p4 }
 0x13b   :  { %287 = dma.hbm_to_vmem [thread:$0]  %s9583_s5, 384, %s282_s29, [#allocation26], %s7925_s13, %s7925_s13, %s7926_s23  }
 0x13c   :  { %p7754_p7 = pnand %p7753_p6, %p7747_p3 }
 0x13e   :  { %7757 = shalt.err (!%p7754_p7)
}
 0x13f   :  { %s9584_s26 = sld [smem:[#allocation71_spill]]  ;;  %s7950_s28 = smov [#allocation33]  }
 0x140   :  { %s328_s21 = sshll.u32 %s7950_s28, 4  ;;  %s7951_s19 = smov [#allocation36]   ;;  %s329_s21 = int_to_ptr.vmem [resolvable:$true] %s328_s21 }
 0x141   :  { %s347_s24 = sshll.u32 %s7951_s19, 4  ;;  %s7766_s10 = scalar_lea.vmem %s329_s21, 128  ;;  %s348_s24 = int_to_ptr.vmem [resolvable:$true] %s347_s24 }
 0x142   :  { %p7767_p8 = scmp.ne.s32.totalorder %s329_s21, %s7766_s10  ;;  %p7771_p9 = scmp.lt.s32.totalorder %s329_s21, %s329_s21 }
 0x143   :  { %p7772_p10 = scmp.lt.s32.totalorder %s7766_s10, %s7766_s10 }
 0x145   :  { %311 = dma.hbm_to_vmem [thread:$0]  %s9584_s26, 384, %s306_s18, [#allocation29], %s7925_s13, %s7925_s13, %s7926_s23  }
 0x146   :  { %p7773_p11 = por %p7772_p10, %p7771_p9 }
 0x148   :  { %p7774_p12 = pnand %p7773_p11, %p7767_p8 }
 0x14a   :  { %7777 = shalt.err (!%p7774_p12)
}
 0x14b   :  { %s9585_s16 = sld [smem:[#allocation72_spill]]  ;;  %s7786_s14 = scalar_lea.vmem %s348_s24, 8192 }
 0x14c   :  { %p7787_p13 = scmp.ne.s32.totalorder %s348_s24, %s7786_s14  ;;  %p7791_p0 = scmp.lt.s32.totalorder %s348_s24, %s348_s24 }
 0x14d   :  { %p7792_p1 = scmp.lt.s32.totalorder %s7786_s14, %s7786_s14 }
 0x14f   :  { %p7793_p2 = por %p7792_p1, %p7791_p0 }
 0x151   :  { %331 = dma.hbm_to_vmem [thread:$0]  %s9585_s16, 128, %s329_s21, [#allocation32]  }
 0x152   :  { %p7794_p3 = pnand %p7793_p2, %p7787_p13 }
 0x154   :  { %7797 = shalt.err (!%p7794_p3)
}
 0x155   :  { %s9586_s30 = sld [smem:[#allocation73_spill]]  ;;  %s7952_s1 = smov [#allocation39]  }
 0x156   :  { %s371_s2 = sshll.u32 %s7952_s1, 4  ;;  %s7953_s0 = smov [#allocation42]   ;;  %s372_s2 = int_to_ptr.vmem [resolvable:$true] %s371_s2 }
 0x157   :  { %s395_s3 = sshll.u32 %s7953_s0, 4  ;;  %s7806_s7 = scalar_lea.vmem %s372_s2, 384  ;;  %s396_s3 = int_to_ptr.vmem [resolvable:$true] %s395_s3 }
 0x158   :  { %p7807_p4 = scmp.ne.s32.totalorder %s372_s2, %s7806_s7  ;;  %p7811_p5 = scmp.lt.s32.totalorder %s372_s2, %s372_s2 }
 0x159   :  { %p7812_p6 = scmp.lt.s32.totalorder %s7806_s7, %s7806_s7 }
 0x15b   :  { %353 = dma.hbm_to_vmem [thread:$0]  %s9586_s30, 8192, %s348_s24, [#allocation35], %s7922_s11, %s7922_s11, %s7923_s15  }
 0x15c   :  { %p7813_p7 = por %p7812_p6, %p7811_p5 }
 0x15e   :  { %p7814_p8 = pnand %p7813_p7, %p7807_p4 }
 0x160   :  { %7817 = shalt.err (!%p7814_p8)
}
 0x161   :  { %s9587_s25 = sld [smem:[#allocation74_spill]]  ;;  %s7826_s12 = scalar_lea.vmem %s396_s3, 1536 }
 0x162   :  { %p7827_p9 = scmp.ne.s32.totalorder %s396_s3, %s7826_s12  ;;  %p7831_p10 = scmp.lt.s32.totalorder %s396_s3, %s396_s3 }
 0x163   :  { %p7832_p11 = scmp.lt.s32.totalorder %s7826_s12, %s7826_s12 }
 0x165   :  { %p7833_p12 = por %p7832_p11, %p7831_p10 }
 0x167   :  { %377 = dma.hbm_to_vmem [thread:$0]  %s9587_s25, 384, %s372_s2, [#allocation38], %s7925_s13, %s7925_s13, %s7926_s23  }
 0x168   :  { %p7834_p13 = pnand %p7833_p12, %p7827_p9 }
 0x16a   :  { %7837 = shalt.err (!%p7834_p13)
}
 0x16b   :  { %s9588_s27 = sld [smem:[#allocation75_spill]]  ;;  %s7954_s29 = smov [#allocation45]  }
 0x16c   :  { %s419_s8 = sshll.u32 %s7954_s29, 4  ;;  %s420_s8 = int_to_ptr.vmem [resolvable:$true] %s419_s8 }
 0x16d   :  { %s7846_s18 = scalar_lea.vmem %s420_s8, 384  ;;  %p7851_p1 = scmp.lt.s32.totalorder %s420_s8, %s420_s8 }
 0x16e   :  { %p7847_p0 = scmp.ne.s32.totalorder %s420_s8, %s7846_s18  ;;  %p7852_p2 = scmp.lt.s32.totalorder %s7846_s18, %s7846_s18 }
 0x170   :  { %p7853_p3 = por %p7852_p2, %p7851_p1 }
 0x171   :  { %401 = dma.hbm_to_vmem [thread:$0]  %s9588_s27, 1536, %s396_s3, [#allocation41], %s7922_s11, %s7922_s11, %s7923_s15  }
 0x172   :  { %p7854_p4 = pnand %p7853_p3, %p7847_p0 }
 0x174   :  { %7857 = shalt.err (!%p7854_p4)
}
 0x175   :  { %425 = dma.hbm_to_vmem [thread:$0]  %s8125_s4, 384, %s420_s8, [#allocation44], %s7925_s13, %s7925_s13, %s7926_s23  }
 0x176   :  { %7858 = dma.done.wait [#allocation3], 576  }
 0x177   :  { %7859 = vsyncadd [#allocation3], 4294966720 }
 0x178   :  { %7860 = dma.done.wait [#allocation5], 256  }
 0x179   :  { %7861 = vsyncadd [#allocation5], 4294967040 }
 0x17a   :  { %7862 = dma.done.wait [#allocation8], 2176  }
 0x17b   :  { %7863 = vsyncadd [#allocation8], 4294965120 }
 0x17c   :  { %7864 = dma.done.wait [#allocation11], 512  }
 0x17d   :  { %7865 = vsyncadd [#allocation11], 4294966784 }
 0x17e   :  { %7866 = dma.done.wait [#allocation14], 9216  }
 0x17f   :  { %7867 = vsyncadd [#allocation14], 4294958080 }
 0x180   :  { %7868 = dma.done.wait [#allocation17], 1408  }
 0x181   :  { %7869 = vsyncadd [#allocation17], 4294965888 }
 0x182   :  { %7870 = dma.done.wait [#allocation20], 512  }
 0x183   :  { %7871 = vsyncadd [#allocation20], 4294966784 }
 0x184   :  { %7872 = dma.done.wait [#allocation23], 576  }
 0x185   :  { %7873 = vsyncadd [#allocation23], 4294966720 }
 0x186   :  { %7874 = dma.done.wait [#allocation26], 768  }
 0x187   :  { %7875 = vsyncadd [#allocation26], 4294966528 }
 0x188   :  { %7876 = dma.done.wait [#allocation29], 768  }
 0x189   :  { %7877 = vsyncadd [#allocation29], 4294966528 }
 0x18a   :  { %7878 = dma.done.wait [#allocation32], 192  }
 0x18b   :  { %7879 = vsyncadd [#allocation32], 4294967104 }
 0x18c   :  { %7880 = dma.done.wait [#allocation35], 8320  }
 0x18d   :  { %7881 = vsyncadd [#allocation35], 4294958976 }
 0x18e   :  { %7882 = dma.done.wait [#allocation38], 2112  }
 0x18f   :  { %7883 = vsyncadd [#allocation38], 4294965184 }
 0x190   :  { %7884 = dma.done.wait [#allocation41], 2560  }
 0x191   :  { %7885 = vsyncadd [#allocation41], 4294964736 }
 0x192   :  { %7886 = dma.done.wait [#allocation44], 768  }
 0x193   :  { %7887 = vsyncadd [#allocation44], 4294966528  ;;  %s9589_s4 = sld [smem:[#allocation61_spill]]  ;;  %s7955_s11 = smov 16   ;;  %v9513_v4 = vmov 0   ;;  %v542_v5 = vlaneseq  ;;  %vm580_vm0 = vcmask 130048  }
 0x194   :  { %674 = vmatprep.mubr.bf16.mxu0 %v9513_v4  ;;  %715 = vmatprep.mubr.bf16.mxu1 %v9513_v4  ;;  %s7957_s15 = smov 17   ;;  %s7958_s13 = smov 15   ;;  %v590_v8 = vld [vmem:[#allocation7 + $0x1] ss:$8 sm:$0xf]  ;;  %vm626_vm1 = vcmask 1040384  }
 0x195   :  { %7135 = vset.pattern.permute.xlu1 %v9513_v4  ;;  %7134 = vset.pattern.permute.xlu0 %v9513_v4  ;;  %s7959_s22 = smov 1   ;;  %s7960_s5 = smov 127   ;;  %v543_v6 = vshrl.u32 %v542_v5, 7  ;;  %vm627_vm2 = vcmask 1041408   ;;  %v7964_v18 = vmov 65535   ;;  %vm531_vm3 = vcmask 138240  }
 0x196   :  { %s7961_s6 = smov 113   ;;  %s7962_s26 = smov 112   ;;  %v628_v19 = vsel %vm626_vm1, 4294967295, %v7964_v18  ;;  %v540_v23 = vld [vmem:[#allocation7] ss:$8 sm:$0xf] }
 0x197   :  { %s7963_s28 = smov 111   ;;  %v8305_v7 = vsub.s32 0, %v543_v6  ;;  %v8307_v9 = vsub.s32 1, %v543_v6  ;;  %v8310_v12 = vsub.s32 3, %v543_v6  ;;  %v8312_v13 = vsub.s32 2, %v543_v6  ;;  %s7967_s21 = smov 9  }
 0x198   :  { %v8320_v28 = vsel %vm627_vm2, %v628_v19, 0  ;;  %v1126_v41 = vld [vmem:[#allocation7 + $0x4] ss:$8 sm:$0xf]  ;;  %v617_v52 = vld [vmem:[#allocation2 + $0x4] sm:$0xf] }
 0x199   :  { %v8244_v0 = vld [vmem:[%s9589_s4] sm:$0x77]  ;;  %v8247_v1 = vld [vmem:[%s9589_s4 + $0x8] sm:$0x77]  ;;  %9590 = vst [vmem:[#allocation76_spill] sm:$0xff] %v8305_v7  ;;  %9591 = vst [vmem:[#allocation77_spill] sm:$0xff] %v8307_v9  ;;  %v595_v11 = vrot.slane %v590_v8, %v8305_v7  ;;  %v599_v15 = vrot.slane %v590_v8, %v8307_v9  ;;  %v607_v21 = vrot.slane %v590_v8, %v8310_v12 }
 0x19a   :  { %574 = vrot.lane.b32.xlu0 %v8244_v0, %s7955_s11  ;;  %v519_v2 = vcombine.high %v8247_v1, %v8247_v1  ;;  %v524_v3 = vcombine.high %v8244_v0, %v8244_v0  ;;  %9592 = vst [vmem:[#allocation78_spill] sm:$0xff] %v8310_v12  ;;  %9593 = vst [vmem:[#allocation79_spill] sm:$0xff] %v8312_v13  ;;  %v603_v22 = vrot.slane %v590_v8, %v8312_v13  ;;  %v8329_v45 = vld [vmem:[#allocation7 + $0x2] ss:$8 sm:$0xf]  ;;  %vm622_vm4 = vcmask 23552  }
 0x19b   :  { %v549_v32 = vrot.slane %v540_v23, %v8307_v9  ;;  %v545_v38 = vrot.slane %v540_v23, %v8305_v7  ;;  %v553_v44 = vrot.slane %v540_v23, %v8312_v13  ;;  %v557_v49 = vrot.slane %v540_v23, %v8310_v12  ;;  %s7968_s19 = smov 7   ;;  %s7969_s24 = smov 121  }
 0x19c   :  { %571 = vrot.lane.b32.xlu1 %v519_v2, %s7955_s11  ;;  %v1131_v53 = vrot.slane %v1126_v41, %v8305_v7  ;;  %v1135_v54 = vrot.slane %v1126_v41, %v8307_v9  ;;  %vm830_vm5 = vcmask 121856   ;;  %v849_v58 = vrot.slane %v8329_v45, %v8307_v9  ;;  %s7971_s10 = smov 119  }
 0x19d   :  { %v1139_v61 = vrot.slane %v1126_v41, %v8312_v13  ;;  %v1143_v62 = vrot.slane %v1126_v41, %v8310_v12  ;;  %v845_v8 = vrot.slane %v8329_v45, %v8305_v7  ;;  %v853_v18 = vrot.slane %v8329_v45, %v8312_v13 }
 0x19e   :  { %576 = vrot.lane.b32.xlu0 %v524_v3, %s7955_s11  ;;  %v857_v23 = vrot.slane %v8329_v45, %v8310_v12  ;;  %vm982_vm6 = vcmask 7168   ;;  %vm1271_vm7 = vcmask 1039360   ;;  %vm1423_vm8 = vcmask 924672  }
 0x19f   :  { %v1145_v19 = vcombine.low %v1139_v61, %v1143_v62  ;;  %vm1575_vm9 = vcmask 916480   ;;  %vm1727_vm10 = vcmask 908288   ;;  %vm2043_vm15 = vcmask 1043456  }
 0x1a0   :  { %578 = vrot.lane.b32.xlu1 %v8247_v1, %s7955_s11  ;;  %vm2039_vm1 = vcmask 64512  }
 0x1a2   :  { %525 = vrot.lane.b32.xlu0 %v8244_v0, %s7957_s15 }
 0x1a4   :  { %527 = vrot.lane.b32.xlu1 %v524_v3, %s7957_s15 }
 0x1a6   :  { %520 = vrot.lane.b32.xlu0 %v519_v2, %s7957_s15 }
 0x1a8   :  { %529 = vrot.lane.b32.xlu1 %v8247_v1, %s7957_s15 }
 0x1aa   :  { %824 = vrot.lane.b32.xlu0 %v8244_v0, %s7958_s13 }
 0x1ac   :  { %826 = vrot.lane.b32.xlu1 %v524_v3, %s7958_s13 }
 0x1ae   :  { %821 = vrot.lane.b32.xlu0 %v519_v2, %s7958_s13 }
 0x1b0   :  { %828 = vrot.lane.b32.xlu1 %v8247_v1, %s7958_s13 }
 0x1b2   :  { %976 = vrot.lane.b32.xlu0 %v8244_v0, %s7959_s22 }
 0x1b4   :  { %978 = vrot.lane.b32.xlu1 %v524_v3, %s7959_s22 }
 0x1b6   :  { %973 = vrot.lane.b32.xlu0 %v519_v2, %s7959_s22 }
 0x1b8   :  { %980 = vrot.lane.b32.xlu1 %v8247_v1, %s7959_s22 }
 0x1ba   :  { %1265 = vrot.lane.b32.xlu0 %v524_v3, %s7960_s5 }
 0x1bc   :  { %1267 = vrot.lane.b32.xlu1 %v8247_v1, %s7960_s5 }
 0x1be   :  { %1263 = vrot.lane.b32.xlu0 %v8244_v0, %s7960_s5 }
 0x1c0   :  { %1269 = vrot.lane.b32.xlu1 %v519_v2, %s7960_s5 }
 0x1c2   :  { %1417 = vrot.lane.b32.xlu0 %v524_v3, %s7961_s6 }
 0x1c4   :  { %1419 = vrot.lane.b32.xlu1 %v8247_v1, %s7961_s6 }
 0x1c6   :  { %1415 = vrot.lane.b32.xlu0 %v8244_v0, %s7961_s6 }
 0x1c8   :  { %1421 = vrot.lane.b32.xlu1 %v519_v2, %s7961_s6 }
 0x1ca   :  { %1569 = vrot.lane.b32.xlu0 %v524_v3, %s7962_s26 }
 0x1cc   :  { %1571 = vrot.lane.b32.xlu1 %v8247_v1, %s7962_s26 }
 0x1ce   :  { %1567 = vrot.lane.b32.xlu0 %v8244_v0, %s7962_s26 }
 0x1d0   :  { %1573 = vrot.lane.b32.xlu1 %v519_v2, %s7962_s26 }
 0x1d2   :  { %1721 = vrot.lane.b32.xlu0 %v524_v3, %s7963_s28 }
 0x1d4   :  { %1723 = vrot.lane.b32.xlu1 %v8247_v1, %s7963_s28 }
 0x1d6   :  { %1719 = vrot.lane.b32.xlu0 %v8244_v0, %s7963_s28 }
 0x1d8   :  { %1725 = vrot.lane.b32.xlu1 %v519_v2, %s7963_s28 }
 0x20c   :  { %v575_v10 = vpop.permute.xlu0 %574 }
 0x20e   :  { %v572_v14 = vpop.permute.xlu1 %571 }
 0x20f   :  { %v588_v16 = vsel %vm580_vm0, %v572_v14, %v575_v10 }
 0x210   :  { %v577_v17 = vpop.permute.xlu0 %576  ;;  %v612_v20 = vmul.f32 %v595_v11, %v588_v16 }
 0x211   :  { %v581_v24 = vsel %vm580_vm0, %v575_v10, %v577_v17  ;;  %v1144_v10 = vcombine.low %v1131_v53, %v1135_v54  ;;  %v1282_v54 = vld [vmem:[#allocation7 + $0x5] ss:$8 sm:$0xf] }
 0x212   :  { %v579_v25 = vpop.permute.xlu1 %578  ;;  %v613_v26 = vmul.f32 %v599_v15, %v581_v24  ;;  %v618_v29 = vpack.c.bf16 %v612_v20, %v612_v20 }
 0x213   :  { %v582_v27 = vsel %vm580_vm0, %v577_v17, %v579_v25  ;;  %v583_v30 = vsel %vm580_vm0, %v579_v25, %v572_v14  ;;  %v992_v25 = vld [vmem:[#allocation7 + $0x3] ss:$8 sm:$0xf] }
 0x214   :  { %v526_v31 = vpop.permute.xlu0 %525  ;;  %v619_v33 = vpack.c.bf16 %v613_v26, %v613_v26  ;;  %v615_v34 = vmul.f32 %v607_v21, %v583_v30  ;;  %v614_v35 = vmul.f32 %v603_v22, %v582_v27  ;;  %v631_v43 = vand.u32 %v8320_v28, %v618_v29  ;;  %v566_v27 = vld [vmem:[#allocation2] sm:$0xf] }
 0x215   :  { %v8360_v29 = vmul.f32 %v1144_v10, %v8244_v0  ;;  %v997_v41 = vrot.slane %v992_v25, %v8305_v7 }
 0x216   :  { %v528_v36 = vpop.permute.xlu1 %527  ;;  %v634_v37 = vand.u32 %v8320_v28, %v619_v33  ;;  %v621_v39 = vpack.c.bf16 %v615_v34, %v615_v34  ;;  %v620_v40 = vpack.c.bf16 %v614_v35, %v614_v35  ;;  %v1001_v35 = vrot.slane %v992_v25, %v8307_v9 }
 0x217   :  { %v532_v42 = vsel %vm531_vm3, %v526_v31, %v528_v36 }
 0x218   :  { %v563_v46 = vmul.f32 %v549_v32, %v532_v42  ;;  %656 = vmatprep.subr.bf16.mxu0 %v634_v37  ;;  %v521_v47 = vpop.permute.xlu0 %520  ;;  %v640_v48 = vand.u32 %v8320_v28, %v621_v39  ;;  %v637_v50 = vand.u32 %v8320_v28, %v620_v40  ;;  %v1154_v42 = vcombine.high %v8360_v29, %v8360_v29 }
 0x219   :  { %v539_v51 = vsel %vm531_vm3, %v521_v47, %v526_v31  ;;  %657 = vmatpush1.bf16.msra.mxu0 %v631_v43 }
 0x21a   :  { %v568_v55 = vpack.c.bf16 %v563_v46, %v563_v46  ;;  %v562_v56 = vmul.f32 %v545_v38, %v539_v51  ;;  %697 = vmatprep.subr.bf16.mxu1 %v640_v48  ;;  %v530_v57 = vpop.permute.xlu1 %529 }
 0x21b   :  { %v533_v59 = vsel %vm531_vm3, %v528_v36, %v530_v57  ;;  %v534_v60 = vsel %vm531_vm3, %v530_v57, %v521_v47  ;;  %698 = vmatpush1.bf16.msra.mxu1 %v637_v50  ;;  %v8366_v36 = vmul.f32 %v1145_v19, %v8247_v1  ;;  %v1005_v47 = vrot.slane %v992_v25, %v8312_v13 }
 0x21c   :  { %v567_v63 = vpack.c.bf16 %v562_v56, %v562_v56  ;;  %v564_v2 = vmul.f32 %v553_v44, %v533_v59  ;;  %v565_v3 = vmul.f32 %v557_v49, %v534_v60  ;;  %6721 = vmatmul.mubr.msk.bf16.vlgmr.msra.gmra.mxu0 %vm622_vm4, %v617_v52  ;;  %v825_v5 = vpop.permute.xlu0 %824  ;;  %v731_v6 = vand.u32 %v8320_v28, %v568_v55  ;;  %v867_v56 = vld [vmem:[#allocation2 + $0x8] sm:$0xf] }
 0x21d   :  { %771 = vmatprep.mubr.bf16.mxu0 %v9513_v4  ;;  %v1155_v48 = vcombine.high %v8366_v36, %v8366_v36  ;;  %v1159_v57 = vpack.c.bf16 %v1154_v42, %v1154_v42 }
 0x21e   :  { %v728_v11 = vand.u32 %v8320_v28, %v567_v63  ;;  %v569_v14 = vpack.c.bf16 %v564_v2, %v564_v2  ;;  %v570_v15 = vpack.c.bf16 %v565_v3, %v565_v3  ;;  %v827_v16 = vpop.permute.xlu1 %826  ;;  %6722 = vmatmul.mubr.msk.bf16.vlgmr.msra.gmra.mxu1 %vm622_vm4, %v617_v52  ;;  %753 = vmatprep.subr.bf16.mxu0 %v731_v6 }
 0x21f   :  { %v831_v17 = vsel %vm830_vm5, %v825_v5, %v827_v16  ;;  %812 = vmatprep.mubr.bf16.mxu1 %v9513_v4  ;;  %v1009_v52 = vrot.slane %v992_v25, %v8310_v12  ;;  %v1291_v63 = vrot.slane %v1282_v54, %v8307_v9  ;;  %v1161_v2 = vpack.c.bf16 %v1155_v48, %v1155_v48 }
 0x220   :  { %v734_v20 = vand.u32 %v8320_v28, %v569_v14  ;;  %v863_v21 = vmul.f32 %v849_v58, %v831_v17  ;;  %754 = vmatpush1.bf16.msra.mxu0 %v728_v11  ;;  %v822_v22 = vpop.permute.xlu0 %821  ;;  %v737_v24 = vand.u32 %v8320_v28, %v570_v15  ;;  %v1287_v11 = vrot.slane %v1282_v54, %v8305_v7 }
 0x221   :  { %v838_v26 = vsel %vm830_vm5, %v822_v22, %v825_v5  ;;  %v1169_v14 = vand.u32 %v1159_v57, %v8320_v28  ;;  %v1158_v15 = vpack.c.bf16 %v8360_v29, %v8360_v29  ;;  %v1175_v29 = vand.u32 %v1161_v2, %v8320_v28  ;;  %v1586_v57 = vld [vmem:[#allocation7 + $0x7] ss:$8 sm:$0xf] }
 0x222   :  { %v869_v30 = vpack.c.bf16 %v863_v21, %v863_v21  ;;  %v862_v31 = vmul.f32 %v845_v8, %v838_v26  ;;  %v829_v32 = vpop.permute.xlu1 %828  ;;  %794 = vmatprep.subr.bf16.mxu1 %v737_v24  ;;  %v1295_v21 = vrot.slane %v1282_v54, %v8312_v13 }
 0x223   :  { %v832_v33 = vsel %vm830_vm5, %v827_v16, %v829_v32  ;;  %v833_v34 = vsel %vm830_vm5, %v829_v32, %v822_v22  ;;  %795 = vmatpush1.bf16.msra.mxu1 %v734_v20  ;;  %v1299_v22 = vrot.slane %v1282_v54, %v8310_v12  ;;  %v1166_v32 = vand.u32 %v1158_v15, %v8320_v28 }
 0x224   :  { %v868_v37 = vpack.c.bf16 %v862_v31, %v862_v31  ;;  %v864_v38 = vmul.f32 %v853_v18, %v832_v33  ;;  %v865_v39 = vmul.f32 %v857_v23, %v833_v34  ;;  %6723 = vmatmul.mubr.msk.bf16.vlgmr.msra.gmra.mxu0 %vm622_vm4, %v566_v27  ;;  %v977_v0 = vpop.permute.xlu0 %976  ;;  %v879_v40 = vand.u32 %v869_v30, %v8320_v28  ;;  %v1019_v30 = vld [vmem:[#allocation2 + $0xc] sm:$0xf]  ;;  %v1434_v33 = vld [vmem:[#allocation7 + $0x6] ss:$8 sm:$0xf] }
 0x225   :  { %919 = vmatprep.mubr.bf16.mxu0 %v9513_v4  ;;  %v1160_v23 = vpack.c.bf16 %v8366_v36, %v8366_v36  ;;  %v1443_v42 = vrot.slane %v1434_v33, %v8307_v9  ;;  %v1591_v15 = vrot.slane %v1586_v57, %v8305_v7 }
 0x226   :  { %v876_v43 = vand.u32 %v868_v37, %v8320_v28  ;;  %v870_v44 = vpack.c.bf16 %v864_v38, %v864_v38  ;;  %v871_v1 = vpack.c.bf16 %v865_v39, %v865_v39  ;;  %v979_v45 = vpop.permute.xlu1 %978  ;;  %6724 = vmatmul.mubr.msk.bf16.vlgmr.msra.gmra.mxu1 %vm622_vm4, %v566_v27  ;;  %901 = vmatprep.subr.bf16.mxu0 %v879_v40 }
 0x227   :  { %v983_v46 = vsel %vm982_vm6, %v977_v0, %v979_v45  ;;  %960 = vmatprep.mubr.bf16.mxu1 %v9513_v4  ;;  %v1172_v39 = vand.u32 %v1160_v23, %v8320_v28 }
 0x228   :  { %v882_v49 = vand.u32 %v870_v44, %v8320_v28  ;;  %v1015_v50 = vmul.f32 %v1001_v35, %v983_v46  ;;  %902 = vmatpush1.bf16.msra.mxu0 %v876_v43  ;;  %v974_v51 = vpop.permute.xlu0 %973  ;;  %v885_v53 = vand.u32 %v871_v1, %v8320_v28  ;;  %v1439_v46 = vrot.slane %v1434_v33, %v8305_v7 }
 0x229   :  { %v990_v55 = vsel %vm982_vm6, %v974_v51, %v977_v0 }
 0x22a   :  { %v1021_v58 = vpack.c.bf16 %v1015_v50, %v1015_v50  ;;  %v1014_v59 = vmul.f32 %v997_v41, %v990_v55  ;;  %v981_v60 = vpop.permute.xlu1 %980  ;;  %942 = vmatprep.subr.bf16.mxu1 %v885_v53  ;;  %v1151_v55 = vld [vmem:[#allocation2 + $0x10] sm:$0xf] }
 0x22b   :  { %v984_v61 = vsel %vm982_vm6, %v979_v45, %v981_v60  ;;  %v985_v62 = vsel %vm982_vm6, %v981_v60, %v974_v51  ;;  %943 = vmatpush1.bf16.msra.mxu1 %v882_v49  ;;  %v1447_v51 = vrot.slane %v1434_v33, %v8312_v13 }
 0x22c   :  { %v1020_v3 = vpack.c.bf16 %v1014_v59, %v1014_v59  ;;  %v1016_v5 = vmul.f32 %v1005_v47, %v984_v61  ;;  %v1017_v6 = vmul.f32 %v1009_v52, %v985_v62  ;;  %6725 = vmatmul.mubr.msk.bf16.vlgmr.msra.gmra.mxu0 %vm622_vm4, %v867_v56  ;;  %v1031_v8 = vand.u32 %v1021_v58, %v8320_v28  ;;  %v1266_v10 = vpop.permute.xlu0 %1265 }
 0x22d   :  { %1071 = vmatprep.mubr.bf16.mxu0 %v9513_v4  ;;  %v1451_v52 = vrot.slane %v1434_v33, %v8310_v12 }
 0x22e   :  { %v1028_v16 = vand.u32 %v1020_v3, %v8320_v28  ;;  %v1022_v17 = vpack.c.bf16 %v1016_v5, %v1016_v5  ;;  %v1023_v18 = vpack.c.bf16 %v1017_v6, %v1017_v6  ;;  %6726 = vmatmul.mubr.msk.bf16.vlgmr.msra.gmra.mxu1 %vm622_vm4, %v867_v56  ;;  %1053 = vmatprep.subr.bf16.mxu0 %v1031_v8  ;;  %v1268_v19 = vpop.permute.xlu1 %1267 }
 0x22f   :  { %v1273_v20 = vsel %vm1271_vm7, %v1266_v10, %v1268_v19  ;;  %1112 = vmatprep.mubr.bf16.mxu1 %v9513_v4  ;;  %v1595_v6 = vrot.slane %v1586_v57, %v8307_v9 }
 0x230   :  { %v1034_v24 = vand.u32 %v1022_v17, %v8320_v28  ;;  %1054 = vmatpush1.bf16.msra.mxu0 %v1028_v16  ;;  %v1037_v25 = vand.u32 %v1023_v18, %v8320_v28  ;;  %v1305_v26 = vmul.f32 %v1291_v63, %v1273_v20  ;;  %v1264_v27 = vpop.permute.xlu0 %1263  ;;  %v1599_v20 = vrot.slane %v1586_v57, %v8312_v13 }
 0x231   :  { %v1272_v31 = vsel %vm1271_vm7, %v1264_v27, %v1266_v10  ;;  %1191 = vmatprep.subr.bf16.mxu0 %v1169_v14 }
 0x232   :  { %1094 = vmatprep.subr.bf16.mxu1 %v1037_v25  ;;  %v1311_v34 = vpack.c.bf16 %v1305_v26, %v1305_v26  ;;  %v1304_v35 = vmul.f32 %v1287_v11, %v1272_v31  ;;  %v1270_v36 = vpop.permute.xlu1 %1269  ;;  %v1738_v26 = vld [vmem:[#allocation7 + $0x20] ss:$8 sm:$0xf] }
 0x233   :  { %1095 = vmatpush1.bf16.msra.mxu1 %v1034_v24  ;;  %v1274_v37 = vsel %vm1271_vm7, %v1268_v19, %v1270_v36  ;;  %v1280_v38 = vsel %vm1271_vm7, %v1270_v36, %v1264_v27  ;;  %v1309_v24 = vld [vmem:[#allocation2 + $0x14] sm:$0xf] }
 0x234   :  { %6727 = vmatmul.mubr.msk.bf16.vlgmr.msra.gmra.mxu0 %vm622_vm4, %v1019_v30  ;;  %v1306_v0 = vmul.f32 %v1295_v21, %v1274_v37  ;;  %v1307_v40 = vmul.f32 %v1299_v22, %v1280_v38  ;;  %v1418_v41 = vpop.permute.xlu0 %1417  ;;  %1232 = vmatprep.subr.bf16.mxu1 %v1175_v29  ;;  %v1310_v43 = vpack.c.bf16 %v1304_v35, %v1304_v35 }
 0x235   :  { %1192 = vmatpush1.bf16.msra.mxu0 %v1166_v32  ;;  %1209 = vmatprep.mubr.bf16.mxu0 %v9513_v4  ;;  %v1321_v44 = vand.u32 %v1311_v34, %v8320_v28  ;;  %v1603_v21 = vrot.slane %v1586_v57, %v8310_v12  ;;  %v1747_v37 = vrot.slane %v1738_v26, %v8307_v9 }
 0x236   :  { %6728 = vmatmul.mubr.msk.bf16.vlgmr.msra.gmra.mxu1 %vm622_vm4, %v1019_v30  ;;  %v1313_v1 = vpack.c.bf16 %v1307_v40, %v1307_v40  ;;  %v1420_v45 = vpop.permute.xlu1 %1419  ;;  %v1312_v47 = vpack.c.bf16 %v1306_v0, %v1306_v0  ;;  %v1318_v54 = vand.u32 %v1310_v43, %v8320_v28 }
 0x237   :  { %v1425_v48 = vsel %vm1423_vm8, %v1418_v41, %v1420_v45  ;;  %1233 = vmatpush1.bf16.msra.mxu1 %v1172_v39  ;;  %1343 = vmatprep.subr.bf16.mxu0 %v1321_v44 }
 0x238   :  { %v1457_v49 = vmul.f32 %v1443_v42, %v1425_v48  ;;  %1250 = vmatprep.mubr.bf16.mxu1 %v9513_v4  ;;  %v1416_v50 = vpop.permute.xlu0 %1415  ;;  %v1327_v53 = vand.u32 %v1313_v1, %v8320_v28  ;;  %v1324_v61 = vand.u32 %v1312_v47, %v8320_v28 }
 0x239   :  { %v1424_v56 = vsel %vm1423_vm8, %v1416_v50, %v1418_v41  ;;  %v1743_v41 = vrot.slane %v1738_v26, %v8305_v7 }
 0x23a   :  { %v1463_v58 = vpack.c.bf16 %v1457_v49, %v1457_v49  ;;  %v1456_v59 = vmul.f32 %v1439_v46, %v1424_v56  ;;  %v1422_v60 = vpop.permute.xlu1 %1421  ;;  %1384 = vmatprep.subr.bf16.mxu1 %v1327_v53  ;;  %v1755_v46 = vrot.slane %v1738_v26, %v8310_v12  ;;  %v1461_v49 = vld [vmem:[#allocation2 + $0x18] sm:$0xf] }
 0x23b   :  { %v1426_v62 = vsel %vm1423_vm8, %v1420_v45, %v1422_v60  ;;  %v1432_v63 = vsel %vm1423_vm8, %v1422_v60, %v1416_v50  ;;  %v1751_v45 = vrot.slane %v1738_v26, %v8312_v13 }
 0x23c   :  { %6729 = vmatmul.mubr.msk.bf16.vlgmr.msra.gmra.mxu0 %vm622_vm4, %v1151_v55  ;;  %v1458_v2 = vmul.f32 %v1447_v51, %v1426_v62  ;;  %v1459_v3 = vmul.f32 %v1451_v52, %v1432_v63  ;;  %v1570_v5 = vpop.permute.xlu0 %1569  ;;  %v1473_v8 = vand.u32 %v1463_v58, %v8320_v28  ;;  %v1462_v10 = vpack.c.bf16 %v1456_v59, %v1456_v59 }
 0x23d   :  { %1344 = vmatpush1.bf16.msra.mxu0 %v1318_v54  ;;  %1361 = vmatprep.mubr.bf16.mxu0 %v9513_v4 }
 0x23e   :  { %6730 = vmatmul.mubr.msk.bf16.vlgmr.msra.gmra.mxu1 %vm622_vm4, %v1151_v55  ;;  %v1465_v11 = vpack.c.bf16 %v1459_v3, %v1459_v3  ;;  %v1572_v14 = vpop.permute.xlu1 %1571  ;;  %1495 = vmatprep.subr.bf16.mxu0 %v1473_v8  ;;  %v1464_v16 = vpack.c.bf16 %v1458_v2, %v1458_v2  ;;  %v1470_v23 = vand.u32 %v1462_v10, %v8320_v28  ;;  %v1613_v3 = vld [vmem:[#allocation2 + $0x1c] sm:$0xf] }
 0x23f   :  { %1385 = vmatpush1.bf16.msra.mxu1 %v1324_v61  ;;  %v1577_v17 = vsel %vm1575_vm9, %v1570_v5, %v1572_v14  ;;  %1402 = vmatprep.mubr.bf16.mxu1 %v9513_v4 }
 0x240   :  { %v1609_v18 = vmul.f32 %v1595_v6, %v1577_v17  ;;  %v1568_v19 = vpop.permute.xlu0 %1567  ;;  %v1479_v22 = vand.u32 %v1465_v11, %v8320_v28  ;;  %v1476_v31 = vand.u32 %v1464_v16, %v8320_v28  ;;  %v1765_v6 = vld [vmem:[#allocation2 + $0x20] sm:$0xf] }
 0x241   :  { %v1576_v25 = vsel %vm1575_vm9, %v1568_v19, %v1570_v5 }
 0x242   :  { %v1615_v27 = vpack.c.bf16 %v1609_v18, %v1609_v18  ;;  %v1608_v29 = vmul.f32 %v1591_v15, %v1576_v25  ;;  %v1574_v30 = vpop.permute.xlu1 %1573  ;;  %1536 = vmatprep.subr.bf16.mxu1 %v1479_v22 }
 0x243   :  { %v1578_v32 = vsel %vm1575_vm9, %v1572_v14, %v1574_v30  ;;  %v1584_v33 = vsel %vm1575_vm9, %v1574_v30, %v1568_v19 }
 0x244   :  { %6731 = vmatmul.mubr.msk.bf16.vlgmr.msra.gmra.mxu0 %vm622_vm4, %v1309_v24  ;;  %v1610_v34 = vmul.f32 %v1599_v20, %v1578_v32  ;;  %v1611_v35 = vmul.f32 %v1603_v21, %v1584_v33  ;;  %v1722_v36 = vpop.permute.xlu0 %1721  ;;  %v1625_v38 = vand.u32 %v1615_v27, %v8320_v28  ;;  %v1614_v39 = vpack.c.bf16 %v1608_v29, %v1608_v29 }
 0x245   :  { %1496 = vmatpush1.bf16.msra.mxu0 %v1470_v23  ;;  %1513 = vmatprep.mubr.bf16.mxu0 %v9513_v4 }
 0x246   :  { %6732 = vmatmul.mubr.msk.bf16.vlgmr.msra.gmra.mxu1 %vm622_vm4, %v1309_v24  ;;  %v1617_v0 = vpack.c.bf16 %v1611_v35, %v1611_v35  ;;  %v1724_v40 = vpop.permute.xlu1 %1723  ;;  %1647 = vmatprep.subr.bf16.mxu0 %v1625_v38  ;;  %v1616_v42 = vpack.c.bf16 %v1610_v34, %v1610_v34  ;;  %v1622_v48 = vand.u32 %v1614_v39, %v8320_v28 }
 0x247   :  { %1537 = vmatpush1.bf16.msra.mxu1 %v1476_v31  ;;  %v1729_v43 = vsel %vm1727_vm10, %v1722_v36, %v1724_v40  ;;  %1554 = vmatprep.mubr.bf16.mxu1 %v9513_v4 }
 0x248   :  { %v1761_v44 = vmul.f32 %v1747_v37, %v1729_v43  ;;  %v1720_v1 = vpop.permute.xlu0 %1719  ;;  %v1631_v47 = vand.u32 %v1617_v0, %v8320_v28  ;;  %v1628_v54 = vand.u32 %v1616_v42, %v8320_v28 }
 0x249   :  { %v1728_v50 = vsel %vm1727_vm10, %v1720_v1, %v1722_v36 }
 0x24a   :  { %v1767_v51 = vpack.c.bf16 %v1761_v44, %v1761_v44  ;;  %v1760_v52 = vmul.f32 %v1743_v41, %v1728_v50  ;;  %v1726_v53 = vpop.permute.xlu1 %1725  ;;  %1688 = vmatprep.subr.bf16.mxu1 %v1631_v47 }
 0x24b   :  { %v1730_v55 = vsel %vm1727_vm10, %v1724_v40, %v1726_v53  ;;  %v1736_v56 = vsel %vm1727_vm10, %v1726_v53, %v1720_v1 }
 0x24c   :  { %6733 = vmatmul.mubr.msk.bf16.vlgmr.msra.gmra.mxu0 %vm622_vm4, %v1461_v49  ;;  %v1762_v57 = vmul.f32 %v1751_v45, %v1730_v55  ;;  %v1763_v58 = vmul.f32 %v1755_v46, %v1736_v56  ;;  %v1777_v59 = vand.u32 %v1767_v51, %v8320_v28  ;;  %v1766_v60 = vpack.c.bf16 %v1760_v52, %v1760_v52 }
 0x24d   :  { %1648 = vmatpush1.bf16.msra.mxu0 %v1622_v48  ;;  %1665 = vmatprep.mubr.bf16.mxu0 %v9513_v4 }
 0x24e   :  { %6734 = vmatmul.mubr.msk.bf16.vlgmr.msra.gmra.mxu1 %vm622_vm4, %v1461_v49  ;;  %v1769_v61 = vpack.c.bf16 %v1763_v58, %v1763_v58  ;;  %1799 = vmatprep.subr.bf16.mxu0 %v1777_v59  ;;  %v1768_v62 = vpack.c.bf16 %v1762_v57, %v1762_v57  ;;  %v1774_v2 = vand.u32 %v1766_v60, %v8320_v28 }
 0x24f   :  { %1689 = vmatpush1.bf16.msra.mxu1 %v1628_v54  ;;  %1706 = vmatprep.mubr.bf16.mxu1 %v9513_v4 }
 0x250   :  { %v1783_v63 = vand.u32 %v1769_v61, %v8320_v28  ;;  %v1780_v5 = vand.u32 %v1768_v62, %v8320_v28 }
 0x252   :  { %1840 = vmatprep.subr.bf16.mxu1 %v1783_v63 }
 0x254   :  { %6735 = vmatmul.mubr.msk.bf16.vlgmr.msra.gmra.mxu0 %vm622_vm4, %v1613_v3 }
 0x255   :  { %1800 = vmatpush1.bf16.msra.mxu0 %v1774_v2  ;;  %1817 = vmatprep.mubr.bf16.mxu0 %v9513_v4 }
 0x256   :  { %6736 = vmatmul.mubr.msk.bf16.vlgmr.msra.gmra.mxu1 %vm622_vm4, %v1613_v3 }
 0x257   :  { %1841 = vmatpush1.bf16.msra.mxu1 %v1780_v5  ;;  %1858 = vmatprep.mubr.bf16.mxu1 %v9513_v4 }
 0x25c   :  { %6737 = vmatmul.mubr.msk.bf16.vlgmr.msra.gmra.mxu0 %vm622_vm4, %v1765_v6 }
 0x25d   :  { %2088 = vmatprep.mubr.bf16.mxu0 %v9513_v4 }
 0x25e   :  { %6738 = vmatmul.mubr.msk.bf16.vlgmr.msra.gmra.mxu1 %vm622_vm4, %v1765_v6  ;;  %vm7966_vm4 = vmmov 0  }
 0x25f   :  { %2131 = vmatprep.mubr.bf16.mxu1 %v9513_v4 }
 0x2dc   :  { %v676_v28 = vpop.f32.mrf.mxu0 }
 0x2de   :  { %v678_v8 = vpop.f32.mrf.mxu0  ;;  %v717_v10 = vpop.f32.mrf.mxu1 }
 0x2e0   :  { %v680_v11 = vpop.f32.mrf.mxu0  ;;  %v719_v14 = vpop.f32.mrf.mxu1 }
 0x2e2   :  { %v681_v15 = vpop.f32.mrf.mxu0  ;;  %v721_v16 = vpop.f32.mrf.mxu1 }
 0x2e4   :  { %v722_v17 = vpop.f32.mrf.mxu1  ;;  %v773_v18 = vpop.f32.mrf.mxu0 }
 0x2e5   :  { %v774_v62 = vadd.f32 %v773_v18, %v676_v28 }
 0x2e6   :  { %v775_v19 = vpop.f32.mrf.mxu0  ;;  %v814_v20 = vpop.f32.mrf.mxu1 }
 0x2e7   :  { %v776_v63 = vadd.f32 %v775_v19, %v678_v8  ;;  %v815_v5 = vadd.f32 %v814_v20, %v717_v10 }
 0x2e8   :  { %v777_v21 = vpop.f32.mrf.mxu0  ;;  %v816_v22 = vpop.f32.mrf.mxu1 }
 0x2e9   :  { %v817_v17 = vadd.f32 %v816_v22, %v719_v14 }
 0x2ea   :  { %v778_v23 = vpop.f32.mrf.mxu0  ;;  %v818_v24 = vpop.f32.mrf.mxu1 }
 0x2ec   :  { %v819_v25 = vpop.f32.mrf.mxu1  ;;  %v921_v26 = vpop.f32.mrf.mxu0 }
 0x2ed   :  { %v969_v6 = vadd.f32 %v921_v26, %v774_v62 }
 0x2ee   :  { %v923_v27 = vpop.f32.mrf.mxu0  ;;  %v962_v29 = vpop.f32.mrf.mxu1 }
 0x2ef   :  { %v970_v11 = vadd.f32 %v923_v27, %v776_v63  ;;  %v971_v21 = vadd.f32 %v962_v29, %v815_v5 }
 0x2f0   :  { %v925_v30 = vpop.f32.mrf.mxu0  ;;  %v964_v31 = vpop.f32.mrf.mxu1 }
 0x2f2   :  { %v926_v32 = vpop.f32.mrf.mxu0  ;;  %v966_v33 = vpop.f32.mrf.mxu1 }
 0x2f3   :  { %v972_v32 = vadd.f32 %v964_v31, %v817_v17  ;;  %v1871_v17 = vld [vmem:[#allocation6] sm:$0xff] }
 0x2f4   :  { %v967_v34 = vpop.f32.mrf.mxu1  ;;  %v1073_v35 = vpop.f32.mrf.mxu0 }
 0x2f5   :  { %v1121_v23 = vadd.f32 %v1073_v35, %v969_v6 }
 0x2f6   :  { %v1075_v36 = vpop.f32.mrf.mxu0  ;;  %v1114_v37 = vpop.f32.mrf.mxu1 }
 0x2f7   :  { %v1122_v24 = vadd.f32 %v1075_v36, %v970_v11  ;;  %v1123_v33 = vadd.f32 %v1114_v37, %v971_v21 }
 0x2f8   :  { %v1077_v38 = vpop.f32.mrf.mxu0  ;;  %v1116_v39 = vpop.f32.mrf.mxu1 }
 0x2f9   :  { %v1124_v8 = vadd.f32 %v1116_v39, %v972_v32 }
 0x2fa   :  { %v1078_v0 = vpop.f32.mrf.mxu0  ;;  %v1118_v40 = vpop.f32.mrf.mxu1 }
 0x2fc   :  { %v1119_v41 = vpop.f32.mrf.mxu1  ;;  %v1211_v42 = vpop.f32.mrf.mxu0 }
 0x2fd   :  { %v1259_v34 = vadd.f32 %v1211_v42, %v1121_v23 }
 0x2fe   :  { %v1213_v43 = vpop.f32.mrf.mxu0  ;;  %v1252_v44 = vpop.f32.mrf.mxu1 }
 0x2ff   :  { %v1260_v38 = vadd.f32 %v1213_v43, %v1122_v24  ;;  %v1261_v18 = vadd.f32 %v1252_v44, %v1123_v33 }
 0x300   :  { %v1215_v1 = vpop.f32.mrf.mxu0  ;;  %v1254_v45 = vpop.f32.mrf.mxu1 }
 0x301   :  { %v1262_v27 = vadd.f32 %v1254_v45, %v1124_v8 }
 0x302   :  { %v1216_v46 = vpop.f32.mrf.mxu0  ;;  %v1256_v47 = vpop.f32.mrf.mxu1 }
 0x304   :  { %v1257_v48 = vpop.f32.mrf.mxu1  ;;  %v1363_v49 = vpop.f32.mrf.mxu0 }
 0x305   :  { %v1411_v19 = vadd.f32 %v1363_v49, %v1259_v34 }
 0x306   :  { %v1365_v50 = vpop.f32.mrf.mxu0  ;;  %v1404_v51 = vpop.f32.mrf.mxu1 }
 0x307   :  { %v1412_v10 = vadd.f32 %v1365_v50, %v1260_v38  ;;  %v1413_v40 = vadd.f32 %v1404_v51, %v1261_v18 }
 0x308   :  { %v1367_v52 = vpop.f32.mrf.mxu0  ;;  %v1406_v53 = vpop.f32.mrf.mxu1 }
 0x309   :  { %v1414_v36 = vadd.f32 %v1406_v53, %v1262_v27 }
 0x30a   :  { %v1368_v54 = vpop.f32.mrf.mxu0  ;;  %v1408_v55 = vpop.f32.mrf.mxu1 }
 0x30c   :  { %v1409_v56 = vpop.f32.mrf.mxu1  ;;  %v1515_v57 = vpop.f32.mrf.mxu0 }
 0x30d   :  { %v1563_v14 = vadd.f32 %v1515_v57, %v1411_v19  ;;  %v1872_v57 = vld [vmem:[#allocation4] sm:$0xff] }
 0x30e   :  { %v1517_v58 = vpop.f32.mrf.mxu0  ;;  %v1556_v59 = vpop.f32.mrf.mxu1 }
 0x30f   :  { %v1564_v22 = vadd.f32 %v1517_v58, %v1412_v10  ;;  %v1565_v41 = vadd.f32 %v1556_v59, %v1413_v40 }
 0x310   :  { %v1519_v60 = vpop.f32.mrf.mxu0  ;;  %v1558_v61 = vpop.f32.mrf.mxu1 }
 0x311   :  { %v1566_v1 = vadd.f32 %v1558_v61, %v1414_v36 }
 0x312   :  { %v1520_v2 = vpop.f32.mrf.mxu0  ;;  %v1560_v3 = vpop.f32.mrf.mxu1 }
 0x314   :  { %v1561_v15 = vpop.f32.mrf.mxu1  ;;  %v1667_v16 = vpop.f32.mrf.mxu0 }
 0x315   :  { %v1715_v31 = vadd.f32 %v1667_v16, %v1563_v14 }
 0x316   :  { %v1669_v25 = vpop.f32.mrf.mxu0  ;;  %v1708_v30 = vpop.f32.mrf.mxu1 }
 0x317   :  { %v1716_v37 = vadd.f32 %v1669_v25, %v1564_v22  ;;  %v1717_v46 = vadd.f32 %v1708_v30, %v1565_v41 }
 0x318   :  { %v1671_v0 = vpop.f32.mrf.mxu0  ;;  %v1710_v28 = vpop.f32.mrf.mxu1 }
 0x319   :  { %v1718_v49 = vadd.f32 %v1710_v28, %v1566_v1 }
 0x31a   :  { %v1672_v20 = vpop.f32.mrf.mxu0  ;;  %v1712_v26 = vpop.f32.mrf.mxu1 }
 0x31c   :  { %v1713_v29 = vpop.f32.mrf.mxu1  ;;  %v1819_v35 = vpop.f32.mrf.mxu0 }
 0x31d   :  { %v1867_v39 = vadd.f32 %v1819_v35, %v1715_v31 }
 0x31e   :  { %v1821_v42 = vpop.f32.mrf.mxu0  ;;  %v1860_v43 = vpop.f32.mrf.mxu1 }
 0x31f   :  { %v1868_v44 = vadd.f32 %v1821_v42, %v1716_v37  ;;  %v1869_v45 = vadd.f32 %v1860_v43, %v1717_v46  ;;  %v2001_v42 = vld [vmem:[#allocation13 + $0x1] ss:$8 sm:$0xf] }
 0x320   :  { %v1823_v47 = vpop.f32.mrf.mxu0  ;;  %v1862_v48 = vpop.f32.mrf.mxu1  ;;  %v2006_v1 = vrot.slane %v2001_v42, %v8305_v7 }
 0x321   :  { %v1873_v50 = vadd.f32 %v1868_v44, %v1867_v39  ;;  %v1870_v55 = vadd.f32 %v1862_v48, %v1718_v49  ;;  %v2010_v48 = vrot.slane %v2001_v42, %v8307_v9 }
 0x322   :  { %v1824_v51 = vpop.f32.mrf.mxu0  ;;  %v1864_v52 = vpop.f32.mrf.mxu1 }
 0x323   :  { %v1874_v54 = vadd.f32 %v1873_v50, %v1869_v45 }
 0x324   :  { %v1865_v56 = vpop.f32.mrf.mxu1 }
 0x325   :  { %v1875_v53 = vadd.f32 %v1874_v54, %v1870_v55  ;;  %v2014_v54 = vrot.slane %v2001_v42, %v8312_v13 }
 0x327   :  { %1876 = vadd.xlane.f32.xlu0 %v1875_v53 }
 0x33d   :  { %1902 = vperm.xlu0 %7134, %v1872_v57  }
 0x3b0   :  { %v1877_v58 = vpop.xlane.xlu0 %1876 }
 0x3b1   :  { %v1879_v59 = vmul.f32 0.001953125, %v1877_v58 }
 0x3b3   :  { %v1880_v60 = vsub.f32 %v1867_v39, %v1879_v59  ;;  %v1881_v61 = vsub.f32 %v1868_v44, %v1879_v59  ;;  %v1882_v62 = vsub.f32 %v1869_v45, %v1879_v59  ;;  %v1883_v63 = vsub.f32 %v1870_v55, %v1879_v59 }
 0x3b4   :  { %v2018_v55 = vrot.slane %v2001_v42, %v8310_v12 }
 0x3b5   :  { %v1884_v2 = vmul.f32 %v1880_v60, %v1880_v60  ;;  %v1885_v3 = vmul.f32 %v1881_v61, %v1881_v61  ;;  %v1886_v5 = vmul.f32 %v1882_v62, %v1882_v62  ;;  %v1887_v11 = vmul.f32 %v1883_v63, %v1883_v63 }
 0x3b7   :  { %v1888_v6 = vadd.f32 %v1885_v3, %v1884_v2  ;;  %v1951_v2 = vld [vmem:[#allocation13] ss:$8 sm:$0xf] }
 0x3b8   :  { %v1903_v30 = vpop.permute.xlu0 %1902 }
 0x3b9   :  { %v1889_v15 = vadd.f32 %v1888_v6, %v1886_v5 }
 0x3bb   :  { %v1890_v16 = vadd.f32 %v1889_v15, %v1887_v11  ;;  %v1956_v15 = vrot.slane %v1951_v2, %v8305_v7 }
 0x3bd   :  { %1891 = vadd.xlane.f32.xlu1 %v1890_v16  ;;  %v1960_v16 = vrot.slane %v1951_v2, %v8307_v9 }
 0x3ce   :  { %1911 = vperm.xlu1 %7135, %v1871_v17  }
 0x446   :  { %v1892_v21 = vpop.xlane.xlu1 %1891 }
 0x447   :  { %v1893_v23 = vmul.f32 0.001953125, %v1892_v21 }
 0x449   :  { %v1894_v24 = vadd.f32 1e-05, %v1893_v23 }
 0x44a   :  { %v1912_v38 = vpop.permute.xlu1 %1911 }
 0x44b   :  { %7176 = vrsqrt.f32 %v1894_v24 }
 0x458   :  { %v7177_v25 = vpop.eup %7176 }
 0x459   :  { %v1896_v32 = vmul.f32 %v7177_v25, %v1880_v60  ;;  %v1897_v33 = vmul.f32 %v7177_v25, %v1881_v61  ;;  %v1899_v34 = vmul.f32 %v7177_v25, %v1883_v63  ;;  %v1898_v10 = vmul.f32 %v7177_v25, %v1882_v62  ;;  %v7138_v63 = vld [vmem:[#allocation9 + $0x8] sm:$0xff]  }
 0x45b   :  { %v1905_v0 = vmul.f32 %v1903_v30, %v1896_v32  ;;  %v1906_v28 = vmul.f32 %v1903_v30, %v1897_v33  ;;  %v1908_v8 = vmul.f32 %v1903_v30, %v1899_v34  ;;  %v1907_v14 = vmul.f32 %v1903_v30, %v1898_v10  ;;  %v2266_v34 = vld [vmem:[#allocation13 + $0x2] ss:$8 sm:$0xf] }
 0x45c   :  { %v1964_v32 = vrot.slane %v1951_v2, %v8312_v13  ;;  %v1968_v33 = vrot.slane %v1951_v2, %v8310_v12 }
 0x45d   :  { %v1915_v18 = vadd.f32 %v1912_v38, %v1906_v28  ;;  %v1917_v19 = vadd.f32 %v1912_v38, %v1908_v8  ;;  %v1914_v20 = vadd.f32 %v1912_v38, %v1905_v0  ;;  %v1916_v35 = vadd.f32 %v1912_v38, %v1907_v14 }
 0x45f   :  { %vm1919_vm11 = vcmp.gt.f32.partialorder %v1915_v18, 0.0  ;;  %vm1921_vm12 = vcmp.gt.f32.partialorder %v1917_v19, 0.0  ;;  %v1923_v26 = vmul.f32 0.1, %v1915_v18  ;;  %v1925_v27 = vmul.f32 0.1, %v1917_v19 }
 0x460   :  { %v1922_v22 = vmul.f32 0.1, %v1914_v20  ;;  %vm1918_vm13 = vcmp.gt.f32.partialorder %v1914_v20, 0.0  ;;  %v1924_v41 = vmul.f32 0.1, %v1916_v35  ;;  %vm1920_vm14 = vcmp.gt.f32.partialorder %v1916_v35, 0.0 }
 0x461   :  { %v8475_v40 = vsel %vm1919_vm11, %v1915_v18, %v1923_v26  ;;  %v8477_v29 = vsel %vm1921_vm12, %v1917_v19, %v1925_v27  ;;  %v2271_v26 = vrot.slane %v2266_v34, %v8305_v7  ;;  %v2275_v27 = vrot.slane %v2266_v34, %v8307_v9 }
 0x462   :  { %9594 = vst [vmem:[#allocation80_spill] sm:$0xff] %v8475_v40  ;;  %9595 = vst [vmem:[#allocation81_spill] sm:$0xff] %v8477_v29  ;;  %1939 = vrot.lane.b32.xlu0 %v8475_v40, %s7957_s15  ;;  %1983 = vrot.lane.b32.xlu1 %v8477_v29, %s7955_s11  ;;  %v8483_v36 = vsel %vm1918_vm13, %v1914_v20, %v1922_v22  ;;  %v8493_v31 = vsel %vm1920_vm14, %v1916_v35, %v1924_v41  ;;  %v7139_v22 = vld [vmem:[#allocation9] sm:$0xff]  }
 0x463   :  { %9596 = vst [vmem:[#allocation82_spill] sm:$0xff] %v8483_v36  ;;  %9597 = vst [vmem:[#allocation83_spill] sm:$0xff] %v8493_v31 }
 0x466   :  { %2248 = vrot.lane.b32.xlu0 %v8477_v29, %s7958_s13  ;;  %1986 = vrot.lane.b32.xlu1 %v8483_v36, %s7955_s11 }
 0x46a   :  { %2253 = vrot.lane.b32.xlu0 %v8475_v40, %s7958_s13  ;;  %1988 = vrot.lane.b32.xlu1 %v8475_v40, %s7955_s11 }
 0x46e   :  { %2413 = vrot.lane.b32.xlu0 %v8477_v29, %s7959_s22  ;;  %1990 = vrot.lane.b32.xlu1 %v8493_v31, %s7955_s11 }
 0x472   :  { %2418 = vrot.lane.b32.xlu0 %v8475_v40, %s7959_s22  ;;  %1931 = vrot.lane.b32.xlu1 %v8477_v29, %s7957_s15 }
 0x476   :  { %2726 = vrot.lane.b32.xlu0 %v8483_v36, %s7960_s5  ;;  %1937 = vrot.lane.b32.xlu1 %v8483_v36, %s7957_s15 }
 0x47a   :  { %2730 = vrot.lane.b32.xlu0 %v8493_v31, %s7960_s5  ;;  %1941 = vrot.lane.b32.xlu1 %v8493_v31, %s7957_s15 }
 0x47e   :  { %2891 = vrot.lane.b32.xlu0 %v8483_v36, %s7961_s6  ;;  %2251 = vrot.lane.b32.xlu1 %v8483_v36, %s7958_s13 }
 0x482   :  { %2895 = vrot.lane.b32.xlu0 %v8493_v31, %s7961_s6  ;;  %2255 = vrot.lane.b32.xlu1 %v8493_v31, %s7958_s13 }
 0x486   :  { %3056 = vrot.lane.b32.xlu0 %v8483_v36, %s7962_s26  ;;  %2416 = vrot.lane.b32.xlu1 %v8483_v36, %s7959_s22 }
 0x48a   :  { %3060 = vrot.lane.b32.xlu0 %v8493_v31, %s7962_s26  ;;  %2420 = vrot.lane.b32.xlu1 %v8493_v31, %s7959_s22 }
 0x48e   :  { %3221 = vrot.lane.b32.xlu0 %v8483_v36, %s7963_s28  ;;  %2728 = vrot.lane.b32.xlu1 %v8475_v40, %s7960_s5 }
 0x492   :  { %3225 = vrot.lane.b32.xlu0 %v8493_v31, %s7963_s28  ;;  %2732 = vrot.lane.b32.xlu1 %v8477_v29, %s7960_s5 }
 0x496   :  { %2893 = vrot.lane.b32.xlu1 %v8475_v40, %s7961_s6 }
 0x49a   :  { %2897 = vrot.lane.b32.xlu1 %v8477_v29, %s7961_s6 }
 0x49e   :  { %3058 = vrot.lane.b32.xlu1 %v8475_v40, %s7962_s26 }
 0x4a2   :  { %3062 = vrot.lane.b32.xlu1 %v8477_v29, %s7962_s26 }
 0x4a6   :  { %3223 = vrot.lane.b32.xlu1 %v8475_v40, %s7963_s28 }
 0x4aa   :  { %3227 = vrot.lane.b32.xlu1 %v8477_v29, %s7963_s28 }
 0x4d4   :  { %v1940_v37 = vpop.permute.xlu0 %1939  ;;  %v1984_v43 = vpop.permute.xlu1 %1983 }
 0x4d8   :  { %v8548_v46 = vpop.permute.xlu0 %2248  ;;  %v1987_v39 = vpop.permute.xlu1 %1986 }
 0x4d9   :  { %v8551_v44 = vsel %vm580_vm0, %v1984_v43, %v1987_v39 }
 0x4da   :  { %9598 = vst [vmem:[#allocation84_spill] sm:$0xff] %v8551_v44  ;;  %v2023_v47 = vmul.f32 %v2006_v1, %v8551_v44 }
 0x4dc   :  { %v8555_v49 = vpop.permute.xlu0 %2253  ;;  %v1989_v50 = vpop.permute.xlu1 %1988  ;;  %v2030_v51 = vpack.c.bf16 %v2023_v47, %v2023_v47  ;;  %v2279_v47 = vrot.slane %v2266_v34, %v8312_v13 }
 0x4dd   :  { %v8558_v45 = vsel %vm580_vm0, %v1987_v39, %v1989_v50 }
 0x4de   :  { %9599 = vst [vmem:[#allocation85_spill] sm:$0xff] %v8558_v45  ;;  %v2024_v52 = vmul.f32 %v2010_v48, %v8558_v45  ;;  %v2045_v62 = vsel %vm2043_vm15, %v2030_v51, 0  ;;  %v2283_v48 = vrot.slane %v2266_v34, %v8310_v12  ;;  %v2431_v51 = vld [vmem:[#allocation13 + $0x3] ss:$8 sm:$0xf] }
 0x4df   :  { %v2436_v2 = vrot.slane %v2431_v51, %v8305_v7 }
 0x4e0   :  { %v2031_v56 = vpack.c.bf16 %v2024_v52, %v2024_v52  ;;  %v1991_v53 = vpop.permute.xlu1 %1990  ;;  %v8569_v59 = vpop.permute.xlu0 %2413 }
 0x4e1   :  { %v8564_v57 = vsel %vm580_vm0, %v1989_v50, %v1991_v53  ;;  %v8567_v58 = vsel %vm580_vm0, %v1991_v53, %v1984_v43  ;;  %v2579_v53 = vld [vmem:[#allocation13 + $0x4] ss:$8 sm:$0xf] }
 0x4e2   :  { %9600 = vst [vmem:[#allocation86_spill] sm:$0xff] %v8564_v57  ;;  %9601 = vst [vmem:[#allocation87_spill] sm:$0xff] %v8567_v58  ;;  %v2025_v60 = vmul.f32 %v2014_v54, %v8564_v57  ;;  %v2026_v61 = vmul.f32 %v2018_v55, %v8567_v58  ;;  %6740 = vmatprep.subr.msk.bf16.mxu0 %vm2043_vm15, %v2031_v56 }
 0x4e3   :  { %2071 = vmatpush1.bf16.msra.mxu0 %v2045_v62 }
 0x4e4   :  { %v2032_v3 = vpack.c.bf16 %v2025_v60, %v2025_v60  ;;  %v2033_v5 = vpack.c.bf16 %v2026_v61, %v2026_v61  ;;  %v1932_v6 = vpop.permute.xlu1 %1931  ;;  %v8581_v17 = vpop.permute.xlu0 %2418 }
 0x4e6   :  { %6742 = vmatprep.subr.msk.bf16.mxu1 %vm2043_vm15, %v2033_v5  ;;  %v2051_v11 = vsel %vm2043_vm15, %v2032_v3, 0  ;;  %6741 = vmatmul.mubr.msk.bf16.vlgmr.msra.gmra.mxu0 %vm2039_vm1, %v7138_v63  ;;  %v2440_v3 = vrot.slane %v2431_v51, %v8307_v9 }
 0x4e7   :  { %2114 = vmatpush1.bf16.msra.mxu1 %v2051_v11  ;;  %2194 = vmatprep.mubr.bf16.mxu0 %v9513_v4 }
 0x4e8   :  { %v1938_v21 = vpop.permute.xlu1 %1937  ;;  %v8601_v19 = vpop.permute.xlu0 %2726 }
 0x4e9   :  { %v8584_v23 = vsel %vm531_vm3, %v1938_v21, %v1940_v37  ;;  %v8587_v24 = vsel %vm531_vm3, %v1932_v6, %v1938_v21 }
 0x4ea   :  { %9602 = vst [vmem:[#allocation88_spill] sm:$0xff] %v8584_v23  ;;  %9603 = vst [vmem:[#allocation89_spill] sm:$0xff] %v8587_v24  ;;  %v1973_v25 = vmul.f32 %v1956_v15, %v8587_v24  ;;  %v1974_v30 = vmul.f32 %v1960_v16, %v8584_v23  ;;  %6743 = vmatmul.mubr.msk.bf16.vlgmr.msra.gmra.mxu1 %vm2039_vm1, %v7138_v63 }
 0x4eb   :  { %2237 = vmatprep.mubr.bf16.mxu1 %v9513_v4 }
 0x4ec   :  { %v1979_v38 = vpack.c.bf16 %v1973_v25, %v1973_v25  ;;  %v1980_v0 = vpack.c.bf16 %v1974_v30, %v1974_v30  ;;  %v1942_v28 = vpop.permute.xlu1 %1941  ;;  %v8624_v52 = vpop.permute.xlu0 %2730  ;;  %v2596_v30 = vrot.slane %v2579_v53, %v8310_v12 }
 0x4ed   :  { %v8596_v8 = vsel %vm531_vm3, %v1940_v37, %v1942_v28  ;;  %v8599_v18 = vsel %vm531_vm3, %v1942_v28, %v1932_v6  ;;  %v2588_v6 = vrot.slane %v2579_v53, %v8307_v9  ;;  %v2448_v28 = vrot.slane %v2431_v51, %v8310_v12 }
 0x4ee   :  { %9604 = vst [vmem:[#allocation90_spill] sm:$0xff] %v8596_v8  ;;  %9605 = vst [vmem:[#allocation91_spill] sm:$0xff] %v8599_v18  ;;  %v1975_v10 = vmul.f32 %v1964_v32, %v8596_v8  ;;  %v1976_v20 = vmul.f32 %v1968_v33, %v8599_v18  ;;  %6745 = vmatprep.subr.msk.bf16.mxu0 %vm2043_vm15, %v1980_v0  ;;  %v2151_v14 = vsel %vm2043_vm15, %v1979_v38, 0 }
 0x4ef   :  { %2177 = vmatpush1.bf16.msra.mxu0 %v2151_v14  ;;  %v2592_v32 = vrot.slane %v2579_v53, %v8312_v13  ;;  %v2444_v0 = vrot.slane %v2431_v51, %v8312_v13 }
 0x4f0   :  { %v1981_v35 = vpack.c.bf16 %v1975_v10, %v1975_v10  ;;  %v1982_v41 = vpack.c.bf16 %v1976_v20, %v1976_v20  ;;  %v2252_v37 = vpop.permute.xlu1 %2251  ;;  %v8655_v33 = vpop.permute.xlu0 %2891  ;;  %v2602_v20 = vmul.f32 %v2588_v6, %v8475_v40 }
 0x4f1   :  { %v8611_v42 = vsel %vm830_vm5, %v2252_v37, %v8555_v49  ;;  %v8615_v43 = vsel %vm830_vm5, %v8548_v46, %v2252_v37 }
 0x4f2   :  { %9606 = vst [vmem:[#allocation92_spill] sm:$0xff] %v8611_v42  ;;  %9607 = vst [vmem:[#allocation93_spill] sm:$0xff] %v8615_v43  ;;  %v2288_v1 = vmul.f32 %v2271_v26, %v8615_v43  ;;  %v2289_v39 = vmul.f32 %v2275_v27, %v8611_v42  ;;  %6747 = vmatprep.subr.msk.bf16.mxu1 %vm2043_vm15, %v1982_v41  ;;  %6746 = vmatmul.mubr.msk.bf16.vlgmr.msra.gmra.mxu0 %vm2039_vm1, %v7139_v22  ;;  %v2157_v50 = vsel %vm2043_vm15, %v1981_v35, 0  ;;  %v2744_v26 = vld [vmem:[#allocation13 + $0x5] ss:$8 sm:$0xf] }
 0x4f3   :  { %2220 = vmatpush1.bf16.msra.mxu1 %v2157_v50  ;;  %2351 = vmatprep.mubr.bf16.mxu0 %v9513_v4  ;;  %v2603_v50 = vmul.f32 %v2592_v32, %v8493_v31  ;;  %v2609_v51 = vpack.c.bf16 %v2602_v20, %v2602_v20  ;;  %v2761_v6 = vrot.slane %v2744_v26, %v8310_v12  ;;  %v2909_v32 = vld [vmem:[#allocation13 + $0x6] ss:$8 sm:$0xf] }
 0x4f4   :  { %v2295_v54 = vpack.c.bf16 %v2288_v1, %v2288_v1  ;;  %v2296_v55 = vpack.c.bf16 %v2289_v39, %v2289_v39  ;;  %v2256_v56 = vpop.permute.xlu1 %2255  ;;  %v2604_v1 = vmul.f32 %v2596_v30, %v8477_v29  ;;  %v2757_v30 = vrot.slane %v2744_v26, %v8312_v13 }
 0x4f5   :  { %v8629_v60 = vsel %vm830_vm5, %v8555_v49, %v2256_v56  ;;  %v8633_v61 = vsel %vm830_vm5, %v2256_v56, %v8548_v46  ;;  %v7140_v49 = vld [vmem:[#allocation9 + $0x10] sm:$0xff]   ;;  %v2584_v46 = vrot.slane %v2579_v53, %v8305_v7  ;;  %v2896_v56 = vpop.permute.xlu0 %2895 }
 0x4f6   :  { %9608 = vst [vmem:[#allocation94_spill] sm:$0xff] %v8629_v60  ;;  %9609 = vst [vmem:[#allocation95_spill] sm:$0xff] %v8633_v61  ;;  %v2290_v62 = vmul.f32 %v2279_v47, %v8629_v60  ;;  %v2291_v63 = vmul.f32 %v2283_v48, %v8633_v61  ;;  %6750 = vmatprep.subr.msk.bf16.mxu0 %vm2043_vm15, %v2296_v55  ;;  %6748 = vmatmul.mubr.msk.bf16.vlgmr.msra.gmra.mxu1 %vm2039_vm1, %v7139_v22  ;;  %v2308_v5 = vsel %vm2043_vm15, %v2295_v54, 0  ;;  %v7141_v54 = vld [vmem:[#allocation9 + $0x18] sm:$0xff]  }
 0x4f7   :  { %2334 = vmatpush1.bf16.msra.mxu0 %v2308_v5  ;;  %2394 = vmatprep.mubr.bf16.mxu1 %v9513_v4  ;;  %v2601_v27 = vmul.f32 %v2584_v46, %v8483_v36  ;;  %v2753_v48 = vrot.slane %v2744_v26, %v8307_v9  ;;  %v2610_v46 = vpack.c.bf16 %v2603_v50, %v2603_v50 }
 0x4f8   :  { %v2297_v11 = vpack.c.bf16 %v2290_v62, %v2290_v62  ;;  %v2298_v15 = vpack.c.bf16 %v2291_v63, %v2291_v63  ;;  %v2417_v16 = vpop.permute.xlu1 %2416  ;;  %v2926_v50 = vrot.slane %v2909_v32, %v8310_v12 }
 0x4f9   :  { %v8647_v21 = vsel %vm982_vm6, %v2417_v16, %v8581_v17  ;;  %v8651_v25 = vsel %vm982_vm6, %v8569_v59, %v2417_v16  ;;  %v2608_v55 = vpack.c.bf16 %v2601_v27, %v2601_v27 }
 0x4fa   :  { %9610 = vst [vmem:[#allocation96_spill] sm:$0xff] %v8647_v21  ;;  %9611 = vst [vmem:[#allocation97_spill] sm:$0xff] %v8651_v25  ;;  %v2453_v34 = vmul.f32 %v2436_v2, %v8651_v25  ;;  %v2454_v38 = vmul.f32 %v2440_v3, %v8647_v21  ;;  %6752 = vmatprep.subr.msk.bf16.mxu1 %vm2043_vm15, %v2298_v15  ;;  %6751 = vmatmul.mubr.msk.bf16.vlgmr.msra.gmra.mxu0 %vm2039_vm1, %v7140_v49  ;;  %v2314_v10 = vsel %vm2043_vm15, %v2297_v11, 0 }
 0x4fb   :  { %2377 = vmatpush1.bf16.msra.mxu1 %v2314_v10  ;;  %2516 = vmatprep.mubr.bf16.mxu0 %v9513_v4  ;;  %v2621_v16 = vsel %vm2043_vm15, %v2608_v55, 0  ;;  %v8712_v10 = vpop.permute.xlu0 %3056  ;;  %v3074_v55 = vld [vmem:[#allocation13 + $0x7] ss:$8 sm:$0xf] }
 0x4fc   :  { %v2460_v14 = vpack.c.bf16 %v2453_v34, %v2453_v34  ;;  %v2461_v22 = vpack.c.bf16 %v2454_v38, %v2454_v38  ;;  %v2421_v35 = vpop.permute.xlu1 %2420 }
 0x4fd   :  { %v8669_v41 = vsel %vm982_vm6, %v8581_v17, %v2421_v35  ;;  %v8673_v37 = vsel %vm982_vm6, %v2421_v35, %v8569_v59  ;;  %v2749_v59 = vrot.slane %v2744_v26, %v8305_v7  ;;  %v2918_v26 = vrot.slane %v2909_v32, %v8307_v9 }
 0x4fe   :  { %9612 = vst [vmem:[#allocation98_spill] sm:$0xff] %v8669_v41  ;;  %9613 = vst [vmem:[#allocation99_spill] sm:$0xff] %v8673_v37  ;;  %v2455_v39 = vmul.f32 %v2444_v0, %v8669_v41  ;;  %v2456_v47 = vmul.f32 %v2448_v28, %v8673_v37  ;;  %6755 = vmatprep.subr.msk.bf16.mxu0 %vm2043_vm15, %v2461_v22  ;;  %6753 = vmatmul.mubr.msk.bf16.vlgmr.msra.gmra.mxu1 %vm2039_vm1, %v7140_v49  ;;  %v2473_v17 = vsel %vm2043_vm15, %v2460_v14, 0  ;;  %v7142_v22 = vld [vmem:[#allocation9 + $0x20] sm:$0xff]  }
 0x4ff   :  { %2499 = vmatpush1.bf16.msra.mxu0 %v2473_v17  ;;  %2559 = vmatprep.mubr.bf16.mxu1 %v9513_v4  ;;  %v2611_v49 = vpack.c.bf16 %v2604_v1, %v2604_v1 }
 0x500   :  { %v2462_v53 = vpack.c.bf16 %v2455_v39, %v2455_v39  ;;  %v2463_v62 = vpack.c.bf16 %v2456_v47, %v2456_v47  ;;  %v2729_v63 = vpop.permute.xlu1 %2728  ;;  %6760 = vmatprep.subr.msk.bf16.mxu0 %vm2043_vm15, %v2609_v51 }
 0x501   :  { %v8688_v2 = vsel %vm1271_vm7, %v8601_v19, %v2729_v63  ;;  %v8692_v3 = vsel %vm1271_vm7, %v2729_v63, %v8624_v52 }
 0x502   :  { %9614 = vst [vmem:[#allocation100_spill] sm:$0xff] %v8688_v2  ;;  %9615 = vst [vmem:[#allocation101_spill] sm:$0xff] %v8692_v3  ;;  %v2767_v5 = vmul.f32 %v2753_v48, %v8692_v3  ;;  %6757 = vmatprep.subr.msk.bf16.mxu1 %vm2043_vm15, %v2463_v62  ;;  %v2766_v11 = vmul.f32 %v2749_v59, %v8688_v2  ;;  %6756 = vmatmul.mubr.msk.bf16.vlgmr.msra.gmra.mxu0 %vm2039_vm1, %v7141_v54  ;;  %v2479_v15 = vsel %vm2043_vm15, %v2462_v53, 0  ;;  %v3061_v53 = vpop.permute.xlu0 %3060 }
 0x503   :  { %2542 = vmatpush1.bf16.msra.mxu1 %v2479_v15  ;;  %2647 = vmatpush1.bf16.msra.mxu0 %v2621_v16 }
 0x504   :  { %v2774_v34 = vpack.c.bf16 %v2767_v5, %v2767_v5  ;;  %v2733_v38 = vpop.permute.xlu1 %2732  ;;  %6762 = vmatprep.subr.msk.bf16.mxu1 %vm2043_vm15, %v2611_v49  ;;  %2664 = vmatprep.mubr.bf16.mxu0 %v9513_v4  ;;  %v2773_v27 = vpack.c.bf16 %v2766_v11, %v2766_v11 }
 0x505   :  { %v8705_v0 = vsel %vm1271_vm7, %v8624_v52, %v2733_v38  ;;  %v8709_v28 = vsel %vm1271_vm7, %v2733_v38, %v8601_v19  ;;  %v2627_v52 = vsel %vm2043_vm15, %v2610_v46, 0  ;;  %v2914_v19 = vrot.slane %v2909_v32, %v8305_v7 }
 0x506   :  { %9616 = vst [vmem:[#allocation102_spill] sm:$0xff] %v8705_v0  ;;  %9617 = vst [vmem:[#allocation103_spill] sm:$0xff] %v8709_v28  ;;  %v2769_v20 = vmul.f32 %v2761_v6, %v8709_v28  ;;  %6765 = vmatprep.subr.msk.bf16.mxu0 %vm2043_vm15, %v2774_v34  ;;  %v2768_v14 = vmul.f32 %v2757_v30, %v8705_v0  ;;  %6758 = vmatmul.mubr.msk.bf16.vlgmr.msra.gmra.mxu1 %vm2039_vm1, %v7141_v54  ;;  %v2786_v59 = vsel %vm2043_vm15, %v2773_v27, 0  ;;  %v7143_v30 = vld [vmem:[#allocation9 + $0x28] sm:$0xff]  }
 0x507   :  { %2690 = vmatpush1.bf16.msra.mxu1 %v2627_v52  ;;  %2707 = vmatprep.mubr.bf16.mxu1 %v9513_v4  ;;  %v2922_v54 = vrot.slane %v2909_v32, %v8312_v13  ;;  %v3083_v46 = vrot.slane %v3074_v55, %v8307_v9  ;;  %v3091_v27 = vrot.slane %v3074_v55, %v8310_v12 }
 0x508   :  { %v2776_v35 = vpack.c.bf16 %v2769_v20, %v2769_v20  ;;  %v2894_v1 = vpop.permute.xlu1 %2893  ;;  %v2775_v17 = vpack.c.bf16 %v2768_v14, %v2768_v14  ;;  %v3222_v20 = vpop.permute.xlu0 %3221 }
 0x509   :  { %v8724_v39 = vsel %vm1423_vm8, %v8655_v33, %v2894_v1  ;;  %v8727_v47 = vsel %vm1423_vm8, %v2894_v1, %v2896_v56 }
 0x50a   :  { %9618 = vst [vmem:[#allocation104_spill] sm:$0xff] %v8724_v39  ;;  %9619 = vst [vmem:[#allocation105_spill] sm:$0xff] %v8727_v47  ;;  %v2932_v48 = vmul.f32 %v2918_v26, %v8727_v47  ;;  %6767 = vmatprep.subr.msk.bf16.mxu1 %vm2043_vm15, %v2776_v35  ;;  %v2931_v51 = vmul.f32 %v2914_v19, %v8724_v39  ;;  %6761 = vmatmul.mubr.msk.bf16.vlgmr.msra.gmra.mxu0 %vm2039_vm1, %v7142_v22  ;;  %v2792_v16 = vsel %vm2043_vm15, %v2775_v17, 0  ;;  %v3239_v35 = vld [vmem:[#allocation13 + $0x20] ss:$8 sm:$0xf] }
 0x50b   :  { %2812 = vmatpush1.bf16.msra.mxu0 %v2786_v59  ;;  %2829 = vmatprep.mubr.bf16.mxu0 %v9513_v4  ;;  %v3248_v59 = vrot.slane %v3239_v35, %v8307_v9 }
 0x50c   :  { %v2939_v62 = vpack.c.bf16 %v2932_v48, %v2932_v48  ;;  %v2898_v63 = vpop.permute.xlu1 %2897  ;;  %v2938_v11 = vpack.c.bf16 %v2931_v51, %v2931_v51 }
 0x50d   :  { %v8738_v5 = vsel %vm1423_vm8, %v2896_v56, %v2898_v63  ;;  %v8742_v49 = vsel %vm1423_vm8, %v2898_v63, %v8655_v33  ;;  %v3079_v56 = vrot.slane %v3074_v55, %v8305_v7  ;;  %v7144_v63 = vld [vmem:[#allocation9 + $0x30] sm:$0xff]  }
 0x50e   :  { %9620 = vst [vmem:[#allocation106_spill] sm:$0xff] %v8738_v5  ;;  %9621 = vst [vmem:[#allocation107_spill] sm:$0xff] %v8742_v49  ;;  %v2934_v6 = vmul.f32 %v2926_v50, %v8742_v49  ;;  %6770 = vmatprep.subr.msk.bf16.mxu0 %vm2043_vm15, %v2939_v62  ;;  %v2933_v15 = vmul.f32 %v2922_v54, %v8738_v5  ;;  %6763 = vmatmul.mubr.msk.bf16.vlgmr.msra.gmra.mxu1 %vm2039_vm1, %v7142_v22  ;;  %v2951_v19 = vsel %vm2043_vm15, %v2938_v11, 0 }
 0x50f   :  { %2855 = vmatpush1.bf16.msra.mxu1 %v2792_v16  ;;  %2872 = vmatprep.mubr.bf16.mxu1 %v9513_v4  ;;  %v3087_v22 = vrot.slane %v3074_v55, %v8312_v13 }
 0x510   :  { %v2941_v32 = vpack.c.bf16 %v2934_v6, %v2934_v6  ;;  %v3059_v33 = vpop.permute.xlu1 %3058  ;;  %v2940_v14 = vpack.c.bf16 %v2933_v15, %v2933_v15  ;;  %v3226_v6 = vpop.permute.xlu0 %3225 }
 0x511   :  { %v8754_v34 = vsel %vm1575_vm9, %v8712_v10, %v3059_v33  ;;  %v8757_v38 = vsel %vm1575_vm9, %v3059_v33, %v3061_v53 }
 0x512   :  { %9622 = vst [vmem:[#allocation108_spill] sm:$0xff] %v8754_v34  ;;  %9623 = vst [vmem:[#allocation109_spill] sm:$0xff] %v8757_v38  ;;  %v3097_v26 = vmul.f32 %v3083_v46, %v8757_v38  ;;  %6772 = vmatprep.subr.msk.bf16.mxu1 %vm2043_vm15, %v2941_v32  ;;  %v3096_v52 = vmul.f32 %v3079_v56, %v8754_v34  ;;  %6766 = vmatmul.mubr.msk.bf16.vlgmr.msra.gmra.mxu0 %vm2039_vm1, %v7143_v30  ;;  %v2957_v62 = vsel %vm2043_vm15, %v2940_v14, 0 }
 0x513   :  { %2977 = vmatpush1.bf16.msra.mxu0 %v2951_v19  ;;  %2994 = vmatprep.mubr.bf16.mxu0 %v9513_v4  ;;  %v3256_v56 = vrot.slane %v3239_v35, %v8310_v12 }
 0x514   :  { %v3104_v1 = vpack.c.bf16 %v3097_v26, %v3097_v26  ;;  %v3063_v48 = vpop.permute.xlu1 %3062  ;;  %v3103_v54 = vpack.c.bf16 %v3096_v52, %v3096_v52  ;;  %v3252_v26 = vrot.slane %v3239_v35, %v8312_v13 }
 0x515   :  { %v8768_v50 = vsel %vm1575_vm9, %v3061_v53, %v3063_v48  ;;  %v8772_v17 = vsel %vm1575_vm9, %v3063_v48, %v8712_v10  ;;  %v3244_v53 = vrot.slane %v3239_v35, %v8305_v7 }
 0x516   :  { %9624 = vst [vmem:[#allocation110_spill] sm:$0xff] %v8768_v50  ;;  %9625 = vst [vmem:[#allocation111_spill] sm:$0xff] %v8772_v17  ;;  %v3099_v51 = vmul.f32 %v3091_v27, %v8772_v17  ;;  %6775 = vmatprep.subr.msk.bf16.mxu0 %vm2043_vm15, %v3104_v1  ;;  %v3098_v55 = vmul.f32 %v3087_v22, %v8768_v50  ;;  %6768 = vmatmul.mubr.msk.bf16.vlgmr.msra.gmra.mxu1 %vm2039_vm1, %v7143_v30  ;;  %v3116_v33 = vsel %vm2043_vm15, %v3103_v54, 0 }
 0x517   :  { %3020 = vmatpush1.bf16.msra.mxu1 %v2957_v62  ;;  %3037 = vmatprep.mubr.bf16.mxu1 %v9513_v4  ;;  %v7146_v62 = vld [vmem:[#allocation9 + $0x40] sm:$0xff]  }
 0x518   :  { %v3106_v46 = vpack.c.bf16 %v3099_v51, %v3099_v51  ;;  %v3224_v10 = vpop.permute.xlu1 %3223  ;;  %v3105_v30 = vpack.c.bf16 %v3098_v55, %v3098_v55  ;;  %v7145_v51 = vld [vmem:[#allocation9 + $0x38] sm:$0xff]  }
 0x519   :  { %v8783_v11 = vsel %vm1727_vm10, %v3222_v20, %v3224_v10  ;;  %v8786_v15 = vsel %vm1727_vm10, %v3224_v10, %v3226_v6  ;;  %v3415_v10 = vld [vmem:[#allocation15 + $0xe8] sm:$0xff] }
 0x51a   :  { %9626 = vst [vmem:[#allocation112_spill] sm:$0xff] %v8783_v11  ;;  %9627 = vst [vmem:[#allocation113_spill] sm:$0xff] %v8786_v15  ;;  %v3262_v16 = vmul.f32 %v3248_v59, %v8786_v15  ;;  %6777 = vmatprep.subr.msk.bf16.mxu1 %vm2043_vm15, %v3106_v46  ;;  %v3261_v32 = vmul.f32 %v3244_v53, %v8783_v11  ;;  %6771 = vmatmul.mubr.msk.bf16.vlgmr.msra.gmra.mxu0 %vm2039_vm1, %v7144_v63  ;;  %v3122_v35 = vsel %vm2043_vm15, %v3105_v30, 0  ;;  %v3417_v53 = vld [vmem:[#allocation15 + $0xf8] sm:$0xff]  ;;  %v3400_v46 = vld [vmem:[#allocation15 + $0x70] sm:$0xff] }
 0x51b   :  { %3142 = vmatpush1.bf16.msra.mxu0 %v3116_v33  ;;  %3159 = vmatprep.mubr.bf16.mxu0 %v9513_v4  ;;  %v3433_v30 = vld [vmem:[#allocation15 + $0x178] sm:$0xff]  ;;  %v3448_v33 = vld [vmem:[#allocation15 + $0x1f0] sm:$0xff] }
 0x51c   :  { %v3269_v27 = vpack.c.bf16 %v3262_v16, %v3262_v16  ;;  %v3228_v14 = vpop.permute.xlu1 %3227  ;;  %v3268_v1 = vpack.c.bf16 %v3261_v32, %v3261_v32  ;;  %v3449_v16 = vld [vmem:[#allocation15 + $0x1f8] sm:$0xff]  ;;  %v3414_v32 = vld [vmem:[#allocation15 + $0xe0] sm:$0xff] }
 0x51d   :  { %v8797_v52 = vsel %vm1727_vm10, %v3226_v6, %v3228_v14  ;;  %v8800_v19 = vsel %vm1727_vm10, %v3228_v14, %v3222_v20  ;;  %v3416_v6 = vld [vmem:[#allocation15 + $0xf0] sm:$0xff]  ;;  %v3413_v14 = vld [vmem:[#allocation15 + $0xd8] sm:$0xff] }
 0x51e   :  { %9628 = vst [vmem:[#allocation114_spill] sm:$0xff] %v8797_v52  ;;  %9629 = vst [vmem:[#allocation115_spill] sm:$0xff] %v8800_v19  ;;  %v3264_v22 = vmul.f32 %v3256_v56, %v8800_v19  ;;  %6780 = vmatprep.subr.msk.bf16.mxu0 %vm2043_vm15, %v3269_v27  ;;  %v3263_v48 = vmul.f32 %v3252_v26, %v8797_v52  ;;  %6773 = vmatmul.mubr.msk.bf16.vlgmr.msra.gmra.mxu1 %vm2039_vm1, %v7144_v63  ;;  %v3281_v54 = vsel %vm2043_vm15, %v3268_v1, 0  ;;  %v3401_v63 = vld [vmem:[#allocation15 + $0x78] sm:$0xff]  ;;  %v3399_v56 = vld [vmem:[#allocation15 + $0x68] sm:$0xff] }
 0x51f   :  { %3185 = vmatpush1.bf16.msra.mxu1 %v3122_v35  ;;  %3202 = vmatprep.mubr.bf16.mxu1 %v9513_v4  ;;  %v3398_v26 = vld [vmem:[#allocation15 + $0x60] sm:$0xff]  ;;  %v3432_v27 = vld [vmem:[#allocation15 + $0x170] sm:$0xff]  ;;  %v3397_v1 = vld [vmem:[#allocation15 + $0x58] sm:$0xff] }
 0x520   :  { %v3271_v59 = vpack.c.bf16 %v3264_v22, %v3264_v22  ;;  %v3270_v20 = vpack.c.bf16 %v3263_v48, %v3263_v48  ;;  %v3447_v22 = vld [vmem:[#allocation15 + $0x1e8] sm:$0xff]  ;;  %v3412_v35 = vld [vmem:[#allocation15 + $0xd0] sm:$0xff] }
 0x521   :  { %v3431_v48 = vld [vmem:[#allocation15 + $0x168] sm:$0xff] }
 0x522   :  { %6782 = vmatprep.subr.msk.bf16.mxu1 %vm2043_vm15, %v3271_v59  ;;  %6776 = vmatmul.mubr.msk.bf16.vlgmr.msra.gmra.mxu0 %vm2039_vm1, %v7145_v51  ;;  %v3287_v55 = vsel %vm2043_vm15, %v3270_v20, 0  ;;  %v3396_v59 = vld [vmem:[#allocation15 + $0x50] sm:$0xff]  ;;  %v3430_v20 = vld [vmem:[#allocation15 + $0x160] sm:$0xff] }
 0x523   :  { %3307 = vmatpush1.bf16.msra.mxu0 %v3281_v54  ;;  %3324 = vmatprep.mubr.bf16.mxu0 %v9513_v4  ;;  %v3411_v54 = vld [vmem:[#allocation15 + $0xc8] sm:$0xff] }
 0x524   :  { %6885 = vmatprep.subr.mxu0 %v3417_v53  ;;  %v3429_v53 = vld [vmem:[#allocation15 + $0x158] sm:$0xff] }
 0x526   :  { %6778 = vmatmul.mubr.msk.bf16.vlgmr.msra.gmra.mxu1 %vm2039_vm1, %v7145_v51  ;;  %v3446_v51 = vld [vmem:[#allocation15 + $0x1e0] sm:$0xff] }
 0x527   :  { %3350 = vmatpush1.bf16.msra.mxu1 %v3287_v55  ;;  %3367 = vmatprep.mubr.bf16.mxu1 %v9513_v4  ;;  %v3445_v55 = vld [vmem:[#allocation15 + $0x1d8] sm:$0xff] }
 0x528   :  { %6923 = vmatprep.subr.mxu1 %v3449_v16  ;;  %v3409_v16 = vld [vmem:[#allocation15 + $0xb8] sm:$0xff] }
 0x52a   :  { %6781 = vmatmul.mubr.msk.bf16.vlgmr.msra.gmra.mxu0 %vm2039_vm1, %v7146_v62 }
 0x52b   :  { %6886 = vmatpush3.msra.mxu0 %v3401_v63  ;;  %v3410_v63 = vld [vmem:[#allocation15 + $0xc0] sm:$0xff] }
 0x52c   :  { %6887 = vmatprep.subr.mxu0 %v3416_v6  ;;  %v3444_v6 = vld [vmem:[#allocation15 + $0x1d0] sm:$0xff] }
 0x52d   :  { %6888 = vmatpush3.msra.mxu0 %v3400_v46  ;;  %v3394_v46 = vld [vmem:[#allocation15 + $0x40] sm:$0xff] }
 0x52e   :  { %6783 = vmatmul.mubr.msk.bf16.vlgmr.msra.gmra.mxu1 %vm2039_vm1, %v7146_v62  ;;  %6889 = vmatprep.subr.mxu0 %v3415_v10  ;;  %v3395_v62 = vld [vmem:[#allocation15 + $0x48] sm:$0xff]  ;;  %v3428_v10 = vld [vmem:[#allocation15 + $0x150] sm:$0xff] }
 0x52f   :  { %6890 = vmatpush3.msra.mxu0 %v3399_v56  ;;  %6924 = vmatpush3.msra.mxu1 %v3433_v30  ;;  %v3443_v56 = vld [vmem:[#allocation15 + $0x1c8] sm:$0xff]  ;;  %v3393_v30 = vld [vmem:[#allocation15 + $0x38] sm:$0xff] }
 0x530   :  { %6891 = vmatprep.subr.mxu0 %v3414_v32  ;;  %6925 = vmatprep.subr.mxu1 %v3448_v33  ;;  %v3427_v32 = vld [vmem:[#allocation15 + $0x148] sm:$0xff]  ;;  %v3408_v33 = vld [vmem:[#allocation15 + $0xb0] sm:$0xff] }
 0x531   :  { %6892 = vmatpush3.msra.mxu0 %v3398_v26  ;;  %6926 = vmatpush3.msra.mxu1 %v3432_v27  ;;  %v3442_v26 = vld [vmem:[#allocation15 + $0x1c0] sm:$0xff]  ;;  %v3392_v27 = vld [vmem:[#allocation15 + $0x30] sm:$0xff] }
 0x532   :  { %6893 = vmatprep.subr.mxu0 %v3413_v14  ;;  %6927 = vmatprep.subr.mxu1 %v3447_v22  ;;  %v3426_v14 = vld [vmem:[#allocation15 + $0x140] sm:$0xff]  ;;  %v3407_v22 = vld [vmem:[#allocation15 + $0xa8] sm:$0xff] }
 0x533   :  { %6894 = vmatpush3.msra.mxu0 %v3397_v1  ;;  %6928 = vmatpush3.msra.mxu1 %v3431_v48  ;;  %v3441_v1 = vld [vmem:[#allocation15 + $0x1b8] sm:$0xff]  ;;  %v3391_v48 = vld [vmem:[#allocation15 + $0x28] sm:$0xff] }
 0x534   :  { %6895 = vmatprep.subr.mxu0 %v3412_v35  ;;  %6929 = vmatprep.subr.mxu1 %v3446_v51  ;;  %v3425_v35 = vld [vmem:[#allocation15 + $0x138] sm:$0xff]  ;;  %v3406_v51 = vld [vmem:[#allocation15 + $0xa0] sm:$0xff] }
 0x535   :  { %6896 = vmatpush3.msra.mxu0 %v3396_v59  ;;  %6930 = vmatpush3.msra.mxu1 %v3430_v20  ;;  %v3440_v59 = vld [vmem:[#allocation15 + $0x1b0] sm:$0xff]  ;;  %v3390_v20 = vld [vmem:[#allocation15 + $0x20] sm:$0xff] }
 0x536   :  { %6897 = vmatprep.subr.mxu0 %v3411_v54  ;;  %6931 = vmatprep.subr.mxu1 %v3445_v55  ;;  %v3424_v54 = vld [vmem:[#allocation15 + $0x130] sm:$0xff]  ;;  %v3405_v55 = vld [vmem:[#allocation15 + $0x98] sm:$0xff] }
 0x537   :  { %6898 = vmatpush3.msra.mxu0 %v3395_v62  ;;  %6932 = vmatpush3.msra.mxu1 %v3429_v53  ;;  %v3439_v62 = vld [vmem:[#allocation15 + $0x1a8] sm:$0xff]  ;;  %v3389_v53 = vld [vmem:[#allocation15 + $0x18] sm:$0xff] }
 0x538   :  { %6899 = vmatprep.subr.mxu0 %v3410_v63  ;;  %6933 = vmatprep.subr.mxu1 %v3444_v6  ;;  %v3423_v63 = vld [vmem:[#allocation15 + $0x128] sm:$0xff]  ;;  %v3404_v6 = vld [vmem:[#allocation15 + $0x90] sm:$0xff] }
 0x539   :  { %6900 = vmatpush3.msra.mxu0 %v3394_v46  ;;  %6934 = vmatpush3.msra.mxu1 %v3428_v10  ;;  %v3438_v46 = vld [vmem:[#allocation15 + $0x1a0] sm:$0xff]  ;;  %v3388_v10 = vld [vmem:[#allocation15 + $0x10] sm:$0xff] }
 0x53a   :  { %6901 = vmatprep.subr.mxu0 %v3409_v16  ;;  %6935 = vmatprep.subr.mxu1 %v3443_v56  ;;  %v3422_v16 = vld [vmem:[#allocation15 + $0x120] sm:$0xff]  ;;  %v3403_v56 = vld [vmem:[#allocation15 + $0x88] sm:$0xff] }
 0x53b   :  { %6902 = vmatpush3.msra.mxu0 %v3393_v30  ;;  %6936 = vmatpush3.msra.mxu1 %v3427_v32  ;;  %v3437_v30 = vld [vmem:[#allocation15 + $0x198] sm:$0xff]  ;;  %v3387_v32 = vld [vmem:[#allocation15 + $0x8] sm:$0xff] }
 0x53c   :  { %6903 = vmatprep.subr.mxu0 %v3408_v33  ;;  %6937 = vmatprep.subr.mxu1 %v3442_v26  ;;  %v3421_v33 = vld [vmem:[#allocation15 + $0x118] sm:$0xff]  ;;  %v3402_v26 = vld [vmem:[#allocation15 + $0x80] sm:$0xff] }
 0x53d   :  { %6904 = vmatpush3.msra.mxu0 %v3392_v27  ;;  %6938 = vmatpush3.msra.mxu1 %v3426_v14  ;;  %v3436_v27 = vld [vmem:[#allocation15 + $0x190] sm:$0xff]  ;;  %v3386_v14 = vld [vmem:[#allocation15] sm:$0xff] }
 0x53e   :  { %6905 = vmatprep.subr.mxu0 %v3407_v22  ;;  %6939 = vmatprep.subr.mxu1 %v3441_v1  ;;  %v3420_v22 = vld [vmem:[#allocation15 + $0x110] sm:$0xff]  ;;  %v3435_v1 = vld [vmem:[#allocation15 + $0x188] sm:$0xff] }
 0x53f   :  { %6906 = vmatpush3.msra.mxu0 %v3391_v48  ;;  %6940 = vmatpush3.msra.mxu1 %v3425_v35  ;;  %v3419_v48 = vld [vmem:[#allocation15 + $0x108] sm:$0xff]  ;;  %v3434_v35 = vld [vmem:[#allocation15 + $0x180] sm:$0xff] }
 0x540   :  { %6907 = vmatprep.subr.mxu0 %v3406_v51  ;;  %6941 = vmatprep.subr.mxu1 %v3440_v59  ;;  %v3418_v51 = vld [vmem:[#allocation15 + $0x100] sm:$0xff] }
 0x541   :  { %6908 = vmatpush3.msra.mxu0 %v3390_v20  ;;  %6942 = vmatpush3.msra.mxu1 %v3424_v54 }
 0x542   :  { %6909 = vmatprep.subr.mxu0 %v3405_v55  ;;  %6943 = vmatprep.subr.mxu1 %v3439_v62 }
 0x543   :  { %6910 = vmatpush3.msra.mxu0 %v3389_v53  ;;  %6944 = vmatpush3.msra.mxu1 %v3423_v63 }
 0x544   :  { %6911 = vmatprep.subr.mxu0 %v3404_v6  ;;  %6945 = vmatprep.subr.mxu1 %v3438_v46 }
 0x545   :  { %6912 = vmatpush3.msra.mxu0 %v3388_v10  ;;  %6946 = vmatpush3.msra.mxu1 %v3422_v16 }
 0x546   :  { %6913 = vmatprep.subr.mxu0 %v3403_v56  ;;  %6947 = vmatprep.subr.mxu1 %v3437_v30 }
 0x547   :  { %6914 = vmatpush3.msra.mxu0 %v3387_v32  ;;  %6948 = vmatpush3.msra.mxu1 %v3421_v33 }
 0x548   :  { %6915 = vmatprep.subr.mxu0 %v3402_v26  ;;  %6949 = vmatprep.subr.mxu1 %v3436_v27 }
 0x549   :  { %6916 = vmatpush3.msra.mxu0 %v3386_v14  ;;  %6950 = vmatpush3.msra.mxu1 %v3420_v22 }
 0x54a   :  { %6951 = vmatprep.subr.mxu1 %v3435_v1 }
 0x54b   :  { %6952 = vmatpush3.msra.mxu1 %v3419_v48 }
 0x54c   :  { %6953 = vmatprep.subr.mxu1 %v3434_v35 }
 0x54d   :  { %6954 = vmatpush3.msra.mxu1 %v3418_v51 }
 0x5a6   :  { %v2090_v59 = vpop.f32.mrf.mxu0 }
 0x5a8   :  { %v2092_v20 = vpop.f32.mrf.mxu0 }
 0x5aa   :  { %v2133_v54 = vpop.f32.mrf.mxu1  ;;  %v2094_v55 = vpop.f32.mrf.mxu0 }
 0x5ac   :  { %v2135_v62 = vpop.f32.mrf.mxu1  ;;  %v2096_v53 = vpop.f32.mrf.mxu0 }
 0x5ae   :  { %v8817_v63 = vpop.f32.mrf.mxu1 }
 0x5b0   :  { %v8819_v46 = vpop.f32.mrf.mxu1 }
 0x5b2   :  { %v2196_v6 = vpop.f32.mrf.mxu0 }
 0x5b3   :  { %v2197_v23 = vadd.f32 %v2196_v6, %v2090_v59 }
 0x5b4   :  { %v2198_v10 = vpop.f32.mrf.mxu0 }
 0x5b5   :  { %v2199_v18 = vadd.f32 %v2198_v10, %v2092_v20 }
 0x5b6   :  { %v2200_v16 = vpop.f32.mrf.mxu0  ;;  %v2239_v56 = vpop.f32.mrf.mxu1 }
 0x5b7   :  { %v2201_v13 = vadd.f32 %v2200_v16, %v2094_v55 }
 0x5b8   :  { %v2202_v30 = vpop.f32.mrf.mxu0  ;;  %v2241_v32 = vpop.f32.mrf.mxu1 }
 0x5b9   :  { %v2203_v36 = vadd.f32 %v2202_v30, %v2096_v53  ;;  %v2242_v31 = vadd.f32 %v2241_v32, %v2135_v62 }
 0x5ba   :  { %v8821_v33 = vpop.f32.mrf.mxu1  ;;  %v2353_v26 = vpop.f32.mrf.mxu0 }
 0x5bb   :  { %v2405_v58 = vadd.f32 %v2353_v26, %v2197_v23 }
 0x5bc   :  { %v2245_v27 = vpop.f32.mrf.mxu1  ;;  %v2355_v14 = vpop.f32.mrf.mxu0 }
 0x5bd   :  { %v2406_v45 = vadd.f32 %v2355_v14, %v2199_v18  ;;  %v2246_v23 = vadd.f32 %v2245_v27, %v8819_v46 }
 0x5be   :  { %v2357_v22 = vpop.f32.mrf.mxu0  ;;  %v2396_v1 = vpop.f32.mrf.mxu1 }
 0x5bf   :  { %v2409_v20 = vadd.f32 %v2357_v22, %v2201_v13 }
 0x5c0   :  { %v2359_v48 = vpop.f32.mrf.mxu0  ;;  %v2398_v35 = vpop.f32.mrf.mxu1 }
 0x5c2   :  { %v8823_v51 = vpop.f32.mrf.mxu1  ;;  %v2518_v4 = vpop.f32.mrf.mxu0 }
 0x5c3   :  { %9630 = vst [vmem:[#allocation116_spill] sm:$0xff] %v8823_v51 }
 0x5c4   :  { %v2402_v11 = vpop.f32.mrf.mxu1  ;;  %v2520_v52 = vpop.f32.mrf.mxu0 }
 0x5c5   :  { %v2571_v7 = vadd.f32 %v2520_v52, %v2406_v45  ;;  %v2244_v45 = vadd.f32 %v8821_v33, %v8817_v63 }
 0x5c6   :  { %v2522_v19 = vpop.f32.mrf.mxu0  ;;  %v2561_v15 = vpop.f32.mrf.mxu1 }
 0x5c7   :  { %v2574_v52 = vadd.f32 %v2522_v19, %v2409_v20 }
 0x5c8   :  { %v2524_v34 = vpop.f32.mrf.mxu0  ;;  %v2563_v50 = vpop.f32.mrf.mxu1 }
 0x5ca   :  { %v8825_v38 = vpop.f32.mrf.mxu1  ;;  %v2666_v17 = vpop.f32.mrf.mxu0 }
 0x5cb   :  { %9631 = vst [vmem:[#allocation117_spill] sm:$0xff] %v8825_v38  ;;  %v2410_v38 = vadd.f32 %v2359_v48, %v2203_v36 }
 0x5cc   :  { %v8827_v39 = vpop.f32.mrf.mxu1  ;;  %v2668_v5 = vpop.f32.mrf.mxu0 }
 0x5cd   :  { %9632 = vst [vmem:[#allocation118_spill] sm:$0xff] %v8827_v39  ;;  %v2408_v39 = vadd.f32 %v2398_v35, %v2242_v31  ;;  %v2719_v51 = vadd.f32 %v2668_v5, %v2571_v7  ;;  %v2575_v26 = vadd.f32 %v2524_v34, %v2410_v38  ;;  %v2412_v31 = vadd.f32 %v2402_v11, %v2246_v23 }
 0x5ce   :  { %v2670_v47 = vpop.f32.mrf.mxu0  ;;  %v2709_v49 = vpop.f32.mrf.mxu1 }
 0x5cf   :  { %v2573_v14 = vadd.f32 %v2563_v50, %v2408_v39 }
 0x5d0   :  { %v2672_v2 = vpop.f32.mrf.mxu0  ;;  %v2711_v0 = vpop.f32.mrf.mxu1 }
 0x5d1   :  { %v2723_v7 = vadd.f32 %v2672_v2, %v2575_v26  ;;  %v2721_v13 = vadd.f32 %v2711_v0, %v2573_v14 }
 0x5d2   :  { %v8829_v3 = vpop.f32.mrf.mxu1  ;;  %v2831_v28 = vpop.f32.mrf.mxu0 }
 0x5d3   :  { %9633 = vst [vmem:[#allocation119_spill] sm:$0xff] %v8829_v3  ;;  %v2570_v3 = vadd.f32 %v2518_v4, %v2405_v58 }
 0x5d4   :  { %v8831_v40 = vpop.f32.mrf.mxu1  ;;  %v2833_v29 = vpop.f32.mrf.mxu0 }
 0x5d5   :  { %9634 = vst [vmem:[#allocation120_spill] sm:$0xff] %v8831_v40  ;;  %v2718_v6 = vadd.f32 %v2666_v17, %v2570_v3  ;;  %v2884_v53 = vadd.f32 %v2833_v29, %v2719_v51  ;;  %v9637_v3 = vld [vmem:[#allocation116_spill] sm:$0xff]  ;;  %v2722_v17 = vadd.f32 %v2670_v47, %v2574_v52  ;;  %v9638_v29 = vld [vmem:[#allocation118_spill] sm:$0xff] }
 0x5d6   :  { %v2835_v25 = vpop.f32.mrf.mxu0  ;;  %v2874_v41 = vpop.f32.mrf.mxu1  ;;  %v2411_v5 = vadd.f32 %v9637_v3, %v2244_v45  ;;  %v2577_v38 = vadd.f32 %v9638_v29, %v2412_v31 }
 0x5d7   :  { %v2883_v58 = vadd.f32 %v2831_v28, %v2718_v6  ;;  %v2887_v46 = vadd.f32 %v2835_v25, %v2722_v17 }
 0x5d8   :  { %v2837_v21 = vpop.f32.mrf.mxu0  ;;  %v2876_v37 = vpop.f32.mrf.mxu1 }
 0x5d9   :  { %v2888_v50 = vadd.f32 %v2837_v21, %v2723_v7  ;;  %v2886_v63 = vadd.f32 %v2876_v37, %v2721_v13 }
 0x5da   :  { %v8833_v43 = vpop.f32.mrf.mxu1  ;;  %v2996_v60 = vpop.f32.mrf.mxu0 }
 0x5db   :  { %9635 = vst [vmem:[#allocation121_spill] sm:$0xff] %v8833_v43  ;;  %v2240_v43 = vadd.f32 %v2239_v56, %v2133_v54  ;;  %v3048_v62 = vadd.f32 %v2996_v60, %v2883_v58  ;;  %v9641_v60 = vld [vmem:[#allocation119_spill] sm:$0xff] }
 0x5dc   :  { %v8835_v42 = vpop.f32.mrf.mxu1  ;;  %v2998_v61 = vpop.f32.mrf.mxu0 }
 0x5dd   :  { %9636 = vst [vmem:[#allocation122_spill] sm:$0xff] %v8835_v42  ;;  %v2407_v59 = vadd.f32 %v2396_v1, %v2240_v43  ;;  %v3049_v43 = vadd.f32 %v2998_v61, %v2884_v53  ;;  %v9640_v61 = vld [vmem:[#allocation120_spill] sm:$0xff] }
 0x5de   :  { %v3000_v24 = vpop.f32.mrf.mxu0  ;;  %v3039_v8 = vpop.f32.mrf.mxu1  ;;  %v2725_v56 = vadd.f32 %v9640_v61, %v2577_v38 }
 0x5df   :  { %v2572_v4 = vadd.f32 %v2561_v15, %v2407_v59  ;;  %v9639_v15 = vld [vmem:[#allocation117_spill] sm:$0xff]  ;;  %v3052_v33 = vadd.f32 %v3000_v24, %v2887_v46 }
 0x5e0   :  { %v3002_v44 = vpop.f32.mrf.mxu0  ;;  %v3041_v57 = vpop.f32.mrf.mxu1  ;;  %v2576_v28 = vadd.f32 %v9639_v15, %v2411_v5  ;;  %v3603_v46 = vld [vmem:[#allocation10 + $0x8] sm:$0xff] }
 0x5e1   :  { %v2720_v55 = vadd.f32 %v2709_v49, %v2572_v4  ;;  %v3053_v30 = vadd.f32 %v3002_v44, %v2888_v50  ;;  %v3051_v47 = vadd.f32 %v3041_v57, %v2886_v63 }
 0x5e2   :  { %v8837_v9 = vpop.f32.mrf.mxu1  ;;  %v3161_v12 = vpop.f32.mrf.mxu0  ;;  %v2724_v32 = vadd.f32 %v9641_v60, %v2576_v28 }
 0x5e3   :  { %v2885_v16 = vadd.f32 %v2874_v41, %v2720_v55  ;;  %v3213_v11 = vadd.f32 %v3161_v12, %v3048_v62  ;;  %v9643_v12 = vld [vmem:[#allocation121_spill] sm:$0xff]  ;;  %v3602_v55 = vld [vmem:[#allocation10] sm:$0xff] }
 0x5e4   :  { %v3045_v40 = vpop.f32.mrf.mxu1  ;;  %v3163_v42 = vpop.f32.mrf.mxu0  ;;  %v2889_v41 = vadd.f32 %v9643_v12, %v2724_v32  ;;  %v3600_v62 = vld [vmem:[#allocation12] sm:$0xff] }
 0x5e5   :  { %v3214_v19 = vadd.f32 %v3163_v42, %v3049_v43  ;;  %v3050_v27 = vadd.f32 %v3039_v8, %v2885_v16  ;;  %v9642_v42 = vld [vmem:[#allocation122_spill] sm:$0xff] }
 0x5e6   :  { %v3165_v10 = vpop.f32.mrf.mxu0  ;;  %v3204_v18 = vpop.f32.mrf.mxu1  ;;  %v2890_v1 = vadd.f32 %v9642_v42, %v2725_v56  ;;  %v3054_v24 = vadd.f32 %v8837_v9, %v2889_v41 }
 0x5e7   :  { %v3217_v35 = vadd.f32 %v3165_v10, %v3052_v33  ;;  %v3215_v51 = vadd.f32 %v3204_v18, %v3050_v27  ;;  %v7965_v27 = vmov 0.0  }
 0x5e8   :  { %v3167_v54 = vpop.f32.mrf.mxu0  ;;  %v3206_v36 = vpop.f32.mrf.mxu1  ;;  %v3055_v57 = vadd.f32 %v3045_v40, %v2890_v1  ;;  %6984 = vmatprep.subr.bf16.mxu0 %v7965_v27  ;;  %6990 = vmatprep.subr.bf16.mxu1 %v7965_v27 }
 0x5e9   :  { %v3218_v48 = vadd.f32 %v3167_v54, %v3053_v30  ;;  %v3216_v25 = vadd.f32 %v3206_v36, %v3051_v47 }
 0x5ea   :  { %v3208_v34 = vpop.f32.mrf.mxu1  ;;  %v3326_v39 = vpop.f32.mrf.mxu0 }
 0x5eb   :  { %v3378_v22 = vadd.f32 %v3326_v39, %v3213_v11  ;;  %v3219_v53 = vadd.f32 %v3208_v34, %v3054_v24  ;;  %v3601_v34 = vld [vmem:[#allocation12 + $0x8] sm:$0xff]  ;;  %v6784_v24 = vld [vmem:[#allocation21] ss:$0 sm:$0xff] }
 0x5ec   :  { %v3210_v2 = vpop.f32.mrf.mxu1  ;;  %v3328_v0 = vpop.f32.mrf.mxu0 }
 0x5ed   :  { %v3379_v49 = vadd.f32 %v3328_v0, %v3214_v19  ;;  %v3220_v14 = vadd.f32 %v3210_v2, %v3055_v57 }
 0x5ee   :  { %v3330_v21 = vpop.f32.mrf.mxu0  ;;  %v3369_v37 = vpop.f32.mrf.mxu1 }
 0x5ef   :  { %3514 = vmatprep.mubr.f32.mxu0 %v3379_v49  ;;  %v3382_v8 = vadd.f32 %v3330_v21, %v3217_v35  ;;  %v3380_v23 = vadd.f32 %v3369_v37, %v3215_v51 }
 0x5f0   :  { %v3332_v20 = vpop.f32.mrf.mxu0  ;;  %v3371_v44 = vpop.f32.mrf.mxu1  ;;  %3515 = vmatmul.mubr.f32.vlgmr.msra.gmra.mxu0 %v3378_v22 }
 0x5f1   :  { %v3383_v59 = vadd.f32 %v3332_v20, %v3218_v48  ;;  %v3381_v6 = vadd.f32 %v3371_v44, %v3216_v25  ;;  %v6785_v20 = vld [vmem:[#allocation21 + $0x1] ss:$0 sm:$0xff] }
 0x5f2   :  { %v3373_v26 = vpop.f32.mrf.mxu1 }
 0x5f3   :  { %3519 = vmatprep.mubr.f32.mxu0 %v3383_v59  ;;  %3589 = vmatprep.mubr.f32.mxu1 %v3381_v6  ;;  %v3384_v18 = vadd.f32 %v3373_v26, %v3219_v53 }
 0x5f4   :  { %v3375_v45 = vpop.f32.mrf.mxu1  ;;  %3520 = vmatmul.mubr.f32.gmra.mxu0 %v3382_v8  ;;  %3590 = vmatmul.mubr.f32.vlgmr.msra.gmra.mxu1 %v3380_v23 }
 0x5f5   :  { %v3385_v10 = vadd.f32 %v3375_v45, %v3220_v14  ;;  %6986 = vmatprep.mubr.msk.bf16.mxu0 %vm7966_vm4, %v7965_v27  ;;  %v7147_v14 = vld [vmem:[#allocation16 + $0x8] sm:$0xff]  }
 0x5f7   :  { %3594 = vmatprep.mubr.f32.mxu1 %v3385_v10  ;;  %v6790_v10 = vld [vmem:[#allocation21 + $0x2] ss:$0 sm:$0xff] }
 0x5f8   :  { %3595 = vmatmul.mubr.f32.gmra.mxu1 %v3384_v18 }
 0x5f9   :  { %6992 = vmatprep.mubr.msk.bf16.mxu1 %vm7966_vm4, %v7965_v27 }
 0x6b0   :  { %v6917_v52 = vpop.f32.mrf.mxu0 }
 0x6b2   :  { %v6918_v40 = vpop.f32.mrf.mxu0 }
 0x6b3   :  { %v6919_v9 = vadd.f32 %v6918_v40, %v6917_v52 }
 0x6b4   :  { %v6920_v4 = vpop.f32.mrf.mxu0  ;;  %v6955_v58 = vpop.f32.mrf.mxu1 }
 0x6b6   :  { %v6956_v54 = vpop.f32.mrf.mxu1  ;;  %v6921_v31 = vpop.f32.mrf.mxu0 }
 0x6b7   :  { %v6957_v36 = vadd.f32 %v6956_v54, %v6955_v58  ;;  %v6922_v3 = vadd.f32 %v6921_v31, %v6920_v4  ;;  %v7148_v4 = vld [vmem:[#allocation16] sm:$0xff]  }
 0x6b8   :  { %v6958_v7 = vpop.f32.mrf.mxu1 }
 0x6b9   :  { %v3592_v13 = vadd.f32 %v6957_v36, %v6919_v9  ;;  %v6793_v9 = vld [vmem:[#allocation21 + $0x3] ss:$0 sm:$0xff]  ;;  %v6796_v36 = vld [vmem:[#allocation21 + $0x4] ss:$0 sm:$0xff] }
 0x6ba   :  { %v6959_v43 = vpop.f32.mrf.mxu1 }
 0x6bb   :  { %v6960_v5 = vadd.f32 %v6959_v43, %v6958_v7  ;;  %3604 = vadd.xlane.f32.xlu0 %v3592_v13 }
 0x6bd   :  { %v3597_v17 = vadd.f32 %v6960_v5, %v6922_v3  ;;  %v7149_v3 = vld [vmem:[#allocation16 + $0x10] sm:$0xff]  }
 0x6bf   :  { %3606 = vadd.xlane.f32.xlu1 %v3597_v17 }
 0x6d0   :  { %3629 = vperm.xlu1 %7135, %v3602_v55  }
 0x6d4   :  { %3641 = vperm.xlu1 %7135, %v3600_v62   ;;  %v6799_v62 = vld [vmem:[#allocation21 + $0x5] ss:$0 sm:$0xff] }
 0x6d8   :  { %3646 = vperm.xlu1 %7135, %v3601_v34  }
 0x744   :  { %v3605_v39 = vpop.xlane.xlu0 %3604 }
 0x745   :  { %v3609_v29 = vmul.f32 0.0078125, %v3605_v39 }
 0x747   :  { %v3611_v38 = vsub.f32 %v3592_v13, %v3609_v29 }
 0x748   :  { %v3607_v50 = vpop.xlane.xlu1 %3606 }
 0x749   :  { %v3610_v63 = vmul.f32 0.0078125, %v3607_v50  ;;  %v3613_v19 = vmul.f32 %v3611_v38, %v3611_v38  ;;  %v7150_v50 = vld [vmem:[#allocation16 + $0x18] sm:$0xff]  }
 0x74b   :  { %v3612_v15 = vsub.f32 %v3597_v17, %v3610_v63  ;;  %3615 = vadd.xlane.f32.xlu0 %v3613_v19 }
 0x74c   :  { %v3630_v30 = vpop.permute.xlu1 %3629 }
 0x74d   :  { %v3614_v28 = vmul.f32 %v3612_v15, %v3612_v15 }
 0x74f   :  { %3617 = vadd.xlane.f32.xlu0 %v3614_v28 }
 0x750   :  { %v3642_v60 = vpop.permute.xlu1 %3641 }
 0x754   :  { %v3647_v48 = vpop.permute.xlu1 %3646 }
 0x765   :  { %3634 = vperm.xlu0 %7134, %v3603_v46  }
 0x7d4   :  { %v3616_v16 = vpop.xlane.xlu0 %3615 }
 0x7d5   :  { %v3619_v11 = vmul.f32 0.0078125, %v3616_v16 }
 0x7d7   :  { %v3621_v2 = vadd.f32 1e-05, %v3619_v11  ;;  %v7151_v11 = vld [vmem:[#allocation16 + $0x20] sm:$0xff]  }
 0x7d8   :  { %v3618_v0 = vpop.xlane.xlu0 %3617 }
 0x7d9   :  { %7178 = vrsqrt.f32 %v3621_v2  ;;  %v3620_v61 = vmul.f32 0.0078125, %v3618_v0 }
 0x7db   :  { %v3622_v56 = vadd.f32 1e-05, %v3620_v61  ;;  %v6805_v61 = vld [vmem:[#allocation21 + $0x7] ss:$0 sm:$0xff] }
 0x7dd   :  { %7180 = vrsqrt.f32 %v3622_v56 }
 0x7e0   :  { %v3635_v37 = vpop.permute.xlu0 %3634 }
 0x7e6   :  { %v7179_v47 = vpop.eup %7178 }
 0x7e7   :  { %v3625_v49 = vmul.f32 %v7179_v47, %v3611_v38  ;;  %v7152_v47 = vld [vmem:[#allocation16 + $0x28] sm:$0xff]  }
 0x7e9   :  { %v3637_v32 = vmul.f32 %v3630_v30, %v3625_v49 }
 0x7ea   :  { %v7181_v33 = vpop.eup %7180 }
 0x7eb   :  { %v3649_v22 = vadd.f32 %v3642_v60, %v3637_v32  ;;  %v3626_v21 = vmul.f32 %v7181_v33, %v3612_v15  ;;  %v6802_v15 = vld [vmem:[#allocation21 + $0x6] ss:$0 sm:$0xff]  ;;  %v6808_v32 = vld [vmem:[#allocation21 + $0x8] ss:$0 sm:$0xff] }
 0x7ed   :  { %vm3651_vm2 = vcmp.gt.f32.partialorder %v3649_v22, 0.0  ;;  %v3653_v42 = vmul.f32 0.1, %v3649_v22  ;;  %v3638_v1 = vmul.f32 %v3635_v37, %v3626_v21  ;;  %v7153_v37 = vld [vmem:[#allocation16 + $0x30] sm:$0xff]  }
 0x7ef   :  { %v8856_v25 = vsel %vm3651_vm2, %v3649_v22, %v3653_v42  ;;  %v3650_v12 = vadd.f32 %v3647_v48, %v3638_v1 }
 0x7f0   :  { %3675 = vrot.lane.b32.xlu0 %v8856_v25, %s7926_s23  ;;  %v3931_v55 = vmul.f32 %v6796_v36, %v8856_v25 }
 0x7f1   :  { %vm3652_vm11 = vcmp.gt.f32.partialorder %v3650_v12, 0.0  ;;  %v3654_v41 = vmul.f32 0.1, %v3650_v12 }
 0x7f3   :  { %v8860_v35 = vsel %vm3652_vm11, %v3650_v12, %v3654_v41  ;;  %v7154_v12 = vld [vmem:[#allocation16 + $0x38] sm:$0xff]   ;;  %v7155_v41 = vld [vmem:[#allocation16 + $0x40] sm:$0xff]  }
 0x7f4   :  { %3659 = vrot.lane.b32.xlu0 %v8856_v25, %s7967_s21  ;;  %3677 = vrot.lane.b32.xlu1 %v8860_v35, %s7926_s23  ;;  %s7970_s23 = smov 120   ;;  %v3932_v7 = vmul.f32 %v6796_v36, %v8860_v35 }
 0x7f6   :  { %v3936_v39 = vpack.c.bf16 %v3932_v7, %v3931_v55 }
 0x7f8   :  { %3790 = vrot.lane.b32.xlu0 %v8856_v25, %s7968_s19  ;;  %3661 = vrot.lane.b32.xlu1 %v8860_v35, %s7967_s21 }
 0x7fc   :  { %3858 = vrot.lane.b32.xlu0 %v8856_v25, %s7959_s22  ;;  %3792 = vrot.lane.b32.xlu1 %v8860_v35, %s7968_s19 }
 0x800   :  { %3988 = vrot.lane.b32.xlu0 %v8856_v25, %s7960_s5  ;;  %3860 = vrot.lane.b32.xlu1 %v8860_v35, %s7959_s22 }
 0x804   :  { %4056 = vrot.lane.b32.xlu0 %v8856_v25, %s7969_s24  ;;  %3990 = vrot.lane.b32.xlu1 %v8860_v35, %s7960_s5 }
 0x808   :  { %4124 = vrot.lane.b32.xlu0 %v8856_v25, %s7970_s23  ;;  %4058 = vrot.lane.b32.xlu1 %v8860_v35, %s7969_s24 }
 0x80c   :  { %4192 = vrot.lane.b32.xlu0 %v8856_v25, %s7971_s10  ;;  %4126 = vrot.lane.b32.xlu1 %v8860_v35, %s7970_s23 }
 0x810   :  { %4194 = vrot.lane.b32.xlu1 %v8860_v35, %s7971_s10 }
 0x862   :  { %v3676_v51 = vpop.permute.xlu0 %3675 }
 0x863   :  { %v3686_v59 = vmul.f32 %v6785_v20, %v3676_v51 }
 0x866   :  { %v3678_v44 = vpop.permute.xlu1 %3677  ;;  %v3660_v57 = vpop.permute.xlu0 %3659 }
 0x867   :  { %v3687_v6 = vmul.f32 %v6785_v20, %v3678_v44  ;;  %v3670_v53 = vmul.f32 %v6784_v24, %v3660_v57 }
 0x869   :  { %v3691_v8 = vpack.c.bf16 %v3687_v6, %v3686_v59 }
 0x86a   :  { %v3662_v23 = vpop.permute.xlu1 %3661  ;;  %v3791_v26 = vpop.permute.xlu0 %3790 }
 0x86b   :  { %v3671_v45 = vmul.f32 %v6784_v24, %v3662_v23  ;;  %6985 = vmatpush3.bf16.msra.mxu0 %v3691_v8  ;;  %v3801_v58 = vmul.f32 %v6790_v10, %v3791_v26 }
 0x86c   :  { %6996 = vmatprep.subr.bf16.mxu0 %v7965_v27 }
 0x86d   :  { %v3674_v18 = vpack.c.bf16 %v3671_v45, %v3670_v53 }
 0x86e   :  { %v3793_v52 = vpop.permute.xlu1 %3792  ;;  %6987 = vmatmul.mubr.msk.bf16.vlgmr.msra.gmra.mxu0 %vm580_vm0, %v7147_v14  ;;  %v3859_v40 = vpop.permute.xlu0 %3858 }
 0x86f   :  { %v3802_v54 = vmul.f32 %v6790_v10, %v3793_v52  ;;  %6991 = vmatpush3.bf16.msra.mxu1 %v3674_v18  ;;  %6998 = vmatprep.mubr.msk.bf16.mxu0 %vm7966_vm4, %v7965_v27  ;;  %v3869_v5 = vmul.f32 %v6793_v9, %v3859_v40 }
 0x870   :  { %7002 = vmatprep.subr.bf16.mxu1 %v7965_v27 }
 0x871   :  { %v3806_v31 = vpack.c.bf16 %v3802_v54, %v3801_v58 }
 0x872   :  { %v3861_v13 = vpop.permute.xlu1 %3860  ;;  %6993 = vmatmul.mubr.msk.bf16.vlgmr.msra.gmra.mxu1 %vm580_vm0, %v7148_v4  ;;  %v3989_v43 = vpop.permute.xlu0 %3988 }
 0x873   :  { %v3870_v17 = vmul.f32 %v6793_v9, %v3861_v13  ;;  %6997 = vmatpush3.bf16.msra.mxu0 %v3806_v31  ;;  %7004 = vmatprep.mubr.msk.bf16.mxu1 %vm7966_vm4, %v7965_v27  ;;  %v3999_v63 = vmul.f32 %v6799_v62, %v3989_v43 }
 0x874   :  { %7008 = vmatprep.subr.bf16.mxu0 %v7965_v27 }
 0x875   :  { %v3874_v34 = vpack.c.bf16 %v3870_v17, %v3869_v5 }
 0x876   :  { %v3991_v29 = vpop.permute.xlu1 %3990  ;;  %6999 = vmatmul.mubr.msk.bf16.vlgmr.msra.gmra.mxu0 %vm580_vm0, %v7149_v3  ;;  %v4057_v38 = vpop.permute.xlu0 %4056 }
 0x877   :  { %v4000_v19 = vmul.f32 %v6799_v62, %v3991_v29  ;;  %7003 = vmatpush3.bf16.msra.mxu1 %v3874_v34  ;;  %7009 = vmatpush3.bf16.msra.mxu0 %v3936_v39  ;;  %v4067_v2 = vmul.f32 %v6802_v15, %v4057_v38 }
 0x878   :  { %7014 = vmatprep.subr.bf16.mxu1 %v7965_v27  ;;  %7010 = vmatprep.mubr.msk.bf16.mxu0 %vm7966_vm4, %v7965_v27 }
 0x879   :  { %v4004_v28 = vpack.c.bf16 %v4000_v19, %v3999_v63  ;;  %7020 = vmatprep.subr.bf16.mxu0 %v7965_v27 }
 0x87a   :  { %v4059_v46 = vpop.permute.xlu1 %4058  ;;  %7005 = vmatmul.mubr.msk.bf16.vlgmr.msra.gmra.mxu1 %vm580_vm0, %v7150_v50  ;;  %v4125_v16 = vpop.permute.xlu0 %4124 }
 0x87b   :  { %v4068_v0 = vmul.f32 %v6802_v15, %v4059_v46  ;;  %7015 = vmatpush3.bf16.msra.mxu1 %v4004_v28  ;;  %7016 = vmatprep.mubr.msk.bf16.mxu1 %vm7966_vm4, %v7965_v27  ;;  %v4135_v49 = vmul.f32 %v6805_v61, %v4125_v16 }
 0x87c   :  { %7026 = vmatprep.subr.bf16.mxu1 %v7965_v27 }
 0x87d   :  { %v4072_v56 = vpack.c.bf16 %v4068_v0, %v4067_v2 }
 0x87e   :  { %v4127_v30 = vpop.permute.xlu1 %4126  ;;  %7011 = vmatmul.mubr.msk.bf16.vlgmr.msra.gmra.mxu0 %vm580_vm0, %v7151_v11  ;;  %v4193_v33 = vpop.permute.xlu0 %4192 }
 0x87f   :  { %v4136_v60 = vmul.f32 %v6805_v61, %v4127_v30  ;;  %7021 = vmatpush3.bf16.msra.mxu0 %v4072_v56  ;;  %7022 = vmatprep.mubr.msk.bf16.mxu0 %vm7966_vm4, %v7965_v27  ;;  %v4203_v42 = vmul.f32 %v6808_v32, %v4193_v33  ;;  %v4262_v33 = vld [vmem:[#allocation18] sm:$0xff] }
 0x880   :  { %7032 = vmatprep.subr.bf16.mxu0 %v7965_v27 }
 0x881   :  { %v4140_v22 = vpack.c.bf16 %v4136_v60, %v4135_v49 }
 0x882   :  { %v4195_v21 = vpop.permute.xlu1 %4194  ;;  %7017 = vmatmul.mubr.msk.bf16.vlgmr.msra.gmra.mxu1 %vm580_vm0, %v7152_v47 }
 0x883   :  { %v4204_v1 = vmul.f32 %v6808_v32, %v4195_v21  ;;  %7027 = vmatpush3.bf16.msra.mxu1 %v4140_v22  ;;  %7028 = vmatprep.mubr.msk.bf16.mxu1 %vm7966_vm4, %v7965_v27  ;;  %v4260_v22 = vld [vmem:[#allocation19] sm:$0xff]  ;;  %v4261_v21 = vld [vmem:[#allocation19 + $0x8] sm:$0xff] }
 0x885   :  { %v4208_v48 = vpack.c.bf16 %v4204_v1, %v4203_v42 }
 0x886   :  { %7023 = vmatmul.mubr.msk.bf16.vlgmr.msra.gmra.mxu0 %vm580_vm0, %v7153_v37 }
 0x887   :  { %7033 = vmatpush3.bf16.msra.mxu0 %v4208_v48  ;;  %7034 = vmatprep.mubr.msk.bf16.mxu0 %vm7966_vm4, %v7965_v27 }
 0x888   :  { %7044 = vmatprep.subr.bf16.mxu0 %v7965_v27 }
 0x88a   :  { %7029 = vmatmul.mubr.msk.bf16.vlgmr.msra.gmra.mxu1 %vm580_vm0, %v7154_v12 }
 0x88e   :  { %7035 = vmatmul.mubr.msk.bf16.vlgmr.msra.gmra.mxu0 %vm580_vm0, %v7155_v41 }
 0x88f   :  { %7046 = vmatprep.mubr.msk.bf16.mxu0 %vm7966_vm4, %v7965_v27 }
 0x92e   :  { %v3734_v51 = vpop.f32.mrf.mxu0 }
 0x930   :  { %v6988_v20 = vpop.f32.mrf.mxu0 }
 0x932   :  { %v3737_v44 = vpop.f32.mrf.mxu0  ;;  %v3783_v57 = vpop.f32.mrf.mxu1 }
 0x933   :  { %v3784_v58 = vadd.f32 %v3783_v57, %v3734_v51 }
 0x934   :  { %v6989_v59 = vpop.f32.mrf.mxu0  ;;  %v6994_v6 = vpop.f32.mrf.mxu1 }
 0x936   :  { %v3786_v24 = vpop.f32.mrf.mxu1  ;;  %v3849_v8 = vpop.f32.mrf.mxu0 }
 0x937   :  { %v3856_v36 = vadd.f32 %v3849_v8, %v3784_v58  ;;  %v3787_v13 = vadd.f32 %v3786_v24, %v3737_v44  ;;  %v4263_v44 = vld [vmem:[#allocation18 + $0x8] sm:$0xff] }
 0x938   :  { %v6995_v23 = vpop.f32.mrf.mxu1  ;;  %v7000_v26 = vpop.f32.mrf.mxu0 }
 0x93a   :  { %v3852_v14 = vpop.f32.mrf.mxu0  ;;  %v3917_v53 = vpop.f32.mrf.mxu1 }
 0x93b   :  { %v3924_v43 = vadd.f32 %v3917_v53, %v3856_v36  ;;  %v3857_v17 = vadd.f32 %v3852_v14, %v3787_v13 }
 0x93c   :  { %v7001_v45 = vpop.f32.mrf.mxu0  ;;  %v7006_v10 = vpop.f32.mrf.mxu1 }
 0x93e   :  { %v3920_v18 = vpop.f32.mrf.mxu1  ;;  %v3979_v52 = vpop.f32.mrf.mxu0 }
 0x93f   :  { %v3986_v55 = vadd.f32 %v3979_v52, %v3924_v43  ;;  %v3925_v39 = vadd.f32 %v3920_v18, %v3857_v17  ;;  %v4504_v17 = vld [vmem:[#allocation31] sm:$0xf] }
 0x940   :  { %v7007_v40 = vpop.f32.mrf.mxu1  ;;  %v7012_v4 = vpop.f32.mrf.mxu0 }
 0x942   :  { %v3982_v54 = vpop.f32.mrf.mxu0  ;;  %v4047_v9 = vpop.f32.mrf.mxu1 }
 0x943   :  { %v4054_v29 = vadd.f32 %v4047_v9, %v3986_v55  ;;  %v3987_v63 = vadd.f32 %v3982_v54, %v3925_v39 }
 0x944   :  { %v7013_v31 = vpop.f32.mrf.mxu0  ;;  %v7018_v7 = vpop.f32.mrf.mxu1 }
 0x946   :  { %v4050_v3 = vpop.f32.mrf.mxu1  ;;  %v4115_v5 = vpop.f32.mrf.mxu0 }
 0x947   :  { %v4122_v19 = vadd.f32 %v4115_v5, %v4054_v29  ;;  %v4055_v46 = vadd.f32 %v4050_v3, %v3987_v63  ;;  %v4549_v29 = vld [vmem:[#allocation33] sm:$0xff]  ;;  %v4636_v63 = vld [vmem:[#allocation36 + $0x1e0] sm:$0xff] }
 0x948   :  { %v7019_v62 = vpop.f32.mrf.mxu1  ;;  %v7024_v34 = vpop.f32.mrf.mxu0 }
 0x94a   :  { %v4118_v38 = vpop.f32.mrf.mxu0  ;;  %v4183_v50 = vpop.f32.mrf.mxu1 }
 0x94b   :  { %v4190_v16 = vadd.f32 %v4183_v50, %v4122_v19  ;;  %v4123_v0 = vadd.f32 %v4118_v38, %v4055_v46  ;;  %v7156_v38 = vld [vmem:[#allocation22] sm:$0xff]   ;;  %v4638_v19 = vld [vmem:[#allocation36 + $0x1f0] sm:$0xff]  ;;  %v4632_v46 = vld [vmem:[#allocation36 + $0x1c0] sm:$0xff] }
 0x94c   :  { %v7025_v15 = vpop.f32.mrf.mxu0  ;;  %v7030_v28 = vpop.f32.mrf.mxu1  ;;  %v4637_v50 = vld [vmem:[#allocation36 + $0x1e8] sm:$0xff]  ;;  %7040 = vmatprep.mubr.msk.bf16.mxu1 %vm580_vm0, %v7156_v38  ;;  %v4583_v38 = vld [vmem:[#allocation36 + $0x38] sm:$0xff] }
 0x94d   :  { %v4633_v15 = vld [vmem:[#allocation36 + $0x1c8] sm:$0xff]  ;;  %v4635_v28 = vld [vmem:[#allocation36 + $0x1d8] sm:$0xff] }
 0x94e   :  { %v4186_v11 = vpop.f32.mrf.mxu1  ;;  %v4251_v2 = vpop.f32.mrf.mxu0 }
 0x94f   :  { %v4258_v61 = vadd.f32 %v4251_v2, %v4190_v16  ;;  %v4191_v47 = vadd.f32 %v4186_v11, %v4123_v0  ;;  %v4634_v16 = vld [vmem:[#allocation36 + $0x1d0] sm:$0xff]  ;;  %v4631_v11 = vld [vmem:[#allocation36 + $0x1b8] sm:$0xff]  ;;  %v4629_v2 = vld [vmem:[#allocation36 + $0x1a8] sm:$0xff] }
 0x950   :  { %v7031_v56 = vpop.f32.mrf.mxu1  ;;  %v7036_v30 = vpop.f32.mrf.mxu0 }
 0x951   :  { %4264 = vadd.xlane.f32.xlu0 %v4258_v61 }
 0x952   :  { %v4254_v49 = vpop.f32.mrf.mxu0 }
 0x953   :  { %v4259_v60 = vadd.f32 %v4254_v49, %v4191_v47  ;;  %v4628_v47 = vld [vmem:[#allocation36 + $0x1a0] sm:$0xff]  ;;  %v4630_v49 = vld [vmem:[#allocation36 + $0x1b0] sm:$0xff] }
 0x954   :  { %v7037_v32 = vpop.f32.mrf.mxu0 }
 0x955   :  { %4266 = vadd.xlane.f32.xlu1 %v4259_v60  ;;  %v4627_v32 = vld [vmem:[#allocation36 + $0x198] sm:$0xff] }
 0x966   :  { %4288 = vperm.xlu1 %7135, %v4262_v33   ;;  %v4624_v33 = vld [vmem:[#allocation36 + $0x180] sm:$0xff] }
 0x96a   :  { %4300 = vperm.xlu1 %7135, %v4260_v22   ;;  %v4626_v22 = vld [vmem:[#allocation36 + $0x190] sm:$0xff] }
 0x96e   :  { %4305 = vperm.xlu1 %7135, %v4261_v21   ;;  %v4623_v21 = vld [vmem:[#allocation36 + $0x178] sm:$0xff] }
 0x9da   :  { %v4265_v37 = vpop.xlane.xlu0 %4264 }
 0x9db   :  { %v4268_v42 = vmul.f32 0.0078125, %v4265_v37  ;;  %v4548_v37 = vld [vmem:[#allocation34] sm:$0xff] }
 0x9dd   :  { %v4270_v1 = vsub.f32 %v4258_v61, %v4268_v42  ;;  %v4620_v42 = vld [vmem:[#allocation36 + $0x160] sm:$0xff] }
 0x9de   :  { %v4267_v48 = vpop.xlane.xlu1 %4266 }
 0x9df   :  { %v4269_v12 = vmul.f32 0.0078125, %v4267_v48  ;;  %v4272_v41 = vmul.f32 %v4270_v1, %v4270_v1  ;;  %v4617_v48 = vld [vmem:[#allocation36 + $0x148] sm:$0xff] }
 0x9e1   :  { %v4271_v51 = vsub.f32 %v4259_v60, %v4269_v12  ;;  %4274 = vadd.xlane.f32.xlu0 %v4272_v41  ;;  %v4625_v60 = vld [vmem:[#allocation36 + $0x188] sm:$0xff]  ;;  %v4619_v12 = vld [vmem:[#allocation36 + $0x158] sm:$0xff]  ;;  %v4616_v41 = vld [vmem:[#allocation36 + $0x140] sm:$0xff] }
 0x9e2   :  { %v4289_v26 = vpop.permute.xlu1 %4288 }
 0x9e3   :  { %v4273_v20 = vmul.f32 %v4271_v51, %v4271_v51 }
 0x9e5   :  { %4276 = vadd.xlane.f32.xlu0 %v4273_v20  ;;  %v4613_v20 = vld [vmem:[#allocation36 + $0x128] sm:$0xff] }
 0x9e6   :  { %v4301_v45 = vpop.permute.xlu1 %4300 }
 0x9ea   :  { %v4306_v9 = vpop.permute.xlu1 %4305 }
 0x9fb   :  { %4293 = vperm.xlu0 %7134, %v4263_v44   ;;  %v4615_v44 = vld [vmem:[#allocation36 + $0x138] sm:$0xff] }
 0xa6a   :  { %v4275_v57 = vpop.xlane.xlu0 %4274 }
 0xa6b   :  { %v4278_v59 = vmul.f32 0.0078125, %v4275_v57  ;;  %v4612_v57 = vld [vmem:[#allocation36 + $0x120] sm:$0xff] }
 0xa6d   :  { %v4280_v6 = vadd.f32 1e-05, %v4278_v59  ;;  %v4614_v59 = vld [vmem:[#allocation36 + $0x130] sm:$0xff] }
 0xa6e   :  { %v4277_v24 = vpop.xlane.xlu0 %4276 }
 0xa6f   :  { %7182 = vrsqrt.f32 %v4280_v6  ;;  %v4279_v8 = vmul.f32 0.0078125, %v4277_v24  ;;  %v4609_v6 = vld [vmem:[#allocation36 + $0x108] sm:$0xff]  ;;  %v4611_v24 = vld [vmem:[#allocation36 + $0x118] sm:$0xff] }
 0xa71   :  { %v4281_v23 = vadd.f32 1e-05, %v4279_v8  ;;  %v4608_v8 = vld [vmem:[#allocation36 + $0x100] sm:$0xff] }
 0xa73   :  { %7184 = vrsqrt.f32 %v4281_v23  ;;  %v4610_v23 = vld [vmem:[#allocation36 + $0x110] sm:$0xff] }
 0xa76   :  { %v4294_v4 = vpop.permute.xlu0 %4293 }
 0xa7c   :  { %v7183_v14 = vpop.eup %7182 }
 0xa7d   :  { %v4284_v53 = vmul.f32 %v7183_v14, %v4270_v1  ;;  %v4622_v1 = vld [vmem:[#allocation36 + $0x170] sm:$0xff]  ;;  %v4607_v14 = vld [vmem:[#allocation36 + $0xf8] sm:$0xff] }
 0xa7f   :  { %v4296_v10 = vmul.f32 %v4289_v26, %v4284_v53  ;;  %v4605_v26 = vld [vmem:[#allocation36 + $0xe8] sm:$0xff]  ;;  %v4604_v53 = vld [vmem:[#allocation36 + $0xe0] sm:$0xff] }
 0xa80   :  { %v7185_v18 = vpop.eup %7184 }
 0xa81   :  { %v4285_v52 = vmul.f32 %v7185_v18, %v4271_v51  ;;  %v4308_v40 = vadd.f32 %v4301_v45, %v4296_v10  ;;  %v4618_v51 = vld [vmem:[#allocation36 + $0x150] sm:$0xff]  ;;  %v4601_v10 = vld [vmem:[#allocation36 + $0xc8] sm:$0xff]  ;;  %v4603_v18 = vld [vmem:[#allocation36 + $0xd8] sm:$0xff] }
 0xa82   :  { %v4606_v45 = vld [vmem:[#allocation36 + $0xf0] sm:$0xff] }
 0xa83   :  { %v4297_v58 = vmul.f32 %v4294_v4, %v4285_v52  ;;  %v4312_v54 = vmul.f32 0.1, %v4308_v40  ;;  %vm4310_vm12 = vcmp.gt.f32.partialorder %v4308_v40, 0.0  ;;  %v4600_v52 = vld [vmem:[#allocation36 + $0xc0] sm:$0xff]  ;;  %v4597_v4 = vld [vmem:[#allocation36 + $0xa8] sm:$0xff] }
 0xa85   :  { %v4309_v36 = vadd.f32 %v4306_v9, %v4297_v58  ;;  %v4314_v7 = vsel %vm4310_vm12, %v4308_v40, %v4312_v54  ;;  %v4602_v40 = vld [vmem:[#allocation36 + $0xd0] sm:$0xff]  ;;  %v4599_v58 = vld [vmem:[#allocation36 + $0xb8] sm:$0xff]  ;;  %v4596_v54 = vld [vmem:[#allocation36 + $0xa0] sm:$0xff] }
 0xa86   :  { %v4316_v43 = vadd.f32 %v4314_v7, %v8856_v25  ;;  %v7157_v25 = vld [vmem:[#allocation22 + $0x8] ss:$0 sps:$4 sm:$0x11]   ;;  %v4592_v7 = vld [vmem:[#allocation36 + $0x80] sm:$0xff] }
 0xa87   :  { %vm4311_vm13 = vcmp.gt.f32.partialorder %v4309_v36, 0.0  ;;  %v4313_v31 = vmul.f32 0.1, %v4309_v36  ;;  %v4598_v9 = vld [vmem:[#allocation36 + $0xb0] sm:$0xff] }
 0xa89   :  { %v4315_v13 = vsel %vm4311_vm13, %v4309_v36, %v4313_v31  ;;  %v4593_v36 = vld [vmem:[#allocation36 + $0x88] sm:$0xff]  ;;  %v4595_v31 = vld [vmem:[#allocation36 + $0x98] sm:$0xff] }
 0xa8a   :  { %v4317_v3 = vadd.f32 %v4315_v13, %v8860_v35  ;;  %v4639_v35 = vld [vmem:[#allocation36 + $0x1f8] sm:$0xff]  ;;  %v4594_v13 = vld [vmem:[#allocation36 + $0x90] sm:$0xff] }
 0xa8c   :  { %v4321_v5 = vpack.c.bf16 %v4317_v3, %v4316_v43  ;;  %v4589_v43 = vld [vmem:[#allocation36 + $0x68] sm:$0xff]  ;;  %v4591_v3 = vld [vmem:[#allocation36 + $0x78] sm:$0xff] }
 0xa8e   :  { %7038 = vmatprep.subr.bf16.mxu1 %v4321_v5  ;;  %7045 = vmatpush3.bf16.msra.mxu0 %v4321_v5 }
 0xa8f   :  { %7039 = vmatpush3.bf16.msra.mxu1 %v4321_v5  ;;  %4711 = vmatprep.subr.mxu0 %v4639_v35  ;;  %v4588_v5 = vld [vmem:[#allocation36 + $0x60] sm:$0xff]  ;;  %v4577_v35 = vld [vmem:[#allocation36 + $0x8] sm:$0xff] }
 0xa90   :  { %4640 = vmatprep.subr.mxu1 %v4637_v50  ;;  %v4582_v50 = vld [vmem:[#allocation36 + $0x30] sm:$0xff] }
 0xa91   :  { %7047 = vmatmul.mubr.msk.bf16.vlgmr.msra.gmra.mxu0 %vm580_vm0, %v4504_v17  ;;  %v4590_v17 = vld [vmem:[#allocation36 + $0x70] sm:$0xff] }
 0xa92   :  { %4775 = vmatprep.mubr.f32.mxu0 %v7965_v27  ;;  %7041 = vmatmul.mubr.msk.bf16.vlgmr.msra.gmra.mxu1 %vm580_vm0, %v7157_v25  ;;  %v4580_v25 = vld [vmem:[#allocation36 + $0x20] sm:$0xff] }
 0xa93   :  { %4712 = vmatpush1.msra.mxu0 %v4638_v19  ;;  %4641 = vmatpush1.msra.mxu1 %v4636_v63  ;;  %v4579_v63 = vld [vmem:[#allocation36 + $0x18] sm:$0xff]  ;;  %v4576_v19 = vld [vmem:[#allocation36] sm:$0xff] }
 0xa94   :  { %4713 = vmatprep.subr.mxu0 %v4635_v28  ;;  %4642 = vmatprep.subr.mxu1 %v4633_v15  ;;  %v4578_v15 = vld [vmem:[#allocation36 + $0x10] sm:$0xff] }
 0xa95   :  { %4714 = vmatpush1.msra.mxu0 %v4634_v16  ;;  %4643 = vmatpush1.msra.mxu1 %v4632_v46 }
 0xa96   :  { %4715 = vmatprep.subr.mxu0 %v4631_v11  ;;  %4644 = vmatprep.subr.mxu1 %v4629_v2 }
 0xa97   :  { %4704 = vmatprep.mubr.f32.mxu1 %v7965_v27  ;;  %4645 = vmatpush1.msra.mxu1 %v4628_v47  ;;  %v4621_v27 = vld [vmem:[#allocation36 + $0x168] sm:$0xff] }
 0xa98   :  { %4716 = vmatpush1.msra.mxu0 %v4630_v49  ;;  %4646 = vmatprep.subr.mxu1 %v4625_v60 }
 0xa99   :  { %4717 = vmatprep.subr.mxu0 %v4627_v32  ;;  %4647 = vmatpush1.msra.mxu1 %v4624_v33 }
 0xa9a   :  { %4718 = vmatpush1.msra.mxu0 %v4626_v22  ;;  %4648 = vmatprep.subr.mxu1 %v4621_v27  ;;  %v9644_v27 = vmov 0  }
 0xa9b   :  { %4719 = vmatprep.subr.mxu0 %v4623_v21  ;;  %4649 = vmatpush1.msra.mxu1 %v4620_v42  ;;  %v8935_v21 = vld [vmem:[#allocation40 + $0x4] ss:$8 sm:$0xf] }
 0xa9c   :  { %4720 = vmatpush1.msra.mxu0 %v4622_v1  ;;  %4650 = vmatprep.subr.mxu1 %v4617_v48  ;;  %v9646_v1 = vld [vmem:[#allocation76_spill] sm:$0xff] }
 0xa9d   :  { %4721 = vmatprep.subr.mxu0 %v4619_v12  ;;  %4651 = vmatpush1.msra.mxu1 %v4616_v41 }
 0xa9e   :  { %4722 = vmatpush1.msra.mxu0 %v4618_v51  ;;  %4652 = vmatprep.subr.mxu1 %v4613_v20  ;;  %v9647_v20 = vld [vmem:[#allocation83_spill] sm:$0xff] }
 0xa9f   :  { %4723 = vmatprep.subr.mxu0 %v4615_v44  ;;  %4653 = vmatpush1.msra.mxu1 %v4612_v57 }
 0xaa0   :  { %4724 = vmatpush1.msra.mxu0 %v4614_v59  ;;  %4654 = vmatprep.subr.mxu1 %v4609_v6  ;;  %v9648_v59 = vld [vmem:[#allocation82_spill] sm:$0xff] }
 0xaa1   :  { %4725 = vmatprep.subr.mxu0 %v4611_v24  ;;  %4655 = vmatpush1.msra.mxu1 %v4608_v8 }
 0xaa2   :  { %4726 = vmatpush1.msra.mxu0 %v4610_v23  ;;  %4656 = vmatprep.subr.mxu1 %v4605_v26 }
 0xaa3   :  { %4727 = vmatprep.subr.mxu0 %v4607_v14  ;;  %4657 = vmatpush1.msra.mxu1 %v4604_v53  ;;  %v4323_v14 = vld [vmem:[#allocation24 + $0x8] sm:$0xff]  ;;  %v4322_v53 = vld [vmem:[#allocation24] sm:$0xff] }
 0xaa4   :  { %4728 = vmatpush1.msra.mxu0 %v4606_v45  ;;  %4658 = vmatprep.subr.mxu1 %v4601_v10  ;;  %v6399_v45 = vld [vmem:[#allocation39] sm:$0xff]  ;;  %v4324_v10 = vld [vmem:[#allocation24 + $0x10] sm:$0x3] }
 0xaa5   :  { %4729 = vmatprep.subr.mxu0 %v4603_v18  ;;  %4659 = vmatpush1.msra.mxu1 %v4600_v52  ;;  %v4406_v18 = vld [vmem:[#allocation27 + $0x8] sm:$0xff]  ;;  %v6401_v52 = vld [vmem:[#allocation39 + $0x10] sm:$0x3] }
 0xaa6   :  { %4730 = vmatpush1.msra.mxu0 %v4602_v40  ;;  %4660 = vmatprep.subr.mxu1 %v4597_v4  ;;  %v4405_v40 = vld [vmem:[#allocation27] sm:$0xff]  ;;  %vm4415_vm15 = vcmp.gt.f32.partialorder %v4406_v18, 0.5  ;;  %v6400_v4 = vld [vmem:[#allocation39 + $0x8] sm:$0xff] }
 0xaa7   :  { %4731 = vmatprep.subr.mxu0 %v4599_v58  ;;  %4661 = vmatpush1.msra.mxu1 %v4596_v54  ;;  %v6441_v58 = vld [vmem:[#allocation43] sm:$0xff]  ;;  %vm4414_vm1 = vcmp.gt.f32.partialorder %v4405_v40, 0.5  ;;  %v4418_v54 = vsel %vm4415_vm15, 1, %v9644_v27 }
 0xaa8   :  { %4732 = vmatpush1.msra.mxu0 %v4598_v9  ;;  %4662 = vmatprep.subr.mxu1 %v4593_v36  ;;  %v4407_v9 = vld [vmem:[#allocation27 + $0x10] sm:$0x3]  ;;  %vm6450_vm2 = vcmp.gt.f32.partialorder %v6441_v58, 0.5  ;;  %v4417_v36 = vsel %vm4414_vm1, 1, %v9644_v27 }
 0xaa9   :  { %4733 = vmatprep.subr.mxu0 %v4595_v31  ;;  %4663 = vmatpush1.msra.mxu1 %v4592_v7  ;;  %v6443_v31 = vld [vmem:[#allocation43 + $0x10] sm:$0x3]  ;;  %vm4416_vm4 = vcmp.gt.f32.partialorder %v4407_v9, 0.5  ;;  %v6453_v7 = vsel %vm6450_vm2, 1, %v9644_v27 }
 0xaaa   :  { %4734 = vmatpush1.msra.mxu0 %v4594_v13  ;;  %4664 = vmatprep.subr.mxu1 %v4589_v43  ;;  %v6442_v13 = vld [vmem:[#allocation43 + $0x8] sm:$0xff]  ;;  %vm6452_vm11 = vcmp.gt.f32.partialorder %v6443_v31, 0.5  ;;  %v4419_v43 = vsel %vm4416_vm4, 1, %v9644_v27 }
 0xaab   :  { %4735 = vmatprep.subr.mxu0 %v4591_v3  ;;  %4665 = vmatpush1.msra.mxu1 %v4588_v5  ;;  %vm6451_vm12 = vcmp.gt.f32.partialorder %v6442_v13, 0.5  ;;  %v6455_v3 = vsel %vm6452_vm11, 1, %v9644_v27 }
 0xaac   :  { %4736 = vmatpush1.msra.mxu0 %v4590_v17  ;;  %v6454_v5 = vsel %vm6451_vm12, 1, %v9644_v27  ;;  %v4409_v17 = vld [vmem:[#allocation28 + $0x8] sm:$0xff] }
 0xb51   :  { %v4542_v55 = vpop.f32.mrf.mxu0 }
 0xb52   :  { %4550 = vadd.xlane.f32.xlu0 %v4542_v55  ;;  %v8928_v28 = vpop.f32.mrf.mxu1 }
 0xb53   :  { %v7048_v62 = vpop.f32.mrf.mxu0 }
 0xb54   :  { %v4587_v62 = vld [vmem:[#allocation36 + $0x58] sm:$0xff]  ;;  %v8930_v46 = vpop.f32.mrf.mxu1 }
 0xb55   :  { %v4545_v34 = vpop.f32.mrf.mxu0  ;;  %4737 = vmatprep.subr.mxu0 %v4587_v62  ;;  %v4411_v62 = vld [vmem:[#allocation30] sm:$0xff] }
 0xb56   :  { %v4584_v34 = vld [vmem:[#allocation36 + $0x40] sm:$0xff]  ;;  %v7043_v16 = vpop.f32.mrf.mxu1 }
 0xb57   :  { %v7049_v39 = vpop.f32.mrf.mxu0  ;;  %v4858_v16 = vld [vmem:[#allocation40 + $0x1] ss:$8 sm:$0xf] }
 0xb58   :  { %v4586_v39 = vld [vmem:[#allocation36 + $0x50] sm:$0xff]  ;;  %v8941_v48 = vpop.f32.mrf.mxu1 }
 0xb59   :  { %4738 = vmatpush1.msra.mxu0 %v4586_v39  ;;  %v4413_v39 = vld [vmem:[#allocation30 + $0x10] sm:$0x3] }
 0xb5a   :  { %4739 = vmatprep.subr.mxu0 %v4583_v38  ;;  %v6445_v38 = vld [vmem:[#allocation45 + $0x8] sm:$0xff] }
 0xb5b   :  { %4740 = vmatpush1.msra.mxu0 %v4582_v50  ;;  %v6447_v50 = vld [vmem:[%s8130_s17] sm:$0xff] }
 0xb5c   :  { %4741 = vmatprep.subr.mxu0 %v4579_v63  ;;  %v6449_v63 = vld [vmem:[%s8130_s17 + $0x10] sm:$0x3] }
 0xb5d   :  { %4742 = vmatpush1.msra.mxu0 %v4578_v15 }
 0xb68   :  { %4563 = vperm.xlu0 %7134, %v4549_v29   ;;  %v4581_v29 = vld [vmem:[#allocation36 + $0x28] sm:$0xff] }
 0xbdb   :  { %v4551_v0 = vpop.xlane.xlu0 %4550 }
 0xbdc   :  { %v4552_v61 = vmul.f32 0.0078125, %v4551_v0 }
 0xbde   :  { %v8924_v56 = vsub.f32 %v4542_v55, %v4552_v61  ;;  %v4585_v55 = vld [vmem:[#allocation36 + $0x48] sm:$0xff] }
 0xbdf   :  { %4666 = vmatprep.subr.mxu1 %v4585_v55  ;;  %v4408_v55 = vld [vmem:[#allocation28] sm:$0xff] }
 0xbe0   :  { %v4554_v30 = vmul.f32 %v8924_v56, %v8924_v56  ;;  %4667 = vmatpush1.msra.mxu1 %v4584_v34  ;;  %v4410_v34 = vld [vmem:[#allocation28 + $0x10] sm:$0x3] }
 0xbe1   :  { %4668 = vmatprep.subr.mxu1 %v4581_v29  ;;  %v4412_v29 = vld [vmem:[#allocation30 + $0x8] sm:$0xff] }
 0xbe2   :  { %4555 = vadd.xlane.f32.xlu1 %v4554_v30  ;;  %4669 = vmatpush1.msra.mxu1 %v4580_v25  ;;  %v6444_v25 = vld [vmem:[#allocation45] sm:$0xff] }
 0xbe3   :  { %4670 = vmatprep.subr.mxu1 %v4577_v35  ;;  %v4564_v47 = vpop.permute.xlu0 %4563  ;;  %v6446_v35 = vld [vmem:[#allocation45 + $0x10] sm:$0x3] }
 0xbe4   :  { %4671 = vmatpush1.msra.mxu1 %v4576_v19  ;;  %v6448_v19 = vld [vmem:[%s8130_s17 + $0x8] sm:$0xff] }
 0xbf3   :  { %4569 = vperm.xlu1 %7135, %v4548_v37   ;;  %v9645_v37 = vld [vmem:[#allocation79_spill] sm:$0xff] }
 0xbf4   :  { %v5510_v42 = vrot.slane %v8935_v21, %v9645_v37 }
 0xbf6   :  { %v8947_v44 = vmul.f32 %v5510_v42, %v9647_v20 }
 0xc6b   :  { %v4556_v11 = vpop.xlane.xlu1 %4555 }
 0xc6c   :  { %v4557_v2 = vmul.f32 0.0078125, %v4556_v11  ;;  %v9649_v11 = vld [vmem:[#allocation78_spill] sm:$0xff] }
 0xc6e   :  { %v4558_v0 = vadd.f32 1e-05, %v4557_v2  ;;  %v4875_v2 = vrot.slane %v4858_v16, %v9649_v11 }
 0xc6f   :  { %v4570_v60 = vpop.permute.xlu1 %4569 }
 0xc70   :  { %7186 = vrsqrt.f32 %v4558_v0 }
 0xc7d   :  { %v7187_v61 = vpop.eup %7186 }
 0xc7e   :  { %v4560_v30 = vmul.f32 %v7187_v61, %v8924_v56  ;;  %v5502_v56 = vrot.slane %v8935_v21, %v9646_v1  ;;  %v9650_v61 = vld [vmem:[#allocation77_spill] sm:$0xff] }
 0xc80   :  { %v4566_v49 = vmul.f32 %v4564_v47, %v4560_v30  ;;  %v8952_v6 = vmul.f32 %v5502_v56, %v9648_v59  ;;  %v4867_v30 = vrot.slane %v4858_v16, %v9650_v61  ;;  %v4871_v47 = vrot.slane %v4858_v16, %v9645_v37  ;;  %v4803_v59 = vld [vmem:[#allocation40] ss:$8 sm:$0xf] }
 0xc81   :  { %v4820_v31 = vrot.slane %v4803_v59, %v9649_v11 }
 0xc82   :  { %v4572_v32 = vadd.f32 %v4570_v60, %v4566_v49 }
 0xc84   :  { %vm4573_vm14 = vcmp.gt.f32.partialorder %v4572_v32, 0.0  ;;  %v4574_v33 = vmul.f32 0.1, %v4572_v32 }
 0xc86   :  { %v4575_v22 = vsel %vm4573_vm14, %v4572_v32, %v4574_v33  ;;  %v4863_v32 = vrot.slane %v4858_v16, %v9646_v1 }
 0xc87   :  { %4705 = vmatmul.mubr.f32.vlgmr.msra.gmra.mxu1 %v4575_v22  ;;  %4776 = vmatmul.mubr.f32.vlgmr.msra.gmra.mxu0 %v4575_v22  ;;  %v9651_v22 = vld [vmem:[#allocation87_spill] sm:$0xff] }
 0xc88   :  { %4993 = vmatprep.mubr.bf16.mxu0 %v9644_v27  ;;  %4942 = vmatprep.mubr.bf16.mxu1 %v9644_v27 }
 0xd47   :  { %v4706_v12 = vpop.f32.mrf.mxu1  ;;  %v4777_v41 = vpop.f32.mrf.mxu0 }
 0xd48   :  { %4843 = vrot.lane.b32.xlu1 %v4706_v12, %s7955_s11  ;;  %v8944_v51 = vmul.f32 %v5510_v42, %v4777_v41  ;;  %v8949_v57 = vmul.f32 %v5502_v56, %v4706_v12  ;;  %v4887_v42 = vmul.f32 %v4875_v2, %v9651_v22 }
 0xd49   :  { %v8954_v24 = vpop.f32.mrf.mxu0  ;;  %v8963_v26 = vpop.f32.mrf.mxu1 }
 0xd4a   :  { %4840 = vrot.lane.b32.xlu0 %v8954_v24, %s7955_s11  ;;  %v5533_v8 = vpack.c.bf16 %v8947_v44, %v8944_v51  ;;  %v5531_v23 = vpack.c.bf16 %v8952_v6, %v8949_v57  ;;  %v5865_v51 = vld [vmem:[#allocation40 + $0x6] ss:$8 sm:$0xf] }
 0xd4c   :  { %4847 = vrot.lane.b32.xlu1 %v4777_v41, %s7955_s11 }
 0xd4e   :  { %4845 = vrot.lane.b32.xlu0 %v8963_v26, %s7955_s11 }
 0xd50   :  { %4789 = vrot.lane.b32.xlu1 %v4706_v12, %s7957_s15 }
 0xd52   :  { %4783 = vrot.lane.b32.xlu0 %v8954_v24, %s7957_s15 }
 0xd54   :  { %4793 = vrot.lane.b32.xlu1 %v4777_v41, %s7957_s15 }
 0xd56   :  { %4791 = vrot.lane.b32.xlu0 %v8963_v26, %s7957_s15 }
 0xd58   :  { %5131 = vrot.lane.b32.xlu1 %v4706_v12, %s7958_s13 }
 0xd5a   :  { %5128 = vrot.lane.b32.xlu0 %v8954_v24, %s7958_s13 }
 0xd5c   :  { %5135 = vrot.lane.b32.xlu1 %v4777_v41, %s7958_s13 }
 0xd5e   :  { %5133 = vrot.lane.b32.xlu0 %v8963_v26, %s7958_s13 }
 0xd60   :  { %5315 = vrot.lane.b32.xlu1 %v4706_v12, %s7959_s22 }
 0xd62   :  { %5312 = vrot.lane.b32.xlu0 %v8954_v24, %s7959_s22 }
 0xd64   :  { %5319 = vrot.lane.b32.xlu1 %v4777_v41, %s7959_s22 }
 0xd66   :  { %5317 = vrot.lane.b32.xlu0 %v8963_v26, %s7959_s22 }
 0xd68   :  { %5665 = vrot.lane.b32.xlu1 %v8963_v26, %s7960_s5 }
 0xd6a   :  { %5663 = vrot.lane.b32.xlu0 %v4706_v12, %s7960_s5 }
 0xd6c   :  { %5669 = vrot.lane.b32.xlu1 %v8954_v24, %s7960_s5 }
 0xd6e   :  { %5667 = vrot.lane.b32.xlu0 %v4777_v41, %s7960_s5 }
 0xd70   :  { %5849 = vrot.lane.b32.xlu1 %v8963_v26, %s7961_s6 }
 0xd72   :  { %5847 = vrot.lane.b32.xlu0 %v4706_v12, %s7961_s6 }
 0xd74   :  { %5853 = vrot.lane.b32.xlu1 %v8954_v24, %s7961_s6 }
 0xd76   :  { %5851 = vrot.lane.b32.xlu0 %v4777_v41, %s7961_s6 }
 0xd78   :  { %6033 = vrot.lane.b32.xlu1 %v8963_v26, %s7962_s26 }
 0xd7a   :  { %6031 = vrot.lane.b32.xlu0 %v4706_v12, %s7962_s26 }
 0xd7c   :  { %6037 = vrot.lane.b32.xlu1 %v8954_v24, %s7962_s26 }
 0xd7e   :  { %6035 = vrot.lane.b32.xlu0 %v4777_v41, %s7962_s26 }
 0xd80   :  { %6217 = vrot.lane.b32.xlu1 %v8963_v26, %s7963_s28 }
 0xd82   :  { %6215 = vrot.lane.b32.xlu0 %v4706_v12, %s7963_s28 }
 0xd84   :  { %6221 = vrot.lane.b32.xlu1 %v8954_v24, %s7963_s28 }
 0xd86   :  { %6219 = vrot.lane.b32.xlu0 %v4777_v41, %s7963_s28  ;;  %v9652_v41 = vld [vmem:[#allocation85_spill] sm:$0xff] }
 0xd87   :  { %v4885_v20 = vmul.f32 %v4867_v30, %v9652_v41 }
 0xd88   :  { %4332 = vperm.xlu1 %7135, %v4323_v14  }
 0xd8a   :  { %4327 = vperm.xlu0 %7134, %v4322_v53  }
 0xd8c   :  { %6404 = vperm.xlu1 %7135, %v6399_v45  }
 0xd8e   :  { %4337 = vperm.xlu0 %7134, %v4324_v10   ;;  %v9653_v10 = vld [vmem:[#allocation86_spill] sm:$0xff] }
 0xd8f   :  { %v4886_v18 = vmul.f32 %v4871_v47, %v9653_v10  ;;  %v9659_v10 = vld [vmem:[#allocation95_spill] sm:$0xff] }
 0xd90   :  { %6414 = vperm.xlu1 %7135, %v6401_v52  }
 0xd92   :  { %6409 = vperm.xlu0 %7134, %v6400_v4  }
 0xd94   :  { %4424 = vperm.xlu1 %7135, %v4418_v54   ;;  %v9654_v54 = vld [vmem:[#allocation84_spill] sm:$0xff] }
 0xd95   :  { %v4884_v9 = vmul.f32 %v4863_v32, %v9654_v54 }
 0xd96   :  { %4421 = vperm.xlu0 %7134, %v4417_v36   ;;  %v4812_v36 = vrot.slane %v4803_v59, %v9650_v61 }
 0xd98   :  { %6457 = vperm.xlu1 %7135, %v6453_v7  }
 0xd9a   :  { %4427 = vperm.xlu0 %7134, %v4419_v43  }
 0xd9c   :  { %6463 = vperm.xlu1 %7135, %v6455_v3   ;;  %v4816_v3 = vrot.slane %v4803_v59, %v9645_v37 }
 0xd9e   :  { %6460 = vperm.xlu0 %7134, %v6454_v5  }
 0xda0   :  { %4448 = vperm.xlu1 %7135, %v4409_v17   ;;  %v7158_v17 = vld [vmem:[#allocation37 + $0xc] sm:$0xff]  }
 0xda2   :  { %4443 = vperm.xlu0 %7134, %v4408_v55  }
 0xda4   :  { %4482 = vperm.xlu1 %7135, %v4411_v62  }
 0xda6   :  { %4453 = vperm.xlu0 %7134, %v4410_v34   ;;  %v4808_v34 = vrot.slane %v4803_v59, %v9646_v1 }
 0xda8   :  { %4492 = vperm.xlu1 %7135, %v4413_v39  }
 0xdaa   :  { %4487 = vperm.xlu0 %7134, %v4412_v29   ;;  %v9655_v29 = vld [vmem:[#allocation88_spill] sm:$0xff] }
 0xdac   :  { %6511 = vperm.xlu1 %7135, %v6445_v38   ;;  %v4830_v38 = vmul.f32 %v4812_v36, %v9655_v29  ;;  %v7160_v29 = vld [vmem:[#allocation37] sm:$0xff]  }
 0xdae   :  { %6506 = vperm.xlu0 %7134, %v6444_v25   ;;  %v9656_v25 = vld [vmem:[#allocation91_spill] sm:$0xff] }
 0xdb0   :  { %6617 = vperm.xlu1 %7135, %v6447_v50   ;;  %v4832_v50 = vmul.f32 %v4820_v31, %v9656_v25 }
 0xdb2   :  { %6516 = vperm.xlu0 %7134, %v6446_v35  }
 0xdb4   :  { %6627 = vperm.xlu1 %7135, %v6449_v63  }
 0xdb6   :  { %6622 = vperm.xlu0 %7134, %v6448_v19   ;;  %v9657_v19 = vld [vmem:[#allocation90_spill] sm:$0xff] }
 0xdba   :  { %v4844_v15 = vpop.permute.xlu1 %4843 }
 0xdbc   :  { %v4841_v0 = vpop.permute.xlu0 %4840 }
 0xdbd   :  { %v4856_v49 = vsel %vm580_vm0, %v4841_v0, %v4844_v15 }
 0xdbe   :  { %v4848_v60 = vpop.permute.xlu1 %4847  ;;  %v4880_v14 = vmul.f32 %v4863_v32, %v4856_v49 }
 0xdbf   :  { %v4851_v33 = vsel %vm580_vm0, %v4848_v60, %v4841_v0 }
 0xdc0   :  { %v4883_v56 = vmul.f32 %v4875_v2, %v4851_v33  ;;  %v4846_v12 = vpop.permute.xlu0 %4845  ;;  %v4892_v5 = vpack.c.bf16 %v4884_v9, %v4880_v14  ;;  %v9658_v33 = vld [vmem:[#allocation89_spill] sm:$0xff]  ;;  %v7159_v14 = vld [vmem:[#allocation37 + $0x14] ss:$0 sps:$4 sm:$0x11]  }
 0xdc1   :  { %v4849_v53 = vsel %vm580_vm0, %v4844_v15, %v4846_v12  ;;  %v4850_v45 = vsel %vm580_vm0, %v4846_v12, %v4848_v60  ;;  %v4831_v15 = vmul.f32 %v4816_v3, %v9657_v19  ;;  %v4829_v22 = vmul.f32 %v4808_v34, %v9658_v33 }
 0xdc2   :  { %v4881_v52 = vmul.f32 %v4867_v30, %v4849_v53  ;;  %v4882_v40 = vmul.f32 %v4871_v47, %v4850_v45  ;;  %v4790_v4 = vpop.permute.xlu1 %4789  ;;  %v4895_v58 = vpack.c.bf16 %v4887_v42, %v4883_v56  ;;  %v5146_v30 = vld [vmem:[#allocation40 + $0x2] ss:$8 sm:$0xf] }
 0xdc3   :  { %v5163_v42 = vrot.slane %v5146_v30, %v9649_v11  ;;  %v5159_v54 = vrot.slane %v5146_v30, %v9645_v37 }
 0xdc4   :  { %v4894_v7 = vpack.c.bf16 %v4886_v18, %v4882_v40  ;;  %4975 = vmatprep.subr.bf16.mxu0 %v4895_v58  ;;  %v4784_v13 = vpop.permute.xlu0 %4783  ;;  %v4893_v43 = vpack.c.bf16 %v4885_v20, %v4881_v52  ;;  %v5155_v20 = vrot.slane %v5146_v30, %v9650_v61 }
 0xdc5   :  { %v4802_v55 = vsel %vm531_vm3, %v4784_v13, %v4790_v4  ;;  %v5175_v18 = vmul.f32 %v5163_v42, %v9659_v10 }
 0xdc6   :  { %v4794_v62 = vpop.permute.xlu1 %4793  ;;  %4924 = vmatprep.subr.bf16.mxu1 %v4893_v43  ;;  %4976 = vmatpush1.bf16.msra.mxu0 %v4894_v7  ;;  %v4825_v16 = vmul.f32 %v4808_v34, %v4802_v55 }
 0xdc7   :  { %v4797_v39 = vsel %vm531_vm3, %v4794_v62, %v4784_v13  ;;  %4925 = vmatpush1.bf16.msra.mxu1 %v4892_v5  ;;  %v5330_v5 = vld [vmem:[#allocation40 + $0x3] ss:$8 sm:$0xf] }
 0xdc8   :  { %v4828_v35 = vmul.f32 %v4820_v31, %v4797_v39  ;;  %v4792_v63 = vpop.permute.xlu0 %4791  ;;  %v4836_v59 = vpack.c.bf16 %v4829_v22, %v4825_v16  ;;  %v9663_v16 = vld [vmem:[#allocation99_spill] sm:$0xff] }
 0xdc9   :  { %v4795_v2 = vsel %vm531_vm3, %v4790_v4, %v4792_v63  ;;  %v4796_v0 = vsel %vm531_vm3, %v4792_v63, %v4794_v62  ;;  %6823 = vmatmul.mubr.msk.bf16.vlgmr.msra.gmra.mxu0 %vm580_vm0, %v7158_v17  ;;  %v9660_v4 = vld [vmem:[#allocation92_spill] sm:$0xff]  ;;  %v9662_v63 = vld [vmem:[#allocation93_spill] sm:$0xff] }
 0xdca   :  { %v4826_v47 = vmul.f32 %v4812_v36, %v4795_v2  ;;  %v4827_v49 = vmul.f32 %v4816_v3, %v4796_v0  ;;  %v5132_v60 = vpop.permute.xlu1 %5131  ;;  %6821 = vmatmul.mubr.msk.bf16.vlgmr.msra.gmra.mxu1 %vm580_vm0, %v7158_v17  ;;  %v4839_v32 = vpack.c.bf16 %v4832_v50, %v4828_v35  ;;  %5003 = vmatprep.mubr.bf16.mxu0 %v9644_v27 }
 0xdcb   :  { %4952 = vmatprep.mubr.bf16.mxu1 %v9644_v27  ;;  %v5173_v58 = vmul.f32 %v5155_v20, %v9660_v4  ;;  %v5151_v3 = vrot.slane %v5146_v30, %v9646_v1  ;;  %v5347_v17 = vrot.slane %v5330_v5, %v9649_v11  ;;  %v5339_v50 = vrot.slane %v5330_v5, %v9650_v61 }
 0xdcc   :  { %v4838_v56 = vpack.c.bf16 %v4831_v15, %v4827_v49  ;;  %5091 = vmatprep.subr.bf16.mxu0 %v4839_v32  ;;  %v5129_v12 = vpop.permute.xlu0 %5128  ;;  %v4837_v41 = vpack.c.bf16 %v4830_v38, %v4826_v47  ;;  %v9661_v38 = vld [vmem:[#allocation94_spill] sm:$0xff]  ;;  %v9664_v32 = vld [vmem:[#allocation96_spill] sm:$0xff] }
 0xdcd   :  { %v5144_v31 = vsel %vm830_vm5, %v5129_v12, %v5132_v60  ;;  %v5174_v25 = vmul.f32 %v5159_v54, %v9661_v38  ;;  %v5172_v19 = vmul.f32 %v5151_v3, %v9662_v63  ;;  %v5359_v2 = vmul.f32 %v5347_v17, %v9663_v16  ;;  %v5681_v63 = vld [vmem:[#allocation40 + $0x5] ss:$8 sm:$0xf] }
 0xdce   :  { %v5136_v53 = vpop.permute.xlu1 %5135  ;;  %5040 = vmatprep.subr.bf16.mxu1 %v4837_v41  ;;  %5092 = vmatpush1.bf16.msra.mxu0 %v4838_v56  ;;  %v5168_v39 = vmul.f32 %v5151_v3, %v5144_v31  ;;  %v5357_v33 = vmul.f32 %v5339_v50, %v9664_v32  ;;  %v9666_v3 = vld [vmem:[#allocation97_spill] sm:$0xff]  ;;  %v9669_v32 = vld [vmem:[#allocation103_spill] sm:$0xff]  ;;  %v5694_v57 = vrot.slane %v5681_v63, %v9645_v37 }
 0xdcf   :  { %v5139_v45 = vsel %vm830_vm5, %v5136_v53, %v5129_v12  ;;  %5041 = vmatpush1.bf16.msra.mxu1 %v4836_v59 }
 0xdd0   :  { %v5171_v52 = vmul.f32 %v5163_v42, %v5139_v45  ;;  %v5134_v40 = vpop.permute.xlu0 %5133  ;;  %v5180_v49 = vpack.c.bf16 %v5172_v19, %v5168_v39  ;;  %v5343_v45 = vrot.slane %v5330_v5, %v9645_v37  ;;  %v9668_v39 = vld [vmem:[#allocation80_spill] sm:$0xff] }
 0xdd1   :  { %v5137_v9 = vsel %vm830_vm5, %v5132_v60, %v5134_v40  ;;  %v5138_v36 = vsel %vm830_vm5, %v5134_v40, %v5136_v53  ;;  %6824 = vmatmul.mubr.msk.bf16.gmra.mxu0 %vm580_vm0, %v7159_v14  ;;  %v5514_v40 = vrot.slane %v8935_v21, %v9649_v11 }
 0xdd2   :  { %v5169_v7 = vmul.f32 %v5155_v20, %v5137_v9  ;;  %v5316_v13 = vpop.permute.xlu1 %5315  ;;  %6822 = vmatmul.mubr.msk.bf16.gmra.mxu1 %vm580_vm0, %v7159_v14  ;;  %v5183_v43 = vpack.c.bf16 %v5175_v18, %v5171_v52  ;;  %5109 = vmatprep.mubr.bf16.mxu0 %v9644_v27  ;;  %v5170_v55 = vmul.f32 %v5159_v54, %v5138_v36  ;;  %v7161_v20 = vld [vmem:[#allocation37 + $0x8] ss:$0 sps:$4 sm:$0x11]   ;;  %v7162_v36 = vld [vmem:[#allocation37 + $0x18] sm:$0xff]  }
 0xdd3   :  { %5058 = vmatprep.mubr.bf16.mxu1 %v9644_v27  ;;  %v5335_v52 = vrot.slane %v5330_v5, %v9646_v1  ;;  %v5506_v54 = vrot.slane %v8935_v21, %v9650_v61  ;;  %v5522_v31 = vmul.f32 %v5514_v40, %v8954_v24 }
 0xdd4   :  { %5263 = vmatprep.subr.bf16.mxu0 %v5183_v43  ;;  %v5313_v62 = vpop.permute.xlu0 %5312  ;;  %v5181_v34 = vpack.c.bf16 %v5173_v58, %v5169_v7  ;;  %v5182_v0 = vpack.c.bf16 %v5174_v25, %v5170_v55  ;;  %v9665_v7 = vld [vmem:[#allocation98_spill] sm:$0xff]  ;;  %v9667_v55 = vld [vmem:[#allocation81_spill] sm:$0xff] }
 0xdd5   :  { %v5328_v10 = vsel %vm982_vm6, %v5313_v62, %v5316_v13  ;;  %v5520_v43 = vmul.f32 %v5506_v54, %v8963_v26  ;;  %v5356_v5 = vmul.f32 %v5335_v52, %v9666_v3 }
 0xdd6   :  { %v5320_v35 = vpop.permute.xlu1 %5319  ;;  %5212 = vmatprep.subr.bf16.mxu1 %v5181_v34  ;;  %v5352_v9 = vmul.f32 %v5335_v52, %v5328_v10  ;;  %v7165_v10 = vld [vmem:[#allocation37 + $0x2c] ss:$0 sps:$4 sm:$0x11]  }
 0xdd7   :  { %v5323_v15 = vsel %vm982_vm6, %v5320_v35, %v5313_v62  ;;  %v5526_v62 = vmul.f32 %v5514_v40, %v9667_v55 }
 0xdd8   :  { %v5355_v30 = vmul.f32 %v5347_v17, %v5323_v15  ;;  %v5318_v47 = vpop.permute.xlu0 %5317  ;;  %v5364_v38 = vpack.c.bf16 %v5356_v5, %v5352_v9  ;;  %v5698_v15 = vrot.slane %v5681_v63, %v9649_v11 }
 0xdd9   :  { %v5321_v60 = vsel %vm982_vm6, %v5316_v13, %v5318_v47  ;;  %6829 = vmatmul.mubr.msk.bf16.vlgmr.msra.gmra.mxu0 %vm580_vm0, %v7160_v29  ;;  %v5322_v53 = vsel %vm982_vm6, %v5318_v47, %v5320_v35  ;;  %v5358_v13 = vmul.f32 %v5343_v45, %v9665_v7  ;;  %v5534_v21 = vpack.c.bf16 %v5526_v62, %v5522_v31  ;;  %v7166_v7 = vld [vmem:[#allocation37 + $0x30] sm:$0xff]  }
 0xdda   :  { %v5353_v22 = vmul.f32 %v5339_v50, %v5321_v60  ;;  %5264 = vmatpush1.bf16.msra.mxu0 %v5182_v0  ;;  %v9069_v42 = vpop.permute.xlu1 %5665  ;;  %6827 = vmatmul.mubr.msk.bf16.vlgmr.msra.gmra.mxu1 %vm580_vm0, %v7160_v29  ;;  %v5367_v56 = vpack.c.bf16 %v5359_v2, %v5355_v30  ;;  %v5354_v4 = vmul.f32 %v5343_v45, %v5322_v53  ;;  %v7163_v50 = vld [vmem:[#allocation37 + $0x20] ss:$0 sps:$4 sm:$0x11]   ;;  %v9672_v62 = vld [vmem:[#allocation100_spill] sm:$0xff] }
 0xddb   :  { %5213 = vmatpush1.bf16.msra.mxu1 %v5180_v49  ;;  %5119 = vmatprep.mubr.bf16.mxu0 %v9644_v27  ;;  %v5524_v29 = vmul.f32 %v5506_v54, %v9668_v39  ;;  %v5690_v0 = vrot.slane %v5681_v63, %v9650_v61  ;;  %v7164_v49 = vld [vmem:[#allocation37 + $0x24] sm:$0xff]   ;;  %v9673_v39 = vld [vmem:[#allocation107_spill] sm:$0xff] }
 0xddc   :  { %5447 = vmatprep.subr.bf16.mxu0 %v5367_v56  ;;  %v9073_v12 = vpop.permute.xlu0 %5663  ;;  %v5365_v41 = vpack.c.bf16 %v5357_v33, %v5353_v22  ;;  %5068 = vmatprep.mubr.bf16.mxu1 %v9644_v27  ;;  %v5366_v34 = vpack.c.bf16 %v5358_v13, %v5354_v4  ;;  %v5710_v33 = vmul.f32 %v5698_v15, %v9669_v32  ;;  %v9670_v22 = vld [vmem:[#allocation101_spill] sm:$0xff]  ;;  %v9671_v13 = vld [vmem:[#allocation102_spill] sm:$0xff] }
 0xddd   :  { %v5532_v24 = vpack.c.bf16 %v5524_v29, %v5520_v43  ;;  %v5708_v56 = vmul.f32 %v5690_v0, %v9670_v22  ;;  %v5671_v6 = vsel %vm1271_vm7, %v9073_v12, %v9069_v42  ;;  %v5709_v43 = vmul.f32 %v5694_v57, %v9671_v13 }
 0xdde   :  { %v9076_v59 = vpop.permute.xlu1 %5669  ;;  %5396 = vmatprep.subr.bf16.mxu1 %v5365_v41 }
 0xddf   :  { %v5679_v19 = vsel %vm1271_vm7, %v9076_v59, %v9073_v12 }
 0xde0   :  { %v9078_v14 = vpop.permute.xlu0 %5667  ;;  %v5706_v30 = vmul.f32 %v5698_v15, %v5679_v19 }
 0xde1   :  { %6830 = vmatmul.mubr.msk.bf16.gmra.mxu0 %vm580_vm0, %v7161_v20  ;;  %v5672_v16 = vsel %vm1271_vm7, %v9069_v42, %v9078_v14  ;;  %v5673_v44 = vsel %vm1271_vm7, %v9078_v14, %v9076_v59  ;;  %v5686_v59 = vrot.slane %v5681_v63, %v9646_v1  ;;  %v5882_v14 = vrot.slane %v5865_v51, %v9649_v11 }
 0xde2   :  { %v9084_v18 = vpop.permute.xlu1 %5849  ;;  %6828 = vmatmul.mubr.msk.bf16.gmra.mxu1 %vm580_vm0, %v7161_v20  ;;  %5281 = vmatprep.mubr.bf16.mxu0 %v9644_v27  ;;  %v5704_v60 = vmul.f32 %v5690_v0, %v5672_v16  ;;  %v5718_v20 = vpack.c.bf16 %v5710_v33, %v5706_v30  ;;  %v5874_v42 = vrot.slane %v5865_v51, %v9650_v61  ;;  %v9191_v33 = vld [vmem:[#allocation40 + $0x7] ss:$8 sm:$0xf] }
 0xde3   :  { %5230 = vmatprep.mubr.bf16.mxu1 %v9644_v27  ;;  %v5705_v12 = vmul.f32 %v5694_v57, %v5673_v44  ;;  %v5703_v9 = vmul.f32 %v5686_v59, %v5671_v6  ;;  %v5894_v29 = vmul.f32 %v5882_v14, %v9673_v39 }
 0xde4   :  { %v9092_v58 = vpop.permute.xlu0 %5847  ;;  %v5716_v53 = vpack.c.bf16 %v5708_v56, %v5704_v60  ;;  %v7167_v60 = vld [vmem:[#allocation37 + $0x38] ss:$0 sps:$4 sm:$0x11]  }
 0xde6   :  { %v9100_v17 = vpop.permute.xlu1 %5853 }
 0xde8   :  { %v9104_v25 = vpop.permute.xlu0 %5851 }
 0xde9   :  { %6835 = vmatmul.mubr.msk.bf16.vlgmr.msra.gmra.mxu0 %vm580_vm0, %v7162_v36  ;;  %v5856_v40 = vsel %vm1423_vm8, %v9084_v18, %v9104_v25  ;;  %v5857_v22 = vsel %vm1423_vm8, %v9104_v25, %v9100_v17 }
 0xdea   :  { %5448 = vmatpush1.bf16.msra.mxu0 %v5366_v34  ;;  %6833 = vmatmul.mubr.msk.bf16.vlgmr.msra.gmra.mxu1 %vm580_vm0, %v7162_v36  ;;  %v9109_v26 = vpop.permute.xlu1 %6033  ;;  %v5888_v3 = vmul.f32 %v5874_v42, %v5856_v40  ;;  %v5707_v34 = vmul.f32 %v5686_v59, %v9672_v62 }
 0xdeb   :  { %5397 = vmatpush1.bf16.msra.mxu1 %v5364_v38  ;;  %5614 = vmatprep.subr.bf16.mxu0 %v5534_v21  ;;  %v9674_v21 = vld [vmem:[#allocation105_spill] sm:$0xff] }
 0xdec   :  { %5563 = vmatprep.subr.bf16.mxu1 %v5532_v24  ;;  %5291 = vmatprep.mubr.bf16.mxu0 %v9644_v27  ;;  %v9112_v35 = vpop.permute.xlu0 %6031  ;;  %v5892_v24 = vmul.f32 %v5874_v42, %v9674_v21  ;;  %v5715_v63 = vpack.c.bf16 %v5707_v34, %v5703_v9  ;;  %v7168_v42 = vld [vmem:[#allocation37 + $0x3c] sm:$0xff]  }
 0xded   :  { %5240 = vmatprep.mubr.bf16.mxu1 %v9644_v27 }
 0xdee   :  { %v9124_v2 = vpop.permute.xlu1 %6037 }
 0xdef   :  { %v6047_v44 = vsel %vm1575_vm9, %v9124_v2, %v9112_v35 }
 0xdf0   :  { %v9128_v47 = vpop.permute.xlu0 %6035 }
 0xdf1   :  { %6836 = vmatmul.mubr.msk.bf16.gmra.mxu0 %vm580_vm0, %v7163_v50  ;;  %v6040_v25 = vsel %vm1575_vm9, %v9109_v26, %v9128_v47 }
 0xdf2   :  { %6834 = vmatmul.mubr.msk.bf16.gmra.mxu1 %vm580_vm0, %v7163_v50  ;;  %5465 = vmatprep.mubr.bf16.mxu0 %v9644_v27  ;;  %v9132_v41 = vpop.permute.xlu1 %6217  ;;  %v5717_v50 = vpack.c.bf16 %v5709_v43, %v5705_v12  ;;  %v9676_v12 = vld [vmem:[#allocation106_spill] sm:$0xff]  ;;  %v9678_v43 = vld [vmem:[#allocation111_spill] sm:$0xff] }
 0xdf3   :  { %5414 = vmatprep.mubr.bf16.mxu1 %v9644_v27 }
 0xdf4   :  { %v9139_v45 = vpop.permute.xlu0 %6215 }
 0xdf6   :  { %v9146_v52 = vpop.permute.xlu1 %6221 }
 0xdf9   :  { %6841 = vmatmul.mubr.msk.bf16.vlgmr.msra.gmra.mxu0 %vm580_vm0, %v7164_v49 }
 0xdfa   :  { %5615 = vmatpush1.bf16.msra.mxu0 %v5533_v8  ;;  %6839 = vmatmul.mubr.msk.bf16.vlgmr.msra.gmra.mxu1 %vm580_vm0, %v7164_v49  ;;  %v9151_v8 = vpop.permute.xlu0 %6219 }
 0xdfb   :  { %5564 = vmatpush1.bf16.msra.mxu1 %v5531_v23  ;;  %5798 = vmatprep.subr.bf16.mxu0 %v5718_v20  ;;  %v5863_v23 = vsel %vm1423_vm8, %v9100_v17, %v9092_v58  ;;  %v6066_v17 = vrot.slane %v9191_v33, %v9649_v11 }
 0xdfc   :  { %5747 = vmatprep.subr.bf16.mxu1 %v5716_v53  ;;  %5475 = vmatprep.mubr.bf16.mxu0 %v9644_v27  ;;  %v5890_v36 = vmul.f32 %v5882_v14, %v5863_v23  ;;  %v5878_v53 = vrot.slane %v5865_v51, %v9645_v37 }
 0xdfd   :  { %5424 = vmatprep.mubr.bf16.mxu1 %v9644_v27  ;;  %v6074_v59 = vmul.f32 %v6066_v17, %v6047_v44  ;;  %v6224_v44 = vsel %vm1727_vm10, %v9132_v41, %v9151_v8 }
 0xdfe   :  { %v5902_v15 = vpack.c.bf16 %v5894_v29, %v5890_v36  ;;  %v5889_v57 = vmul.f32 %v5878_v53, %v5857_v22 }
 0xe01   :  { %6842 = vmatmul.mubr.msk.bf16.gmra.mxu0 %vm580_vm0, %v7165_v10 }
 0xe02   :  { %6840 = vmatmul.mubr.msk.bf16.gmra.mxu1 %vm580_vm0, %v7165_v10  ;;  %5632 = vmatprep.mubr.bf16.mxu0 %v9644_v27  ;;  %v5855_v10 = vsel %vm1423_vm8, %v9092_v58, %v9084_v18  ;;  %v6058_v58 = vrot.slane %v9191_v33, %v9650_v61 }
 0xe03   :  { %v4333_v4 = vpop.permute.xlu1 %4332  ;;  %5581 = vmatprep.mubr.bf16.mxu1 %v9644_v27 }
 0xe04   :  { %v4392_v54 = vadd.f32 %v8941_v48, %v4333_v4  ;;  %v6072_v9 = vmul.f32 %v6058_v58, %v6040_v25 }
 0xe05   :  { %v4328_v31 = vpop.permute.xlu0 %4327 }
 0xe06   :  { %v6816_v5 = vmul.f32 -1.442695, %v4392_v54  ;;  %v4389_v55 = vadd.f32 %v8930_v46, %v4328_v31  ;;  %v5900_v46 = vpack.c.bf16 %v5892_v24, %v5888_v3  ;;  %v6078_v3 = vmul.f32 %v6066_v17, %v9678_v43 }
 0xe07   :  { %v9175_v38 = vpop.permute.xlu1 %6404 }
 0xe08   :  { %7188 = vpow2.f32 %v6816_v5  ;;  %v6815_v48 = vmul.f32 -1.442695, %v4389_v55 }
 0xe09   :  { %v4338_v19 = vpop.permute.xlu0 %4337  ;;  %6847 = vmatmul.mubr.msk.bf16.vlgmr.msra.gmra.mxu0 %vm580_vm0, %v7166_v7 }
 0xe0a   :  { %7190 = vpow2.f32 %v6815_v48  ;;  %v4397_v16 = vadd.f32 %v8928_v28, %v4338_v19  ;;  %5799 = vmatpush1.bf16.msra.mxu0 %v5717_v50  ;;  %6845 = vmatmul.mubr.msk.bf16.vlgmr.msra.gmra.mxu1 %vm580_vm0, %v7166_v7  ;;  %v5870_v28 = vrot.slane %v5865_v51, %v9646_v1  ;;  %v9677_v7 = vld [vmem:[#allocation104_spill] sm:$0xff]  ;;  %v6086_v50 = vpack.c.bf16 %v6078_v3, %v6074_v59 }
 0xe0b   :  { %5748 = vmatpush1.bf16.msra.mxu1 %v5715_v63  ;;  %5982 = vmatprep.subr.bf16.mxu0 %v5902_v15  ;;  %v9181_v0 = vpop.permute.xlu1 %6414 }
 0xe0c   :  { %9675 = vst [vmem:[#allocation116_spill] sm:$0xff] %v9181_v0  ;;  %v6817_v30 = vmul.f32 -1.442695, %v4397_v16  ;;  %5931 = vmatprep.subr.bf16.mxu1 %v5900_v46  ;;  %5642 = vmatprep.mubr.bf16.mxu0 %v9644_v27  ;;  %v5887_v23 = vmul.f32 %v5870_v28, %v5855_v10  ;;  %v5891_v13 = vmul.f32 %v5870_v28, %v9677_v7  ;;  %v7169_v46 = vld [vmem:[#allocation37 + $0x44] ss:$0 sps:$4 sm:$0x11]  }
 0xe0d   :  { %v9184_v49 = vpop.permute.xlu0 %6409  ;;  %5591 = vmatprep.mubr.bf16.mxu1 %v9644_v27  ;;  %v6041_v28 = vsel %vm1575_vm9, %v9128_v47, %v9124_v2  ;;  %v6231_v10 = vsel %vm1727_vm10, %v9146_v52, %v9139_v45  ;;  %v6054_v2 = vrot.slane %v9191_v33, %v9646_v1 }
 0xe0e   :  { %7192 = vpow2.f32 %v6817_v30  ;;  %v5899_v29 = vpack.c.bf16 %v5891_v13, %v5887_v23  ;;  %v9240_v30 = vld [vmem:[#allocation40 + $0x20] ss:$8 sm:$0xf] }
 0xe0f   :  { %v9187_v32 = vpop.permute.xlu1 %4424  ;;  %v6242_v47 = vrot.slane %v9240_v30, %v9650_v61  ;;  %v7170_v23 = vld [vmem:[#allocation37 + $0x48] sm:$0xff]   ;;  %v9681_v61 = vld [vmem:[#allocation108_spill] sm:$0xff] }
 0xe10   :  { %vm4430_vm3 = vcmp.eq.s32.totalorder %v9187_v32, 1  ;;  %v7171_v32 = vld [vmem:[#allocation37 + $0x50] ss:$0 sps:$4 sm:$0x11]  }
 0xe11   :  { %v4433_v56 = vsel %vm4430_vm3, %v4392_v54, 0.0  ;;  %v9198_v20 = vpop.permute.xlu0 %4421  ;;  %6848 = vmatmul.mubr.msk.bf16.gmra.mxu0 %vm580_vm0, %v7167_v60  ;;  %v5893_v54 = vmul.f32 %v5878_v53, %v9676_v12  ;;  %v6039_v53 = vsel %vm1575_vm9, %v9112_v35, %v9109_v26  ;;  %v6250_v26 = vrot.slane %v9240_v30, %v9649_v11  ;;  %v4403_v35 = vld [vmem:[#allocation25 + $0x8] sm:$0xff] }
 0xe12   :  { %vm4429_vm5 = vcmp.eq.s32.totalorder %v9198_v20, 1  ;;  %6846 = vmatmul.mubr.msk.bf16.gmra.mxu1 %vm580_vm0, %v7167_v60  ;;  %5816 = vmatprep.mubr.bf16.mxu0 %v9644_v27  ;;  %v4437_v51 = vmul.f32 1.442695, %v4433_v56  ;;  %v6062_v60 = vrot.slane %v9191_v33, %v9645_v37  ;;  %v6246_v20 = vrot.slane %v9240_v30, %v9645_v37 }
 0xe13   :  { %v4432_v18 = vsel %vm4429_vm5, %v4389_v55, 0.0  ;;  %5765 = vmatprep.mubr.bf16.mxu1 %v9644_v27  ;;  %v9221_v40 = vpop.permute.xlu1 %6457  ;;  %v9679_v55 = vld [vmem:[#allocation109_spill] sm:$0xff]  ;;  %v5901_v34 = vpack.c.bf16 %v5893_v54, %v5889_v57  ;;  %v6256_v57 = vmul.f32 %v6242_v47, %v6224_v44  ;;  %v6075_v54 = vmul.f32 %v6054_v2, %v9681_v61 }
 0xe14   :  { %v4435_v14 = vmul.f32 1.442695, %v4432_v18  ;;  %7194 = vpow2.f32 %v4437_v51  ;;  %v6076_v62 = vmul.f32 %v6058_v58, %v9679_v55  ;;  %v6073_v25 = vmul.f32 %v6062_v60, %v6041_v28 }
 0xe15   :  { %v7189_v6 = vpop.eup %7188  ;;  %v9223_v4 = vpop.permute.xlu0 %4427  ;;  %v6071_v18 = vmul.f32 %v6054_v2, %v6039_v53  ;;  %v6258_v58 = vmul.f32 %v6250_v26, %v6231_v10  ;;  %v6225_v10 = vsel %vm1727_vm10, %v9151_v8, %v9146_v52  ;;  %v6223_v44 = vsel %vm1727_vm10, %v9139_v45, %v9132_v41  ;;  %v9684_v2 = vld [vmem:[#allocation114_spill] sm:$0xff] }
 0xe16   :  { %v4469_v36 = vadd.f32 1.0, %v7189_v6  ;;  %vm4431_vm6 = vcmp.eq.s32.totalorder %v9223_v4, 1  ;;  %v6084_v48 = vpack.c.bf16 %v6076_v62, %v6072_v9  ;;  %v4402_v6 = vld [vmem:[#allocation25] sm:$0xff]  ;;  %v9682_v9 = vld [vmem:[#allocation113_spill] sm:$0xff]  ;;  %v6238_v4 = vrot.slane %v9240_v30, %v9646_v1 }
 0xe17   :  { %v7191_v31 = vpop.eup %7190  ;;  %v4434_v5 = vsel %vm4431_vm6, %v4397_v16, 0.0  ;;  %v9236_v19 = vpop.permute.xlu1 %6463  ;;  %v6260_v11 = vmul.f32 %v6242_v47, %v9682_v9  ;;  %v6083_v62 = vpack.c.bf16 %v6075_v54, %v6071_v18  ;;  %v6257_v52 = vmul.f32 %v6246_v20, %v6225_v10  ;;  %v7173_v1 = vld [vmem:[#allocation37 + $0x5c] ss:$0 sps:$4 sm:$0x11]   ;;  %v7174_v41 = vld [vmem:[#allocation37 + $0x60] sm:$0xff]  }
 0xe18   :  { %7196 = vrcp.f32 %v4469_v36  ;;  %v4468_v39 = vadd.f32 1.0, %v7191_v31  ;;  %v4439_v21 = vmul.f32 1.442695, %v4434_v5  ;;  %v9683_v36 = vld [vmem:[#allocation115_spill] sm:$0xff]  ;;  %v6255_v8 = vmul.f32 %v6238_v4, %v6223_v44 }
 0xe19   :  { %7198 = vpow2.f32 %v4435_v14  ;;  %v9232_v24 = vpop.permute.xlu0 %6460  ;;  %6853 = vmatmul.mubr.msk.bf16.vlgmr.msra.gmra.mxu0 %vm580_vm0, %v7168_v42  ;;  %v9680_v14 = vld [vmem:[#allocation110_spill] sm:$0xff]  ;;  %v6262_v31 = vmul.f32 %v6250_v26, %v9683_v36  ;;  %v6261_v47 = vmul.f32 %v6246_v20, %v9684_v2  ;;  %v9685_v26 = vld [vmem:[#allocation112_spill] sm:$0xff]  ;;  %vm6467_vm8 = vcmp.eq.s32.totalorder %v9236_v19, 1 }
 0xe1a   :  { %7200 = vrcp.f32 %v4468_v39  ;;  %5983 = vmatpush1.bf16.msra.mxu0 %v5901_v34  ;;  %6851 = vmatmul.mubr.msk.bf16.vlgmr.msra.gmra.mxu1 %vm580_vm0, %v7168_v42  ;;  %v6077_v33 = vmul.f32 %v6062_v60, %v9680_v14  ;;  %v4404_v34 = vld [vmem:[#allocation25 + $0x10] sm:$0x3]  ;;  %v6259_v37 = vmul.f32 %v6238_v4, %v9685_v26  ;;  %v7175_v45 = vld [vmem:[#allocation37 + $0x68] ss:$0 sps:$4 sm:$0x11]   ;;  %vm6466_vm7 = vcmp.eq.s32.totalorder %v9232_v24, 1 }
 0xe1b   :  { %v7193_v63 = vpop.eup %7192  ;;  %5932 = vmatpush1.bf16.msra.mxu1 %v5899_v29  ;;  %6166 = vmatprep.subr.bf16.mxu0 %v6086_v50  ;;  %7202 = vpow2.f32 %v4439_v21  ;;  %v4449_v22 = vpop.permute.xlu1 %4448  ;;  %v6270_v39 = vpack.c.bf16 %v6262_v31, %v6258_v58  ;;  %v6268_v29 = vpack.c.bf16 %v6260_v11, %v6256_v57 }
 0xe1c   :  { %v4470_v15 = vadd.f32 1.0, %v7193_v63  ;;  %6115 = vmatprep.subr.bf16.mxu1 %v6084_v48  ;;  %5826 = vmatprep.mubr.bf16.mxu0 %v9644_v27  ;;  %v6085_v43 = vpack.c.bf16 %v6077_v33, %v6073_v25 }
 0xe1d   :  { %v4444_v16 = vpop.permute.xlu0 %4443  ;;  %5775 = vmatprep.mubr.bf16.mxu1 %v9644_v27 }
 0xe1e   :  { %7204 = vrcp.f32 %v4470_v15 }
 0xe1f   :  { %v4483_v7 = vpop.permute.xlu1 %4482 }
 0xe21   :  { %v4454_v56 = vpop.permute.xlu0 %4453  ;;  %6854 = vmatmul.mubr.msk.bf16.gmra.mxu0 %vm580_vm0, %v7169_v46  ;;  %v7195_v17 = vpop.eup %7194 }
 0xe22   :  { %6852 = vmatmul.mubr.msk.bf16.gmra.mxu1 %vm580_vm0, %v7169_v46  ;;  %6000 = vmatprep.mubr.bf16.mxu0 %v9644_v27  ;;  %v4457_v3 = vmul.f32 %v7195_v17, %v4449_v22  ;;  %v6267_v17 = vpack.c.bf16 %v6259_v37, %v6255_v8 }
 0xe23   :  { %5949 = vmatprep.mubr.bf16.mxu1 %v9644_v27 }
 0xe25   :  { %v7197_v51 = vpop.eup %7196  ;;  %v4488_v13 = vpop.permute.xlu0 %4487 }
 0xe26   :  { %v7199_v59 = vpop.eup %7198  ;;  %v4478_v42 = vadd.f32 %v7197_v51, %v4403_v35  ;;  %v6269_v35 = vpack.c.bf16 %v6261_v47, %v6257_v52 }
 0xe27   :  { %v7201_v12 = vpop.eup %7200  ;;  %v4456_v50 = vmul.f32 %v7199_v59, %v4444_v16  ;;  %v4493_v16 = vpop.permute.xlu1 %4492 }
 0xe28   :  { %v4477_v5 = vadd.f32 %v7201_v12, %v4402_v6  ;;  %v4496_v55 = vmul.f32 %v4488_v13, %v4478_v42  ;;  %v7203_v21 = vpop.eup %7202 }
 0xe29   :  { %6859 = vmatmul.mubr.msk.bf16.vlgmr.msra.gmra.mxu0 %vm580_vm0, %v7170_v23  ;;  %v4458_v28 = vmul.f32 %v7203_v21, %v4454_v56  ;;  %v7172_v56 = vld [vmem:[#allocation37 + $0x54] sm:$0xff]  }
 0xe2a   :  { %v4495_v48 = vmul.f32 %v4483_v7, %v4477_v5  ;;  %v4499_v63 = vsel %vm4430_vm3, %v4457_v3, %v4496_v55  ;;  %6167 = vmatpush1.bf16.msra.mxu0 %v6085_v43  ;;  %6857 = vmatmul.mubr.msk.bf16.vlgmr.msra.gmra.mxu1 %vm580_vm0, %v7170_v23 }
 0xe2b   :  { %v7205_v15 = vpop.eup %7204  ;;  %4502 = vst [vmem:[%s8135_s20 + $0x8] sm:$0xff] %v4499_v63  ;;  %6116 = vmatpush1.bf16.msra.mxu1 %v6083_v62  ;;  %6350 = vmatprep.subr.bf16.mxu0 %v6270_v39 }
 0xe2c   :  { %v4498_v46 = vsel %vm4429_vm5, %v4456_v50, %v4495_v48  ;;  %v4479_v60 = vadd.f32 %v7205_v15, %v4404_v34  ;;  %6299 = vmatprep.subr.bf16.mxu1 %v6268_v29  ;;  %6010 = vmatprep.mubr.bf16.mxu0 %v9644_v27 }
 0xe2d   :  { %4501 = vst [vmem:[%s8135_s20] sm:$0xff] %v4498_v46  ;;  %5959 = vmatprep.mubr.bf16.mxu1 %v9644_v27 }
 0xe2e   :  { %v4497_v22 = vmul.f32 %v4493_v16, %v4479_v60 }
 0xe30   :  { %v4500_v53 = vsel %vm4431_vm6, %v4458_v28, %v4497_v22 }
 0xe31   :  { %4503 = vst [vmem:[%s8135_s20 + $0x10] sm:$0x3] %v4500_v53  ;;  %6860 = vmatmul.mubr.msk.bf16.gmra.mxu0 %vm580_vm0, %v7171_v32 }
 0xe32   :  { %6858 = vmatmul.mubr.msk.bf16.gmra.mxu1 %vm580_vm0, %v7171_v32  ;;  %6184 = vmatprep.mubr.bf16.mxu0 %v9644_v27 }
 0xe33   :  { %6133 = vmatprep.mubr.bf16.mxu1 %v9644_v27 }
 0xe39   :  { %6865 = vmatmul.mubr.msk.bf16.vlgmr.msra.gmra.mxu0 %vm580_vm0, %v7172_v56 }
 0xe3a   :  { %6351 = vmatpush1.bf16.msra.mxu0 %v6269_v35  ;;  %6863 = vmatmul.mubr.msk.bf16.vlgmr.msra.gmra.mxu1 %vm580_vm0, %v7172_v56 }
 0xe3b   :  { %6300 = vmatpush1.bf16.msra.mxu1 %v6267_v17  ;;  %6194 = vmatprep.mubr.bf16.mxu0 %v9644_v27 }
 0xe3c   :  { %6143 = vmatprep.mubr.bf16.mxu1 %v9644_v27 }
 0xe41   :  { %6866 = vmatmul.mubr.msk.bf16.gmra.mxu0 %vm580_vm0, %v7173_v1 }
 0xe42   :  { %6864 = vmatmul.mubr.msk.bf16.gmra.mxu1 %vm580_vm0, %v7173_v1  ;;  %6368 = vmatprep.mubr.bf16.mxu0 %v9644_v27 }
 0xe43   :  { %6317 = vmatprep.mubr.bf16.mxu1 %v9644_v27 }
 0xe49   :  { %6871 = vmatmul.mubr.msk.bf16.vlgmr.msra.gmra.mxu0 %vm580_vm0, %v7174_v41 }
 0xe4a   :  { %6869 = vmatmul.mubr.msk.bf16.vlgmr.msra.gmra.mxu1 %vm580_vm0, %v7174_v41  ;;  %6378 = vmatprep.mubr.bf16.mxu0 %v9644_v27 }
 0xe4b   :  { %6327 = vmatprep.mubr.bf16.mxu1 %v9644_v27 }
 0xe51   :  { %6872 = vmatmul.mubr.msk.bf16.gmra.mxu0 %vm580_vm0, %v7175_v45 }
 0xe52   :  { %6870 = vmatmul.mubr.msk.bf16.gmra.mxu1 %vm580_vm0, %v7175_v45  ;;  %vm6465_vm0 = vcmp.eq.s32.totalorder %v9221_v40, 1 }
 0xe89   :  { %v4995_v30 = vpop.f32.mrf.mxu0 }
 0xe8a   :  { %v4944_v25 = vpop.f32.mrf.mxu1 }
 0xe8b   :  { %v4997_v51 = vpop.f32.mrf.mxu0 }
 0xe8c   :  { %v4946_v18 = vpop.f32.mrf.mxu1 }
 0xe8d   :  { %v4999_v58 = vpop.f32.mrf.mxu0 }
 0xe8e   :  { %v4948_v57 = vpop.f32.mrf.mxu1 }
 0xe8f   :  { %v5001_v6 = vpop.f32.mrf.mxu0 }
 0xe90   :  { %v4950_v23 = vpop.f32.mrf.mxu1 }
 0xe91   :  { %v5005_v59 = vpop.f32.mrf.mxu0 }
 0xe92   :  { %v4954_v14 = vpop.f32.mrf.mxu1 }
 0xe93   :  { %v5007_v33 = vpop.f32.mrf.mxu0 }
 0xe94   :  { %v4956_v42 = vpop.f32.mrf.mxu1 }
 0xe95   :  { %v5009_v12 = vpop.f32.mrf.mxu0 }
 0xe96   :  { %v4958_v61 = vpop.f32.mrf.mxu1 }
 0xe97   :  { %v5010_v27 = vpop.f32.mrf.mxu0 }
 0xe98   :  { %v4959_v54 = vpop.f32.mrf.mxu1 }
 0xe99   :  { %v5111_v9 = vpop.f32.mrf.mxu0 }
 0xe9a   :  { %v5112_v11 = vadd.f32 %v5111_v9, %v4995_v30  ;;  %v5060_v36 = vpop.f32.mrf.mxu1 }
 0xe9b   :  { %v5061_v31 = vadd.f32 %v5060_v36, %v4944_v25  ;;  %v5113_v7 = vpop.f32.mrf.mxu0 }
 0xe9c   :  { %v5114_v13 = vadd.f32 %v5113_v7, %v4997_v51  ;;  %v5062_v43 = vpop.f32.mrf.mxu1 }
 0xe9d   :  { %v5063_v3 = vadd.f32 %v5062_v43, %v4946_v18  ;;  %v5115_v5 = vpop.f32.mrf.mxu0 }
 0xe9e   :  { %v5116_v55 = vadd.f32 %v5115_v5, %v4999_v58  ;;  %v5064_v62 = vpop.f32.mrf.mxu1 }
 0xe9f   :  { %v5065_v34 = vadd.f32 %v5064_v62, %v4948_v57  ;;  %v5117_v39 = vpop.f32.mrf.mxu0 }
 0xea0   :  { %v5118_v29 = vadd.f32 %v5117_v39, %v5001_v6  ;;  %v5066_v21 = vpop.f32.mrf.mxu1 }
 0xea1   :  { %v5067_v50 = vadd.f32 %v5066_v21, %v4950_v23  ;;  %v5121_v48 = vpop.f32.mrf.mxu0 }
 0xea2   :  { %v5122_v63 = vadd.f32 %v5121_v48, %v5005_v59  ;;  %v5070_v15 = vpop.f32.mrf.mxu1 }
 0xea3   :  { %v5071_v46 = vadd.f32 %v5070_v15, %v4954_v14  ;;  %v5123_v60 = vpop.f32.mrf.mxu0 }
 0xea4   :  { %v5124_v16 = vadd.f32 %v5123_v60, %v5007_v33  ;;  %v5072_v32 = vpop.f32.mrf.mxu1 }
 0xea5   :  { %v5073_v28 = vadd.f32 %v5072_v32, %v4956_v42  ;;  %v5125_v22 = vpop.f32.mrf.mxu0 }
 0xea6   :  { %v5074_v53 = vpop.f32.mrf.mxu1 }
 0xea7   :  { %v5126_v10 = vpop.f32.mrf.mxu0 }
 0xea8   :  { %v5075_v20 = vpop.f32.mrf.mxu1 }
 0xea9   :  { %v5283_v44 = vpop.f32.mrf.mxu0 }
 0xeaa   :  { %v5302_v4 = vadd.f32 %v5283_v44, %v5112_v11  ;;  %v5232_v52 = vpop.f32.mrf.mxu1 }
 0xeab   :  { %v5300_v8 = vadd.f32 %v5232_v52, %v5061_v31  ;;  %v5285_v56 = vpop.f32.mrf.mxu0 }
 0xeac   :  { %v5303_v2 = vadd.f32 %v5285_v56, %v5114_v13  ;;  %v5234_v47 = vpop.f32.mrf.mxu1 }
 0xead   :  { %v5301_v26 = vadd.f32 %v5234_v47, %v5063_v3  ;;  %v5287_v37 = vpop.f32.mrf.mxu0 }
 0xeae   :  { %v5306_v35 = vadd.f32 %v5287_v37, %v5116_v55  ;;  %v5236_v17 = vpop.f32.mrf.mxu1 }
 0xeaf   :  { %v5304_v1 = vadd.f32 %v5236_v17, %v5065_v34  ;;  %v5289_v41 = vpop.f32.mrf.mxu0 }
 0xeb0   :  { %v5307_v45 = vadd.f32 %v5289_v41, %v5118_v29  ;;  %v5238_v30 = vpop.f32.mrf.mxu1 }
 0xeb1   :  { %v5305_v25 = vadd.f32 %v5238_v30, %v5067_v50  ;;  %v5293_v51 = vpop.f32.mrf.mxu0 }
 0xeb2   :  { %v5310_v18 = vadd.f32 %v5293_v51, %v5122_v63  ;;  %v5242_v58 = vpop.f32.mrf.mxu1 }
 0xeb3   :  { %v5308_v57 = vadd.f32 %v5242_v58, %v5071_v46  ;;  %v5295_v6 = vpop.f32.mrf.mxu0 }
 0xeb4   :  { %v5311_v23 = vadd.f32 %v5295_v6, %v5124_v16  ;;  %v5244_v59 = vpop.f32.mrf.mxu1 }
 0xeb5   :  { %v5309_v14 = vadd.f32 %v5244_v59, %v5073_v28  ;;  %v5297_v33 = vpop.f32.mrf.mxu0 }
 0xeb6   :  { %v5246_v42 = vpop.f32.mrf.mxu1 }
 0xeb7   :  { %v5298_v12 = vpop.f32.mrf.mxu0 }
 0xeb8   :  { %v5247_v61 = vpop.f32.mrf.mxu1 }
 0xeb9   :  { %v5467_v27 = vpop.f32.mrf.mxu0 }
 0xeba   :  { %v9313_v54 = vadd.f32 %v5467_v27, %v5302_v4  ;;  %v5416_v9 = vpop.f32.mrf.mxu1 }
 0xebb   :  { %v9315_v11 = vadd.f32 %v5416_v9, %v5300_v8  ;;  %v5469_v36 = vpop.f32.mrf.mxu0 }
 0xebc   :  { %v9317_v31 = vadd.f32 %v5469_v36, %v5303_v2  ;;  %v5418_v7 = vpop.f32.mrf.mxu1 }
 0xebd   :  { %v9319_v13 = vadd.f32 %v5418_v7, %v5301_v26  ;;  %v5471_v43 = vpop.f32.mrf.mxu0 }
 0xebe   :  { %v9321_v3 = vadd.f32 %v5471_v43, %v5306_v35  ;;  %v5420_v5 = vpop.f32.mrf.mxu1 }
 0xebf   :  { %v9323_v55 = vadd.f32 %v5420_v5, %v5304_v1  ;;  %v5473_v62 = vpop.f32.mrf.mxu0 }
 0xec0   :  { %v9325_v34 = vadd.f32 %v5473_v62, %v5307_v45  ;;  %v5422_v39 = vpop.f32.mrf.mxu1 }
 0xec1   :  { %v5489_v29 = vadd.f32 %v5422_v39, %v5305_v25  ;;  %v5477_v21 = vpop.f32.mrf.mxu0 }
 0xec2   :  { %v5494_v50 = vadd.f32 %v5477_v21, %v5310_v18  ;;  %v5426_v48 = vpop.f32.mrf.mxu1 }
 0xec3   :  { %v5492_v63 = vadd.f32 %v5426_v48, %v5308_v57  ;;  %v5479_v15 = vpop.f32.mrf.mxu0 }
 0xec4   :  { %v5495_v46 = vadd.f32 %v5479_v15, %v5311_v23  ;;  %v5428_v60 = vpop.f32.mrf.mxu1 }
 0xec5   :  { %v5493_v16 = vadd.f32 %v5428_v60, %v5309_v14  ;;  %v5481_v32 = vpop.f32.mrf.mxu0 }
 0xec6   :  { %v5430_v28 = vpop.f32.mrf.mxu1 }
 0xec7   :  { %v5482_v22 = vpop.f32.mrf.mxu0 }
 0xec8   :  { %v5431_v53 = vpop.f32.mrf.mxu1 }
 0xec9   :  { %v5634_v10 = vpop.f32.mrf.mxu0 }
 0xeca   :  { %v9327_v20 = vpop.f32.mrf.mxu1 }
 0xecb   :  { %v9329_v44 = vpop.f32.mrf.mxu0 }
 0xecc   :  { %v9331_v4 = vpop.f32.mrf.mxu1 }
 0xecd   :  { %v9333_v52 = vpop.f32.mrf.mxu0 }
 0xece   :  { %v9335_v8 = vpop.f32.mrf.mxu1 }
 0xecf   :  { %v9337_v56 = vpop.f32.mrf.mxu0 }
 0xed0   :  { %v5589_v2 = vpop.f32.mrf.mxu1 }
 0xed1   :  { %v9339_v47 = vadd.f32 %v5589_v2, %v5489_v29  ;;  %v5644_v26 = vpop.f32.mrf.mxu0 }
 0xed2   :  { %v9341_v37 = vadd.f32 %v5644_v26, %v5494_v50  ;;  %v5593_v35 = vpop.f32.mrf.mxu1 }
 0xed3   :  { %v9343_v17 = vadd.f32 %v5593_v35, %v5492_v63  ;;  %v5646_v1 = vpop.f32.mrf.mxu0 }
 0xed4   :  { %v9345_v41 = vadd.f32 %v5646_v1, %v5495_v46  ;;  %v5595_v45 = vpop.f32.mrf.mxu1 }
 0xed5   :  { %v9347_v30 = vadd.f32 %v5595_v45, %v5493_v16  ;;  %v5648_v25 = vpop.f32.mrf.mxu0 }
 0xed6   :  { %v5597_v51 = vpop.f32.mrf.mxu1 }
 0xed7   :  { %v5649_v18 = vpop.f32.mrf.mxu0 }
 0xed8   :  { %v5598_v58 = vpop.f32.mrf.mxu1 }
 0xed9   :  { %v5818_v57 = vpop.f32.mrf.mxu0 }
 0xeda   :  { %v5767_v6 = vpop.f32.mrf.mxu1 }
 0xedb   :  { %v5820_v23 = vpop.f32.mrf.mxu0 }
 0xedc   :  { %v5769_v59 = vpop.f32.mrf.mxu1 }
 0xedd   :  { %v5822_v14 = vpop.f32.mrf.mxu0 }
 0xede   :  { %v5771_v33 = vpop.f32.mrf.mxu1 }
 0xedf   :  { %v5824_v42 = vpop.f32.mrf.mxu0 }
 0xee0   :  { %v5773_v12 = vpop.f32.mrf.mxu1 }
 0xee1   :  { %v5828_v61 = vpop.f32.mrf.mxu0 }
 0xee2   :  { %v9349_v27 = vpop.f32.mrf.mxu1 }
 0xee3   :  { %v9351_v9 = vpop.f32.mrf.mxu0 }
 0xee4   :  { %v9353_v36 = vpop.f32.mrf.mxu1 }
 0xee5   :  { %v5832_v7 = vpop.f32.mrf.mxu0 }
 0xee6   :  { %v5781_v43 = vpop.f32.mrf.mxu1 }
 0xee7   :  { %v5833_v5 = vpop.f32.mrf.mxu0 }
 0xee8   :  { %v5782_v62 = vpop.f32.mrf.mxu1  ;;  %v5653_v5 = vadd.f32 %v5634_v10, %v9313_v54 }
 0xee9   :  { %v6002_v39 = vpop.f32.mrf.mxu0 }
 0xeea   :  { %v5951_v29 = vpop.f32.mrf.mxu1 }
 0xeeb   :  { %v6004_v21 = vpop.f32.mrf.mxu0 }
 0xeec   :  { %v5953_v50 = vpop.f32.mrf.mxu1 }
 0xeed   :  { %v6006_v48 = vpop.f32.mrf.mxu0 }
 0xeee   :  { %v5955_v63 = vpop.f32.mrf.mxu1 }
 0xeef   :  { %v9355_v15 = vpop.f32.mrf.mxu0 }
 0xef0   :  { %v9357_v46 = vpop.f32.mrf.mxu1 }
 0xef1   :  { %v9359_v60 = vpop.f32.mrf.mxu0 }
 0xef2   :  { %v9361_v16 = vpop.f32.mrf.mxu1 }
 0xef3   :  { %v9363_v32 = vpop.f32.mrf.mxu0 }
 0xef4   :  { %9686 = vst [vmem:[#allocation118_spill] sm:$0xff] %v9363_v32  ;;  %v9365_v28 = vpop.f32.mrf.mxu1  ;;  %v5657_v32 = vadd.f32 %v9333_v52, %v9321_v3 }
 0xef5   :  { %9687 = vst [vmem:[#allocation117_spill] sm:$0xff] %v9365_v28  ;;  %v6016_v22 = vpop.f32.mrf.mxu0  ;;  %v5652_v28 = vadd.f32 %v9331_v4, %v9319_v13 }
 0xef6   :  { %v5965_v53 = vpop.f32.mrf.mxu1  ;;  %v5651_v22 = vadd.f32 %v9327_v20, %v9315_v11  ;;  %v5658_v11 = vadd.f32 %v9337_v56, %v9325_v34 }
 0xef7   :  { %v6017_v2 = vpop.f32.mrf.mxu0 }
 0xef8   :  { %v5966_v26 = vpop.f32.mrf.mxu1  ;;  %v5654_v2 = vadd.f32 %v9329_v44, %v9317_v31  ;;  %v5835_v54 = vadd.f32 %v5767_v6, %v5651_v22  ;;  %v5836_v44 = vadd.f32 %v5769_v59, %v5652_v28  ;;  %v5840_v22 = vadd.f32 %v5773_v12, %v9339_v47 }
 0xef9   :  { %v6186_v35 = vpop.f32.mrf.mxu0  ;;  %v5837_v26 = vadd.f32 %v5818_v57, %v5653_v5  ;;  %v5841_v57 = vadd.f32 %v5822_v14, %v5657_v32  ;;  %v5844_v47 = vadd.f32 %v9353_v36, %v9347_v30 }
 0xefa   :  { %v6135_v1 = vpop.f32.mrf.mxu1  ;;  %v5838_v20 = vadd.f32 %v5820_v23, %v5654_v2  ;;  %v6019_v5 = vadd.f32 %v5951_v29, %v5835_v54  ;;  %v5843_v23 = vadd.f32 %v9349_v27, %v9343_v17  ;;  %v6024_v32 = vadd.f32 %v9357_v46, %v5840_v22 }
 0xefb   :  { %v6188_v45 = vpop.f32.mrf.mxu0 }
 0xefc   :  { %v6137_v25 = vpop.f32.mrf.mxu1  ;;  %v6022_v3 = vadd.f32 %v6004_v21, %v5838_v20  ;;  %v6203_v34 = vadd.f32 %v6135_v1, %v6019_v5 }
 0xefd   :  { %v6190_v51 = vpop.f32.mrf.mxu0 }
 0xefe   :  { %v9367_v18 = vpop.f32.mrf.mxu1  ;;  %v6206_v59 = vadd.f32 %v6188_v45, %v6022_v3 }
 0xeff   :  { %v9369_v58 = vpop.f32.mrf.mxu0 }
 0xf00   :  { %v9371_v7 = vpop.f32.mrf.mxu1 }
 0xf01   :  { %v9373_v43 = vpop.f32.mrf.mxu0 }
 0xf02   :  { %v9376_v62 = vpop.f32.mrf.mxu1 }
 0xf03   :  { %9688 = vst [vmem:[#allocation120_spill] sm:$0xff] %v9376_v62  ;;  %v9380_v53 = vpop.f32.mrf.mxu0  ;;  %v5655_v62 = vadd.f32 %v9335_v8, %v9323_v55  ;;  %v5845_v55 = vadd.f32 %v5828_v61, %v9341_v37  ;;  %v6020_v8 = vadd.f32 %v5953_v50, %v5836_v44 }
 0xf04   :  { %9689 = vst [vmem:[#allocation119_spill] sm:$0xff] %v9380_v53  ;;  %v9384_v0 = vpop.f32.mrf.mxu1  ;;  %v6021_v53 = vadd.f32 %v6002_v39, %v5837_v26  ;;  %v6025_v39 = vadd.f32 %v6006_v48, %v5841_v57 }
 0xf05   :  { %9690 = vst [vmem:[#allocation122_spill] sm:$0xff] %v9384_v0  ;;  %v6200_v10 = vpop.f32.mrf.mxu0  ;;  %v5839_v4 = vadd.f32 %v5771_v33, %v5655_v62  ;;  %v5842_v0 = vadd.f32 %v5824_v42, %v5658_v11  ;;  %v5846_v33 = vadd.f32 %v9351_v9, %v9345_v41  ;;  %v6204_v42 = vadd.f32 %v6137_v25, %v6020_v8 }
 0xf06   :  { %v6149_v31 = vpop.f32.mrf.mxu1  ;;  %v6205_v52 = vadd.f32 %v6186_v35, %v6021_v53  ;;  %v6209_v21 = vadd.f32 %v6190_v51, %v6025_v39  ;;  %v6029_v45 = vadd.f32 %v9359_v60, %v5845_v55  ;;  %v6208_v60 = vadd.f32 %v9371_v7, %v6024_v32  ;;  %v9691_v7 = vld [vmem:[#allocation118_spill] sm:$0xff] }
 0xf07   :  { %v6201_v13 = vpop.f32.mrf.mxu0  ;;  %v6023_v61 = vadd.f32 %v5955_v63, %v5839_v4  ;;  %v6026_v48 = vadd.f32 %v9355_v15, %v5842_v0  ;;  %v6027_v11 = vadd.f32 %v9361_v16, %v5843_v23  ;;  %v6030_v4 = vadd.f32 %v9691_v7, %v5846_v33 }
 0xf08   :  { %v6150_v6 = vpop.f32.mrf.mxu1  ;;  %v6213_v26 = vadd.f32 %v9373_v43, %v6029_v45 }
 0xf09   :  { %v6370_v56 = vpop.f32.mrf.mxu0  ;;  %v6207_v51 = vadd.f32 %v9367_v18, %v6023_v61  ;;  %v6210_v62 = vadd.f32 %v9369_v58, %v6026_v48 }
 0xf0a   :  { %v6389_v14 = vadd.f32 %v6370_v56, %v6205_v52  ;;  %v6319_v29 = vpop.f32.mrf.mxu1  ;;  %v9694_v33 = vld [vmem:[#allocation120_spill] sm:$0xff] }
 0xf0b   :  { %v6387_v37 = vadd.f32 %v6319_v29, %v6203_v34  ;;  %v6372_v12 = vpop.f32.mrf.mxu0  ;;  %v9692_v34 = vld [vmem:[#allocation117_spill] sm:$0xff] }
 0xf0c   :  { %v6419_v50 = vadd.f32 %v9175_v38, %v6389_v14  ;;  %v6390_v17 = vadd.f32 %v6372_v12, %v6206_v59  ;;  %v6321_v27 = vpop.f32.mrf.mxu1  ;;  %v6028_v56 = vadd.f32 %v9692_v34, %v5844_v47  ;;  %v9693_v59 = vld [vmem:[#allocation116_spill] sm:$0xff]  ;;  %v6507_v34 = vpop.permute.xlu0 %6506 }
 0xf0d   :  { %v6417_v28 = vadd.f32 %v9175_v38, %v6387_v37  ;;  %v6388_v35 = vadd.f32 %v6321_v27, %v6204_v42  ;;  %v6374_v41 = vpop.f32.mrf.mxu0  ;;  %v6211_v42 = vadd.f32 %v9694_v33, %v6027_v11  ;;  %v9696_v27 = vld [vmem:[#allocation122_spill] sm:$0xff] }
 0xf0e   :  { %v6470_v30 = vsel %vm6465_vm0, %v6419_v50, 0.0  ;;  %v6875_v9 = vmul.f32 -1.442695, %v6419_v50  ;;  %v6420_v36 = vadd.f32 %v9175_v38, %v6390_v17  ;;  %v6393_v63 = vadd.f32 %v6374_v41, %v6209_v21  ;;  %v6323_v1 = vpop.f32.mrf.mxu1  ;;  %v9695_v21 = vld [vmem:[#allocation119_spill] sm:$0xff] }
 0xf0f   :  { %v6468_v25 = vsel %vm6465_vm0, %v6417_v28, 0.0  ;;  %v6873_v0 = vmul.f32 -1.442695, %v6417_v28  ;;  %v6418_v15 = vadd.f32 %v9175_v38, %v6388_v35  ;;  %v6376_v46 = vpop.f32.mrf.mxu0  ;;  %v6391_v58 = vadd.f32 %v6323_v1, %v6207_v51 }
 0xf10   :  { %7206 = vpow2.f32 %v6875_v9  ;;  %v6471_v53 = vsel %vm6465_vm0, %v6420_v36, 0.0  ;;  %v6325_v2 = vpop.f32.mrf.mxu1  ;;  %v6876_v54 = vmul.f32 -1.442695, %v6420_v36  ;;  %v6423_v18 = vadd.f32 %v9184_v49, %v6393_v63 }
 0xf11   :  { %v6469_v38 = vsel %vm6465_vm0, %v6418_v15, 0.0  ;;  %v6380_v10 = vpop.f32.mrf.mxu0  ;;  %v6874_v20 = vmul.f32 -1.442695, %v6418_v15  ;;  %7208 = vpow2.f32 %v6873_v0  ;;  %v6394_v44 = vadd.f32 %v6376_v46, %v6210_v62 }
 0xf12   :  { %v6329_v31 = vpop.f32.mrf.mxu1  ;;  %v6392_v57 = vadd.f32 %v6325_v2, %v6208_v60  ;;  %v6397_v5 = vadd.f32 %v6380_v10, %v6213_v26  ;;  %v6484_v43 = vmul.f32 1.442695, %v6470_v30  ;;  %v6474_v3 = vsel %vm6466_vm7, %v6423_v18, 0.0 }
 0xf13   :  { %v6382_v13 = vpop.f32.mrf.mxu0  ;;  %v6421_v52 = vadd.f32 %v9184_v49, %v6391_v58  ;;  %7210 = vpow2.f32 %v6876_v54  ;;  %v6879_v16 = vmul.f32 -1.442695, %v6423_v18  ;;  %v6424_v22 = vadd.f32 %v9184_v49, %v6394_v44 }
 0xf14   :  { %v6331_v6 = vpop.f32.mrf.mxu1  ;;  %v6422_v55 = vadd.f32 %v9184_v49, %v6392_v57  ;;  %v6480_v23 = vmul.f32 1.442695, %v6468_v25  ;;  %v6427_v14 = vadd.f32 %v9693_v59, %v6397_v5  ;;  %7212 = vpow2.f32 %v6874_v20 }
 0xf15   :  { %v6384_v8 = vpop.f32.mrf.mxu0  ;;  %v6472_v39 = vsel %vm6466_vm7, %v6421_v52, 0.0  ;;  %v6877_v37 = vmul.f32 -1.442695, %v6421_v52  ;;  %v6475_v12 = vsel %vm6466_vm7, %v6424_v22, 0.0  ;;  %v6214_v49 = vadd.f32 %v9695_v21, %v6030_v4  ;;  %v6432_v21 = vld [vmem:[#allocation42 + $0x18] sm:$0xff] }
 0xf16   :  { %v6333_v29 = vpop.f32.mrf.mxu1  ;;  %7214 = vpow2.f32 %v6484_v43  ;;  %v6486_v50 = vmul.f32 1.442695, %v6471_v53  ;;  %v6473_v47 = vsel %vm6466_vm7, %v6422_v55, 0.0  ;;  %v6212_v48 = vadd.f32 %v9696_v27, %v6028_v56  ;;  %v9460_v43 = vpop.permute.xlu1 %6511 }
 0xf17   :  { %v6385_v61 = vpop.f32.mrf.mxu0  ;;  %7216 = vpow2.f32 %v6879_v16  ;;  %v6880_v32 = vmul.f32 -1.442695, %v6424_v22  ;;  %v9445_v28 = vsel %vm6467_vm8, %v6427_v14, 0.0  ;;  %v6482_v35 = vmul.f32 1.442695, %v6469_v38  ;;  %v6431_v22 = vld [vmem:[#allocation42 + $0x10] sm:$0xff] }
 0xf18   :  { %v6334_v17 = vpop.f32.mrf.mxu1  ;;  %7218 = vpow2.f32 %v6480_v23  ;;  %v6395_v41 = vadd.f32 %v6329_v31, %v6211_v42  ;;  %v6398_v30 = vadd.f32 %v6382_v13, %v6214_v49  ;;  %v6878_v9 = vmul.f32 -1.442695, %v6422_v55  ;;  %v6429_v29 = vld [vmem:[#allocation42] sm:$0xff] }
 0xf19   :  { %7220 = vpow2.f32 %v6877_v37  ;;  %v6396_v36 = vadd.f32 %v6331_v6, %v6212_v48  ;;  %v6492_v25 = vmul.f32 1.442695, %v6474_v3  ;;  %v6883_v46 = vmul.f32 -1.442695, %v6427_v14  ;;  %v9463_v48 = vpop.permute.xlu0 %6516 }
 0xf1a   :  { %7222 = vpow2.f32 %v6486_v50  ;;  %v6425_v63 = vadd.f32 %v9693_v59, %v6395_v41  ;;  %v6428_v1 = vadd.f32 %v9693_v59, %v6398_v30  ;;  %v6488_v2 = vmul.f32 1.442695, %v6472_v39  ;;  %v6618_v42 = vpop.permute.xlu1 %6617 }
 0xf1b   :  { %7224 = vpow2.f32 %v6880_v32  ;;  %v6426_v0 = vadd.f32 %v9693_v59, %v6396_v36  ;;  %v6494_v20 = vmul.f32 1.442695, %v6475_v12  ;;  %v6490_v7 = vmul.f32 1.442695, %v6473_v47 }
 0xf1c   :  { %7226 = vpow2.f32 %v6482_v35  ;;  %v6476_v51 = vsel %vm6467_vm8, %v6425_v63, 0.0  ;;  %v9454_v62 = vsel %vm6467_vm8, %v6428_v1, 0.0  ;;  %v6881_v38 = vmul.f32 -1.442695, %v6425_v63 }
 0xf1d   :  { %v7207_v45 = vpop.eup %7206  ;;  %7228 = vpow2.f32 %v6878_v9  ;;  %v9458_v26 = vsel %vm6467_vm8, %v6426_v0, 0.0  ;;  %v6884_v44 = vmul.f32 -1.442695, %v6428_v1  ;;  %v6882_v6 = vmul.f32 -1.442695, %v6426_v0  ;;  %v6435_v1 = vld [vmem:[#allocation42 + $0x30] sm:$0xff] }
 0xf1e   :  { %v6569_v15 = vadd.f32 1.0, %v7207_v45  ;;  %v7209_v53 = vpop.eup %7208  ;;  %v6500_v39 = vmul.f32 1.442695, %v9445_v28  ;;  %v6496_v17 = vmul.f32 1.442695, %v6476_v51  ;;  %v6430_v28 = vld [vmem:[#allocation42 + $0x8] sm:$0xff] }
 0xf1f   :  { %v6567_v60 = vadd.f32 1.0, %v7209_v53 }
 0xf20   :  { %7230 = vrcp.f32 %v6569_v15  ;;  %v7211_v54 = vpop.eup %7210 }
 0xf21   :  { %7232 = vpow2.f32 %v6492_v25  ;;  %v6570_v10 = vadd.f32 1.0, %v7211_v54  ;;  %v7213_v11 = vpop.eup %7212  ;;  %v6502_v25 = vmul.f32 1.442695, %v9454_v62 }
 0xf22   :  { %7234 = vpow2.f32 %v6883_v46  ;;  %v6568_v58 = vadd.f32 1.0, %v7213_v11 }
 0xf23   :  { %7236 = vrcp.f32 %v6567_v60  ;;  %v7215_v18 = vpop.eup %7214 }
 0xf24   :  { %7238 = vpow2.f32 %v6488_v2  ;;  %v7217_v31 = vpop.eup %7216  ;;  %v6521_v12 = vmul.f32 %v7215_v18, %v6507_v34  ;;  %v6433_v2 = vld [vmem:[#allocation42 + $0x20] sm:$0xff] }
 0xf25   :  { %7240 = vrcp.f32 %v6570_v10  ;;  %v7219_v57 = vpop.eup %7218  ;;  %v6573_v5 = vadd.f32 1.0, %v7217_v31 }
 0xf26   :  { %7242 = vpow2.f32 %v6881_v38  ;;  %v7221_v13 = vpop.eup %7220  ;;  %v6519_v41 = vmul.f32 %v7219_v57, %v6507_v34 }
 0xf27   :  { %7244 = vrcp.f32 %v6568_v58  ;;  %v7223_v4 = vpop.eup %7222  ;;  %v6571_v3 = vadd.f32 1.0, %v7221_v13  ;;  %v6436_v58 = vld [vmem:[#allocation42 + $0x38] sm:$0xff] }
 0xf28   :  { %7246 = vpow2.f32 %v6494_v20  ;;  %v7225_v52 = vpop.eup %7224  ;;  %v6522_v63 = vmul.f32 %v7223_v4, %v6507_v34  ;;  %v6623_v20 = vpop.permute.xlu0 %6622 }
 0xf29   :  { %7248 = vrcp.f32 %v6573_v5  ;;  %v7227_v16 = vpop.eup %7226  ;;  %v6574_v55 = vadd.f32 1.0, %v7225_v52 }
 0xf2a   :  { %7250 = vpow2.f32 %v6884_v44  ;;  %v7229_v8 = vpop.eup %7228  ;;  %v6520_v38 = vmul.f32 %v7227_v16, %v6507_v34  ;;  %v6498_v44 = vmul.f32 1.442695, %v9458_v26 }
 0xf2b   :  { %7252 = vrcp.f32 %v6571_v3  ;;  %v6572_v23 = vadd.f32 1.0, %v7229_v8  ;;  %v6434_v3 = vld [vmem:[#allocation42 + $0x28] sm:$0xff] }
 0xf2c   :  { %7254 = vpow2.f32 %v6490_v7 }
 0xf2d   :  { %v7231_v56 = vpop.eup %7230  ;;  %7256 = vrcp.f32 %v6574_v55 }
 0xf2e   :  { %v7233_v59 = vpop.eup %7232  ;;  %v6605_v14 = vadd.f32 %v7231_v56, %v6431_v22  ;;  %7258 = vpow2.f32 %v6882_v6 }
 0xf2f   :  { %v7235_v33 = vpop.eup %7234  ;;  %7260 = vrcp.f32 %v6572_v23  ;;  %v6525_v18 = vmul.f32 %v7233_v59, %v9460_v43 }
 0xf30   :  { %v7237_v37 = vpop.eup %7236  ;;  %v6632_v61 = vmul.f32 %v6618_v42, %v6605_v14  ;;  %v6577_v49 = vadd.f32 1.0, %v7235_v33  ;;  %7262 = vpow2.f32 %v6500_v39  ;;  %v6439_v39 = vld [vmem:[#allocation42 + $0x50] sm:$0x3] }
 0xf31   :  { %v7239_v50 = vpop.eup %7238  ;;  %v6603_v47 = vadd.f32 %v7237_v37, %v6429_v29 }
 0xf32   :  { %v7241_v27 = vpop.eup %7240  ;;  %v6644_v32 = vsel %vm6465_vm0, %v6521_v12, %v6632_v61  ;;  %7264 = vrcp.f32 %v6577_v49  ;;  %v6523_v16 = vmul.f32 %v7239_v50, %v9460_v43  ;;  %v6628_v12 = vpop.permute.xlu1 %6627 }
 0xf33   :  { %v7243_v35 = vpop.eup %7242  ;;  %6656 = vst [vmem:[%s8140_s9 + $0x10] sm:$0xff] %v6644_v32  ;;  %v6630_v30 = vmul.f32 %v6618_v42, %v6603_v47  ;;  %v6606_v9 = vadd.f32 %v7241_v27, %v6432_v21  ;;  %7266 = vpow2.f32 %v6496_v17  ;;  %v6437_v21 = vld [vmem:[#allocation42 + $0x40] sm:$0x3] }
 0xf34   :  { %v7245_v36 = vpop.eup %7244  ;;  %v6575_v45 = vadd.f32 1.0, %v7243_v35 }
 0xf35   :  { %v7247_v0 = vpop.eup %7246  ;;  %v6642_v15 = vsel %vm6465_vm0, %v6519_v41, %v6630_v30  ;;  %v6633_v46 = vmul.f32 %v6618_v42, %v6606_v9  ;;  %v6604_v51 = vadd.f32 %v7245_v36, %v6430_v28  ;;  %v6438_v36 = vld [vmem:[#allocation42 + $0x48] sm:$0x3] }
 0xf36   :  { %v7249_v53 = vpop.eup %7248  ;;  %6654 = vst [vmem:[%s8140_s9] sm:$0xff] %v6642_v15  ;;  %7268 = vrcp.f32 %v6575_v45  ;;  %v6526_v40 = vmul.f32 %v7247_v0, %v9460_v43 }
 0xf37   :  { %v7251_v60 = vpop.eup %7250  ;;  %v6645_v54 = vsel %vm6465_vm0, %v6522_v63, %v6633_v46  ;;  %v6631_v10 = vmul.f32 %v6618_v42, %v6604_v51  ;;  %v6609_v62 = vadd.f32 %v7249_v53, %v6435_v1  ;;  %7270 = vpow2.f32 %v6502_v25 }
 0xf38   :  { %v7253_v11 = vpop.eup %7252  ;;  %6657 = vst [vmem:[%s8140_s9 + $0x18] sm:$0xff] %v6645_v54  ;;  %v6578_v31 = vadd.f32 1.0, %v7251_v60 }
 0xf39   :  { %v7255_v57 = vpop.eup %7254  ;;  %v6643_v5 = vsel %vm6465_vm0, %v6520_v38, %v6631_v10  ;;  %v6636_v13 = vmul.f32 %v6623_v20, %v6609_v62  ;;  %v6607_v7 = vadd.f32 %v7253_v11, %v6433_v2 }
 0xf3a   :  { %v7257_v4 = vpop.eup %7256  ;;  %6655 = vst [vmem:[%s8140_s9 + $0x8] sm:$0xff] %v6643_v5  ;;  %7272 = vrcp.f32 %v6578_v31  ;;  %v6524_v33 = vmul.f32 %v7255_v57, %v9460_v43  ;;  %v6440_v43 = vld [vmem:[#allocation42 + $0x58] sm:$0x3] }
 0xf3b   :  { %v7259_v52 = vpop.eup %7258  ;;  %v6648_v6 = vsel %vm6466_vm7, %v6525_v18, %v6636_v13  ;;  %v6634_v26 = vmul.f32 %v6623_v20, %v6607_v7  ;;  %v6610_v22 = vadd.f32 %v7257_v4, %v6436_v58  ;;  %7274 = vpow2.f32 %v6498_v44 }
 0xf3c   :  { %v7261_v55 = vpop.eup %7260  ;;  %6660 = vst [vmem:[%s8140_s9 + $0x30] sm:$0xff] %v6648_v6  ;;  %v6576_v8 = vadd.f32 1.0, %v7259_v52 }
 0xf3d   :  { %v6646_v34 = vsel %vm6466_vm7, %v6523_v16, %v6634_v26  ;;  %v6637_v56 = vmul.f32 %v6623_v20, %v6610_v22  ;;  %v6608_v23 = vadd.f32 %v7261_v55, %v6434_v3  ;;  %v7263_v59 = vpop.eup %7262 }
 0xf3e   :  { %6658 = vst [vmem:[%s8140_s9 + $0x20] sm:$0xff] %v6646_v34  ;;  %7276 = vrcp.f32 %v6576_v8  ;;  %v6529_v50 = vmul.f32 %v7263_v59, %v9463_v48 }
 0xf3f   :  { %v7265_v14 = vpop.eup %7264  ;;  %v6649_v29 = vsel %vm6466_vm7, %v6526_v40, %v6637_v56  ;;  %v6635_v42 = vmul.f32 %v6623_v20, %v6608_v23 }
 0xf40   :  { %6661 = vst [vmem:[%s8140_s9 + $0x38] sm:$0xff] %v6649_v29  ;;  %v6613_v37 = vadd.f32 %v7265_v14, %v6439_v39  ;;  %v7267_v49 = vpop.eup %7266 }
 0xf41   :  { %v6647_v61 = vsel %vm6466_vm7, %v6524_v33, %v6635_v42  ;;  %v6527_v35 = vmul.f32 %v7267_v49, %v9463_v48 }
 0xf42   :  { %6659 = vst [vmem:[%s8140_s9 + $0x28] sm:$0xff] %v6647_v61  ;;  %v6640_v47 = vmul.f32 %v6628_v12, %v6613_v37 }
 0xf43   :  { %v7269_v17 = vpop.eup %7268 }
 0xf44   :  { %v6652_v27 = vsel %vm6467_vm8, %v6529_v50, %v6640_v47  ;;  %v6611_v32 = vadd.f32 %v7269_v17, %v6437_v21  ;;  %v7271_v28 = vpop.eup %7270 }
 0xf45   :  { %6664 = vst [vmem:[%s8140_s9 + $0x50] sm:$0x3] %v6652_v27  ;;  %v6530_v1 = vmul.f32 %v7271_v28, %v9463_v48 }
 0xf46   :  { %v6638_v24 = vmul.f32 %v6628_v12, %v6611_v32 }
 0xf47   :  { %v7273_v41 = vpop.eup %7272 }
 0xf48   :  { %v6650_v30 = vsel %vm6467_vm8, %v6527_v35, %v6638_v24  ;;  %v6614_v9 = vadd.f32 %v7273_v41, %v6440_v43  ;;  %v7275_v63 = vpop.eup %7274 }
 0xf49   :  { %6662 = vst [vmem:[%s8140_s9 + $0x40] sm:$0x3] %v6650_v30  ;;  %v6528_v46 = vmul.f32 %v7275_v63, %v9463_v48 }
 0xf4a   :  { %v6641_v45 = vmul.f32 %v6628_v12, %v6614_v9 }
 0xf4b   :  { %v7277_v25 = vpop.eup %7276 }
 0xf4c   :  { %v6653_v0 = vsel %vm6467_vm8, %v6530_v1, %v6641_v45  ;;  %v6612_v15 = vadd.f32 %v7277_v25, %v6438_v36 }
 0xf4d   :  { %6665 = vst [vmem:[%s8140_s9 + $0x58] sm:$0x3] %v6653_v0 }
 0xf4e   :  { %v6639_v51 = vmul.f32 %v6628_v12, %v6612_v15 }
 0xf50   :  { %v6651_v53 = vsel %vm6467_vm8, %v6528_v46, %v6639_v51 }
 0xf51   :  { %6663 = vst [vmem:[%s8140_s9 + $0x48] sm:$0x3] %v6651_v53 }
 0xf52   :  { %6674 = vsyncpa [#allocation3], 1 }
 0xf53   :  { %6675 = vsyncpa [#allocation5], 1 }
 0xf54   :  { %6676 = vsyncpa [#allocation8], 1 }
 0xf55   :  { %6677 = vsyncpa [#allocation11], 1 }
 0xf56   :  { %6678 = vsyncpa [#allocation14], 1 }
 0xf57   :  { %6679 = vsyncpa [#allocation17], 1 }
 0xf58   :  { %6680 = vsyncpa [#allocation20], 1 }
 0xf59   :  { %6681 = vsyncpa [#allocation23], 1 }
 0xf5a   :  { %6682 = vsyncpa [#allocation26], 1 }
 0xf5b   :  { %6683 = vsyncpa [#allocation29], 1 }
 0xf5c   :  { %6684 = vsyncpa [#allocation32], 1 }
 0xf5d   :  { %6685 = vsyncpa [#allocation35], 1 }
 0xf5e   :  { %6686 = vsyncpa [#allocation38], 1 }
 0xf5f   :  { %6687 = vsyncpa [#allocation41], 1 }
 0xf60   :  { %6688 = vsyncpa [#allocation44], 1 }

</bundles_post_ra>
